<compile_context>
chip_gen: v5e
topology: v5e:2x2
jax: 0.10.0
libtpu: 0.0.40
codegen_flags: <defaults>
</compile_context>

<pallas_src>
import jax
import jax.numpy as jnp
import numpy as np
from jax.experimental import pallas as pl
from jax.experimental.pallas import tpu as pltpu

# our fused gate-block order [i, f, o, g]  ->  PyTorch gate order [i, f, g, o]
OUR2PT = (0, 1, 3, 2)


# ----------------------------------------------------------------------------
# Fused Pallas kernel: embeddings + 4 LSTM directions (one recurrence) + head.
# ----------------------------------------------------------------------------
def fused_forward_kernel(ids_ref,      # (T*B_pad, 2) int32  [fn id, ln id + V], pads = -1
                         m_ref,        # (2V+1, 2G)  fused embed+input-proj (+bias row)
                         w_hh_ref,     # (HD, G)     block-diagonal recurrent weight
                         hc0_ref,      # (2, B_pad, HD)  lane-stacked h0 / c0
                         pct_ref,      # (B_pad, 8)  [pct(4) | 1 | 0 0 0]
                         w_head_ref,   # (HD+8, O)   [h rows | pct rows | bias | 0s]
                         out_ref,      # (B_pad, O)
                         xg_ref):      # scratch (T*B_pad, 2G)
    TB = ids_ref.shape[0]              # T * B_pad (time-major, 8-sublane padded batch)
    B_pad = hc0_ref.shape[1]
    T = TB // B_pad
    VR = m_ref.shape[0]                # 2V + 1 (last row = folded gate bias)
    HD = w_hh_ref.shape[0]             # 4*H lane-stacked hidden width (= 128)
    G = w_hh_ref.shape[1]              # 4*HD fused gate width (= 512)

    # ---- Fused embeddings + input projections + bias: ONE lane-dense MXU matmul.
    # one-hot columns: [fn vocab | ln vocab | constant-1 bias column]
    ids = ids_ref[...]
    iota = jax.lax.broadcasted_iota(jnp.int32, (TB, VR), 1)
    onehot = (jnp.where(ids[:, 0:1] == iota, 1.0, 0.0)
              + jnp.where(ids[:, 1:2] == iota, 1.0, 0.0)
              + jnp.where(iota == VR - 1, 1.0, 0.0))
    # xg columns: [fwd dirs' gates (G) | bwd dirs' gates (G)]
    xg_ref[...] = jnp.dot(onehot, m_ref[...], preferred_element_type=jnp.float32)

    # ---- Single fused recurrence for all 4 directions (lane-stacked).
    h = hc0_ref[0]                     # (B_pad, HD), lanes = [fn_f | fn_b | ln_f | ln_b]
    c = hc0_ref[1]
    w_hh = w_hh_ref[...]               # (HD, G) block-diagonal across directions
    for t in range(T):                 # fully unrolled, T = 8
        rt = T - 1 - t
        xf = xg_ref[t * B_pad:(t + 1) * B_pad, 0:G]          # fwd dirs, time t
        xb = xg_ref[rt * B_pad:(rt + 1) * B_pad, G:2 * G]    # bwd dirs, time T-1-t
        gates = xf + xb + jnp.dot(h, w_hh, preferred_element_type=jnp.float32)
        sg = jax.nn.sigmoid(gates[:, 0:3 * HD])              # [i | f | o] whole-vreg blocks
        i_g = sg[:, 0 * HD:1 * HD]
        f_g = sg[:, 1 * HD:2 * HD]
        o_g = sg[:, 2 * HD:3 * HD]
        g_g = jnp.tanh(gates[:, 3 * HD:4 * HD])
        c = f_g * c + i_g * g_g
        h = o_g * jnp.tanh(c)

    # ---- Head: h lanes already match w_h2o row order [fn_f|fn_b|ln_f|ln_b];
    #      pct carries a constant-1 column so the bias is folded into the matmul.
    w = w_head_ref[...]
    logits = (jnp.dot(h, w[0:HD, :], preferred_element_type=jnp.float32)
              + jnp.dot(pct_ref[...], w[HD:, :], preferred_element_type=jnp.float32))
    out_ref[...] = jax.nn.sigmoid(logits).astype(out_ref.dtype)


def fused_forward(ids, M, w_hh_block, hc0, pct_aug, w_head):
    B_pad = hc0.shape[1]
    O = w_head.shape[1]
    G = w_hh_block.shape[1]
    TB = ids.shape[0]
    return pl.pallas_call(
        fused_forward_kernel,
        out_shape=jax.ShapeDtypeStruct((B_pad, O), jnp.float32),
        in_specs=[pl.BlockSpec(memory_space=pltpu.MemorySpace.VMEM)] * 6,
        out_specs=pl.BlockSpec(memory_space=pltpu.MemorySpace.VMEM),
        scratch_shapes=[pltpu.VMEM((TB, 2 * G), jnp.float32)],
    )(ids, M, w_hh_block, hc0, pct_aug, w_head)


# ----------------------------------------------------------------------------
# Canonical (PyTorch-equivalent) parameters + host-side packing for the kernel.
# ----------------------------------------------------------------------------
def make_params(key, input_size, embedding_dim, hidden_size, output_size):
    """Deterministic synthetic parameters with PyTorch-equivalent shapes."""
    E, H, O = embedding_dim, hidden_size, output_size
    keys = iter(jax.random.split(key, 20))

    def lstm_dir():
        # PyTorch stores weight_ih (4H, E) / weight_hh (4H, H); we keep them
        # pre-transposed for right-multiplication and fold the two biases.
        w_ih = jax.random.normal(next(keys), (E, 4 * H), jnp.float32) * 0.1
        w_hh = jax.random.normal(next(keys), (H, 4 * H), jnp.float32) * 0.1
        b_ih = jax.random.normal(next(keys), (4 * H,), jnp.float32) * 0.1
        b_hh = jax.random.normal(next(keys), (4 * H,), jnp.float32) * 0.1
        return w_ih, w_hh, (b_ih + b_hh).reshape(1, 4 * H)

    dirs = [lstm_dir() for _ in range(4)]   # fn_fwd, fn_bwd, ln_fwd, ln_bwd
    fn_emb = jax.random.normal(next(keys), (input_size, E), jnp.float32) * 0.1
    ln_emb = jax.random.normal(next(keys), (input_size, E), jnp.float32) * 0.1
    w_h2o = jax.random.normal(next(keys), (4 * H + 4, O), jnp.float32) * 0.1
    b_h2o = jax.random.normal(next(keys), (1, O), jnp.float32) * 0.1
    return {
        "fn_emb": fn_emb, "ln_emb": ln_emb,
        "w_ih": jnp.stack([d[0] for d in dirs]),    # (4, E, 4H)  pt gate order [i,f,g,o]
        "w_hh": jnp.stack([d[1] for d in dirs]),    # (4, H, 4H)
        "b":    jnp.stack([d[2] for d in dirs]),    # (4, 1, 4H)  b_ih + b_hh
        "w_h2o": w_h2o, "b_h2o": b_h2o,
    }


def pack_for_kernel(params):
    """Host-side (one-time) packing into the fused/lane-stacked kernel layout."""
    fn_emb = np.asarray(params["fn_emb"]); ln_emb = np.asarray(params["ln_emb"])
    w_ih = np.asarray(params["w_ih"]); w_hh = np.asarray(params["w_hh"])
    b = np.asarray(params["b"]); w_h2o = np.asarray(params["w_h2o"])
    b_h2o = np.asarray(params["b_h2o"])
    V, _E = fn_emb.shape
    H = w_hh.shape[1]
    HD = 4 * H                  # lane-stacked hidden width
    G = 4 * HD                  # fused gate width

    w_hh_block = np.zeros((HD, G), np.float32)         # block-diag across directions
    M = np.zeros((2 * V + 1, 2 * G), np.float32)       # fused embed+proj (+bias row)
    embs = [fn_emb, fn_emb, ln_emb, ln_emb]
    row0 = [0, 0, V, V]          # fn tokens -> rows 0:V, ln tokens -> rows V:2V
    half = [0, 1, 0, 1]          # fwd dirs -> columns 0:G, bwd dirs -> columns G:2G
    for d in range(4):
        xw = embs[d] @ w_ih[d]                         # (V, 4H), pt gate order
        for gb, pt in enumerate(OUR2PT):
            col = half[d] * G + gb * HD + d * H
            M[row0[d]:row0[d] + V, col:col + H] = xw[:, pt * H:(pt + 1) * H]
            M[2 * V, col:col + H] = b[d][0, pt * H:(pt + 1) * H]
            w_hh_block[d * H:(d + 1) * H, gb * HD + d * H:gb * HD + (d + 1) * H] = \
                w_hh[d][:, pt * H:(pt + 1) * H]

    O = w_h2o.shape[1]
    w_head = np.zeros((HD + 8, O), np.float32)
    w_head[0:HD, :] = w_h2o[0:HD, :]                   # h rows, already in concat order
    w_head[HD:HD + 4, :] = w_h2o[HD:HD + 4, :]         # pct rows
    w_head[HD + 4, :] = b_h2o[0]                       # bias (hits the const-1 column)
    return {"M": jnp.asarray(M), "w_hh_block": jnp.asarray(w_hh_block),
            "w_head": jnp.asarray(w_head), "V": jnp.int32(V)}


# ----------------------------------------------------------------------------
# Model forward (FLZEmbedBiLSTMBinary, num_layers=1, dropout=0)
# ----------------------------------------------------------------------------
def model_forward(packed, fn, ln, pct, hidden):
    h0, c0 = hidden                              # each (2, B, H)
    B, T = fn.shape
    H = h0.shape[-1]
    B_pad = ((B + 7) // 8) * 8                   # pad batch to full sublanes
    V = packed["V"]

    # token ids, time-major, sublane-padded: row = t*B_pad + b ; pads = -1 (zero one-hot)
    pad = -jnp.ones((T, B_pad - B), jnp.int32)
    fn_ids = jnp.concatenate([jnp.transpose(fn), pad], axis=1).reshape(T * B_pad, 1)
    ln_ids = jnp.concatenate([jnp.transpose(ln) + V, pad], axis=1).reshape(T * B_pad, 1)
    ids = jnp.concatenate([fn_ids, ln_ids], axis=1)

    # lane-stacked initial state; the same hidden tuple feeds both LSTMs (as in PyTorch).
    zpad = jnp.zeros((B_pad - B, 4 * H), jnp.float32)
    h0p = jnp.concatenate([jnp.concatenate([h0[0], h0[1], h0[0], h0[1]], axis=1), zpad], 0)
    c0p = jnp.concatenate([jnp.concatenate([c0[0], c0[1], c0[0], c0[1]], axis=1), zpad], 0)
    hc0 = jnp.stack([h0p, c0p])                  # (2, B_pad, 4H)

    # pct augmented with a constant-1 column (folds the head bias into the matmul)
    pct_aug = jnp.zeros((B_pad, 8), jnp.float32)
    pct_aug = pct_aug.at[:B, 0:4].set(pct).at[:B, 4].set(1.0)

    out_full = fused_forward(ids, packed["M"], packed["w_hh_block"], hc0,
                             pct_aug, packed["w_head"])
    return out_full[:B], hidden


# ----------------------------------------------------------------------------
# Pure-JAX reference (sanity check, uses the canonical per-direction weights)
# ----------------------------------------------------------------------------
def ref_forward(params, fn, ln, pct, hidden):
    h0, c0 = hidden
    H = h0.shape[-1]

    def lstm_final(x_tbe, w_ih, w_hh, b, h_init, c_init):
        def step(carry, x_t):
            h, c = carry
            gates = x_t @ w_ih + h @ w_hh + b
            i = jax.nn.sigmoid(gates[:, 0 * H:1 * H])
            f = jax.nn.sigmoid(gates[:, 1 * H:2 * H])
            g = jnp.tanh(gates[:, 2 * H:3 * H])
            o = jax.nn.sigmoid(gates[:, 3 * H:4 * H])
            c = f * c + i * g
            h = o * jnp.tanh(c)
            return (h, c), None
        (h, _), _ = jax.lax.scan(step, (h_init, c_init), x_tbe)
        return h

    def bilstm(tokens, emb, d0):
        x = jnp.transpose(jnp.take(emb, tokens, axis=0), (1, 0, 2))  # (T, B, E)
        hf = lstm_final(x, params["w_ih"][d0], params["w_hh"][d0],
                        params["b"][d0], h0[0], c0[0])
        hb = lstm_final(x[::-1], params["w_ih"][d0 + 1], params["w_hh"][d0 + 1],
                        params["b"][d0 + 1], h0[1], c0[1])
        return jnp.concatenate([hf, hb], axis=1)

    fn_out = bilstm(fn, params["fn_emb"], 0)
    ln_out = bilstm(ln, params["ln_emb"], 2)
    combined = jnp.concatenate([fn_out, ln_out, pct], axis=1)
    return jax.nn.sigmoid(combined @ params["w_h2o"] + params["b_h2o"])


# ----------------------------------------------------------------------------
if __name__ == "__main__":
    INPUT_SIZE = 30       # vocab (letters + specials)
    EMBED_DIM = 16
    HIDDEN = 32
    OUTPUT = 1
    B, T = 2, 8
    NUM_LAYERS = 1        # dropout=0 keeps num_layers=1

    key = jax.random.PRNGKey(0)
    k_fn, k_ln, k_pct = jax.random.split(key, 3)
    fn = jax.random.randint(k_fn, (B, T), 0, INPUT_SIZE, dtype=jnp.int32)
    ln = jax.random.randint(k_ln, (B, T), 0, INPUT_SIZE, dtype=jnp.int32)
    pct = jax.random.uniform(k_pct, (B, 4), dtype=jnp.float32)
    hidden = (jnp.zeros((NUM_LAYERS * 2, B, HIDDEN), jnp.float32),
              jnp.zeros((NUM_LAYERS * 2, B, HIDDEN), jnp.float32))

    params = make_params(jax.random.PRNGKey(42),
                         INPUT_SIZE, EMBED_DIM, HIDDEN, OUTPUT)
    packed = pack_for_kernel(params)

    out, hidden_out = jax.jit(model_forward)(packed, fn, ln, pct, hidden)
    out = jax.block_until_ready(out)

    ref = jax.block_until_ready(ref_forward(params, fn, ln, pct, hidden))
    np.testing.assert_allclose(np.asarray(out), np.asarray(ref),
                               rtol=1e-3, atol=1e-3)
    assert out.shape == (B, OUTPUT)
    assert hidden_out[0].shape == (NUM_LAYERS * 2, B, HIDDEN)

    print("KERNEL_OK")
</pallas_src>

<mosaic_0001>
module attributes {stable_mosaic.version = 11 : i64} {
  func.func @fused_forward_kernel(%arg0: memref<64x2xi32, #tpu.memory_space<vmem>>, %arg1: memref<61x1024xf32, #tpu.memory_space<vmem>>, %arg2: memref<128x512xf32, #tpu.memory_space<vmem>>, %arg3: memref<2x8x128xf32, #tpu.memory_space<vmem>>, %arg4: memref<8x8xf32, #tpu.memory_space<vmem>>, %arg5: memref<136x1xf32, #tpu.memory_space<vmem>>, %arg6: memref<8x1xf32, #tpu.memory_space<vmem>>, %arg7: memref<64x1024xf32, #tpu.memory_space<vmem>>) attributes {dimension_semantics = [], scalar_prefetch = 0 : i64, scratch_operands = 1 : i64, tpu.core_type = #tpu.core_type<tc>} {
    %c0 = arith.constant 0 : index
    %c0_0 = arith.constant 0 : index
    %0 = vector.load %arg0[%c0, %c0_0] : memref<64x2xi32, #tpu.memory_space<vmem>>, vector<64x2xi32>
    %1 = tpu.iota {dimensions = array<i32: 1>} : vector<64x61xi32>
    %2 = vector.extract_strided_slice %0 {offsets = [0, 0], sizes = [64, 1], strides = [1, 1]} : vector<64x2xi32> to vector<64x1xi32>
    %3 = vector.broadcast %2 : vector<64x1xi32> to vector<64x61xi32>
    %4 = arith.cmpi eq, %3, %1 : vector<64x61xi32>
    %cst = arith.constant 1.000000e+00 : f32
    %cst_1 = arith.constant 0.000000e+00 : f32
    %5 = vector.broadcast %cst : f32 to vector<64x61xf32>
    %6 = vector.broadcast %cst_1 : f32 to vector<64x61xf32>
    %7 = arith.select %4, %5, %6 : vector<64x61xi1>, vector<64x61xf32>
    %8 = vector.extract_strided_slice %0 {offsets = [0, 1], sizes = [64, 1], strides = [1, 1]} : vector<64x2xi32> to vector<64x1xi32>
    %9 = vector.broadcast %8 : vector<64x1xi32> to vector<64x61xi32>
    %10 = arith.cmpi eq, %9, %1 : vector<64x61xi32>
    %cst_2 = arith.constant 1.000000e+00 : f32
    %cst_3 = arith.constant 0.000000e+00 : f32
    %11 = vector.broadcast %cst_2 : f32 to vector<64x61xf32>
    %12 = vector.broadcast %cst_3 : f32 to vector<64x61xf32>
    %13 = arith.select %10, %11, %12 : vector<64x61xi1>, vector<64x61xf32>
    %14 = arith.addf %7, %13 : vector<64x61xf32>
    %c60_i32 = arith.constant 60 : i32
    %15 = vector.broadcast %c60_i32 : i32 to vector<64x61xi32>
    %16 = arith.cmpi eq, %1, %15 : vector<64x61xi32>
    %cst_4 = arith.constant 1.000000e+00 : f32
    %cst_5 = arith.constant 0.000000e+00 : f32
    %17 = vector.broadcast %cst_4 : f32 to vector<64x61xf32>
    %18 = vector.broadcast %cst_5 : f32 to vector<64x61xf32>
    %19 = arith.select %16, %17, %18 : vector<64x61xi1>, vector<64x61xf32>
    %20 = arith.addf %14, %19 : vector<64x61xf32>
    %c0_6 = arith.constant 0 : index
    %c0_7 = arith.constant 0 : index
    %21 = vector.load %arg1[%c0_6, %c0_7] : memref<61x1024xf32, #tpu.memory_space<vmem>>, vector<61x1024xf32>
    %cst_8 = arith.constant dense<0.000000e+00> : vector<64x1024xf32>
    %22 = tpu.matmul %20, %21, %cst_8 {dimension_numbers = #tpu.dot_dimension_numbers<[1], [0], [0], [1], [0, 0, 1, 1], [], []>} : vector<64x61xf32>, vector<61x1024xf32>, vector<64x1024xf32> -> vector<64x1024xf32>
    %c0_9 = arith.constant 0 : index
    %c0_10 = arith.constant 0 : index
    %23 = vector.load %arg7[%c0_9, %c0_10] : memref<64x1024xf32, #tpu.memory_space<vmem>>, vector<64x1024xf32>
    tpu.vector_store %arg7[%c0_9, %c0_10], %22 {strides = array<i32>} : memref<64x1024xf32, #tpu.memory_space<vmem>>, vector<64x1024xf32>,
    %c0_11 = arith.constant 0 : index
    %c0_12 = arith.constant 0 : index
    %c0_13 = arith.constant 0 : index
    %24 = vector.load %arg3[%c0_11, %c0_12, %c0_13] : memref<2x8x128xf32, #tpu.memory_space<vmem>>, vector<1x8x128xf32>
    %25 = vector.shape_cast %24 : vector<1x8x128xf32> to vector<8x128xf32>
    %c1 = arith.constant 1 : index
    %c0_14 = arith.constant 0 : index
    %c0_15 = arith.constant 0 : index
    %26 = vector.load %arg3[%c1, %c0_14, %c0_15] : memref<2x8x128xf32, #tpu.memory_space<vmem>>, vector<1x8x128xf32>
    %27 = vector.shape_cast %26 : vector<1x8x128xf32> to vector<8x128xf32>
    %c0_16 = arith.constant 0 : index
    %c0_17 = arith.constant 0 : index
    %28 = vector.load %arg2[%c0_16, %c0_17] : memref<128x512xf32, #tpu.memory_space<vmem>>, vector<128x512xf32>
    %c0_18 = arith.constant 0 : index
    %c0_19 = arith.constant 0 : index
    %29 = vector.load %arg7[%c0_18, %c0_19] : memref<64x1024xf32, #tpu.memory_space<vmem>>, vector<8x512xf32>
    %c56 = arith.constant 56 : index
    %c512 = arith.constant 512 : index
    %30 = vector.load %arg7[%c56, %c512] : memref<64x1024xf32, #tpu.memory_space<vmem>>, vector<8x512xf32>
    %31 = arith.addf %29, %30 : vector<8x512xf32>
    %cst_20 = arith.constant dense<0.000000e+00> : vector<8x512xf32>
    %32 = tpu.matmul %25, %28, %cst_20 {dimension_numbers = #tpu.dot_dimension_numbers<[1], [0], [0], [1], [0, 0, 1, 1], [], []>} : vector<8x128xf32>, vector<128x512xf32>, vector<8x512xf32> -> vector<8x512xf32>
    %33 = arith.addf %31, %32 : vector<8x512xf32>
    %34 = vector.extract_strided_slice %33 {offsets = [0, 0], sizes = [8, 384], strides = [1, 1]} : vector<8x512xf32> to vector<8x384xf32>
    %35 = arith.negf %34 : vector<8x384xf32>
    %36 = math.exp %35 : vector<8x384xf32>
    %cst_21 = arith.constant 1.000000e+00 : f32
    %37 = vector.broadcast %cst_21 : f32 to vector<8x384xf32>
    %38 = arith.addf %37, %36 : vector<8x384xf32>
    %39 = arith.divf %37, %38 : vector<8x384xf32>
    %40 = vector.extract_strided_slice %39 {offsets = [0, 0], sizes = [8, 128], strides = [1, 1]} : vector<8x384xf32> to vector<8x128xf32>
    %41 = vector.extract_strided_slice %39 {offsets = [0, 128], sizes = [8, 128], strides = [1, 1]} : vector<8x384xf32> to vector<8x128xf32>
    %42 = vector.extract_strided_slice %39 {offsets = [0, 256], sizes = [8, 128], strides = [1, 1]} : vector<8x384xf32> to vector<8x128xf32>
    %43 = vector.extract_strided_slice %33 {offsets = [0, 384], sizes = [8, 128], strides = [1, 1]} : vector<8x512xf32> to vector<8x128xf32>
    %44 = math.tanh %43 : vector<8x128xf32>
    %45 = arith.mulf %41, %27 : vector<8x128xf32>
    %46 = arith.mulf %40, %44 : vector<8x128xf32>
    %47 = arith.addf %45, %46 : vector<8x128xf32>
    %48 = math.tanh %47 : vector<8x128xf32>
    %49 = arith.mulf %42, %48 : vector<8x128xf32>
    %c8 = arith.constant 8 : index
    %c0_22 = arith.constant 0 : index
    %50 = vector.load %arg7[%c8, %c0_22] : memref<64x1024xf32, #tpu.memory_space<vmem>>, vector<8x512xf32>
    %c48 = arith.constant 48 : index
    %c512_23 = arith.constant 512 : index
    %51 = vector.load %arg7[%c48, %c512_23] : memref<64x1024xf32, #tpu.memory_space<vmem>>, vector<8x512xf32>
    %52 = arith.addf %50, %51 : vector<8x512xf32>
    %cst_24 = arith.constant dense<0.000000e+00> : vector<8x512xf32>
    %53 = tpu.matmul %49, %28, %cst_24 {dimension_numbers = #tpu.dot_dimension_numbers<[1], [0], [0], [1], [0, 0, 1, 1], [], []>} : vector<8x128xf32>, vector<128x512xf32>, vector<8x512xf32> -> vector<8x512xf32>
    %54 = arith.addf %52, %53 : vector<8x512xf32>
    %55 = vector.extract_strided_slice %54 {offsets = [0, 0], sizes = [8, 384], strides = [1, 1]} : vector<8x512xf32> to vector<8x384xf32>
    %56 = arith.negf %55 : vector<8x384xf32>
    %57 = math.exp %56 : vector<8x384xf32>
    %cst_25 = arith.constant 1.000000e+00 : f32
    %58 = vector.broadcast %cst_25 : f32 to vector<8x384xf32>
    %59 = arith.addf %58, %57 : vector<8x384xf32>
    %60 = arith.divf %58, %59 : vector<8x384xf32>
    %61 = vector.extract_strided_slice %60 {offsets = [0, 0], sizes = [8, 128], strides = [1, 1]} : vector<8x384xf32> to vector<8x128xf32>
    %62 = vector.extract_strided_slice %60 {offsets = [0, 128], sizes = [8, 128], strides = [1, 1]} : vector<8x384xf32> to vector<8x128xf32>
    %63 = vector.extract_strided_slice %60 {offsets = [0, 256], sizes = [8, 128], strides = [1, 1]} : vector<8x384xf32> to vector<8x128xf32>
    %64 = vector.extract_strided_slice %54 {offsets = [0, 384], sizes = [8, 128], strides = [1, 1]} : vector<8x512xf32> to vector<8x128xf32>
    %65 = math.tanh %64 : vector<8x128xf32>
    %66 = arith.mulf %62, %47 : vector<8x128xf32>
    %67 = arith.mulf %61, %65 : vector<8x128xf32>
    %68 = arith.addf %66, %67 : vector<8x128xf32>
    %69 = math.tanh %68 : vector<8x128xf32>
    %70 = arith.mulf %63, %69 : vector<8x128xf32>
    %c16 = arith.constant 16 : index
    %c0_26 = arith.constant 0 : index
    %71 = vector.load %arg7[%c16, %c0_26] : memref<64x1024xf32, #tpu.memory_space<vmem>>, vector<8x512xf32>
    %c40 = arith.constant 40 : index
    %c512_27 = arith.constant 512 : index
    %72 = vector.load %arg7[%c40, %c512_27] : memref<64x1024xf32, #tpu.memory_space<vmem>>, vector<8x512xf32>
    %73 = arith.addf %71, %72 : vector<8x512xf32>
    %cst_28 = arith.constant dense<0.000000e+00> : vector<8x512xf32>
    %74 = tpu.matmul %70, %28, %cst_28 {dimension_numbers = #tpu.dot_dimension_numbers<[1], [0], [0], [1], [0, 0, 1, 1], [], []>} : vector<8x128xf32>, vector<128x512xf32>, vector<8x512xf32> -> vector<8x512xf32>
    %75 = arith.addf %73, %74 : vector<8x512xf32>
    %76 = vector.extract_strided_slice %75 {offsets = [0, 0], sizes = [8, 384], strides = [1, 1]} : vector<8x512xf32> to vector<8x384xf32>
    %77 = arith.negf %76 : vector<8x384xf32>
    %78 = math.exp %77 : vector<8x384xf32>
    %cst_29 = arith.constant 1.000000e+00 : f32
    %79 = vector.broadcast %cst_29 : f32 to vector<8x384xf32>
    %80 = arith.addf %79, %78 : vector<8x384xf32>
    %81 = arith.divf %79, %80 : vector<8x384xf32>
    %82 = vector.extract_strided_slice %81 {offsets = [0, 0], sizes = [8, 128], strides = [1, 1]} : vector<8x384xf32> to vector<8x128xf32>
    %83 = vector.extract_strided_slice %81 {offsets = [0, 128], sizes = [8, 128], strides = [1, 1]} : vector<8x384xf32> to vector<8x128xf32>
    %84 = vector.extract_strided_slice %81 {offsets = [0, 256], sizes = [8, 128], strides = [1, 1]} : vector<8x384xf32> to vector<8x128xf32>
    %85 = vector.extract_strided_slice %75 {offsets = [0, 384], sizes = [8, 128], strides = [1, 1]} : vector<8x512xf32> to vector<8x128xf32>
    %86 = math.tanh %85 : vector<8x128xf32>
    %87 = arith.mulf %83, %68 : vector<8x128xf32>
    %88 = arith.mulf %82, %86 : vector<8x128xf32>
    %89 = arith.addf %87, %88 : vector<8x128xf32>
    %90 = math.tanh %89 : vector<8x128xf32>
    %91 = arith.mulf %84, %90 : vector<8x128xf32>
    %c24 = arith.constant 24 : index
    %c0_30 = arith.constant 0 : index
    %92 = vector.load %arg7[%c24, %c0_30] : memref<64x1024xf32, #tpu.memory_space<vmem>>, vector<8x512xf32>
    %c32 = arith.constant 32 : index
    %c512_31 = arith.constant 512 : index
    %93 = vector.load %arg7[%c32, %c512_31] : memref<64x1024xf32, #tpu.memory_space<vmem>>, vector<8x512xf32>
    %94 = arith.addf %92, %93 : vector<8x512xf32>
    %cst_32 = arith.constant dense<0.000000e+00> : vector<8x512xf32>
    %95 = tpu.matmul %91, %28, %cst_32 {dimension_numbers = #tpu.dot_dimension_numbers<[1], [0], [0], [1], [0, 0, 1, 1], [], []>} : vector<8x128xf32>, vector<128x512xf32>, vector<8x512xf32> -> vector<8x512xf32>
    %96 = arith.addf %94, %95 : vector<8x512xf32>
    %97 = vector.extract_strided_slice %96 {offsets = [0, 0], sizes = [8, 384], strides = [1, 1]} : vector<8x512xf32> to vector<8x384xf32>
    %98 = arith.negf %97 : vector<8x384xf32>
    %99 = math.exp %98 : vector<8x384xf32>
    %cst_33 = arith.constant 1.000000e+00 : f32
    %100 = vector.broadcast %cst_33 : f32 to vector<8x384xf32>
    %101 = arith.addf %100, %99 : vector<8x384xf32>
    %102 = arith.divf %100, %101 : vector<8x384xf32>
    %103 = vector.extract_strided_slice %102 {offsets = [0, 0], sizes = [8, 128], strides = [1, 1]} : vector<8x384xf32> to vector<8x128xf32>
    %104 = vector.extract_strided_slice %102 {offsets = [0, 128], sizes = [8, 128], strides = [1, 1]} : vector<8x384xf32> to vector<8x128xf32>
    %105 = vector.extract_strided_slice %102 {offsets = [0, 256], sizes = [8, 128], strides = [1, 1]} : vector<8x384xf32> to vector<8x128xf32>
    %106 = vector.extract_strided_slice %96 {offsets = [0, 384], sizes = [8, 128], strides = [1, 1]} : vector<8x512xf32> to vector<8x128xf32>
    %107 = math.tanh %106 : vector<8x128xf32>
    %108 = arith.mulf %104, %89 : vector<8x128xf32>
    %109 = arith.mulf %103, %107 : vector<8x128xf32>
    %110 = arith.addf %108, %109 : vector<8x128xf32>
    %111 = math.tanh %110 : vector<8x128xf32>
    %112 = arith.mulf %105, %111 : vector<8x128xf32>
    %c32_34 = arith.constant 32 : index
    %c0_35 = arith.constant 0 : index
    %113 = vector.load %arg7[%c32_34, %c0_35] : memref<64x1024xf32, #tpu.memory_space<vmem>>, vector<8x512xf32>
    %c24_36 = arith.constant 24 : index
    %c512_37 = arith.constant 512 : index
    %114 = vector.load %arg7[%c24_36, %c512_37] : memref<64x1024xf32, #tpu.memory_space<vmem>>, vector<8x512xf32>
    %115 = arith.addf %113, %114 : vector<8x512xf32>
    %cst_38 = arith.constant dense<0.000000e+00> : vector<8x512xf32>
    %116 = tpu.matmul %112, %28, %cst_38 {dimension_numbers = #tpu.dot_dimension_numbers<[1], [0], [0], [1], [0, 0, 1, 1], [], []>} : vector<8x128xf32>, vector<128x512xf32>, vector<8x512xf32> -> vector<8x512xf32>
    %117 = arith.addf %115, %116 : vector<8x512xf32>
    %118 = vector.extract_strided_slice %117 {offsets = [0, 0], sizes = [8, 384], strides = [1, 1]} : vector<8x512xf32> to vector<8x384xf32>
    %119 = arith.negf %118 : vector<8x384xf32>
    %120 = math.exp %119 : vector<8x384xf32>
    %cst_39 = arith.constant 1.000000e+00 : f32
    %121 = vector.broadcast %cst_39 : f32 to vector<8x384xf32>
    %122 = arith.addf %121, %120 : vector<8x384xf32>
    %123 = arith.divf %121, %122 : vector<8x384xf32>
    %124 = vector.extract_strided_slice %123 {offsets = [0, 0], sizes = [8, 128], strides = [1, 1]} : vector<8x384xf32> to vector<8x128xf32>
    %125 = vector.extract_strided_slice %123 {offsets = [0, 128], sizes = [8, 128], strides = [1, 1]} : vector<8x384xf32> to vector<8x128xf32>
    %126 = vector.extract_strided_slice %123 {offsets = [0, 256], sizes = [8, 128], strides = [1, 1]} : vector<8x384xf32> to vector<8x128xf32>
    %127 = vector.extract_strided_slice %117 {offsets = [0, 384], sizes = [8, 128], strides = [1, 1]} : vector<8x512xf32> to vector<8x128xf32>
    %128 = math.tanh %127 : vector<8x128xf32>
    %129 = arith.mulf %125, %110 : vector<8x128xf32>
    %130 = arith.mulf %124, %128 : vector<8x128xf32>
    %131 = arith.addf %129, %130 : vector<8x128xf32>
    %132 = math.tanh %131 : vector<8x128xf32>
    %133 = arith.mulf %126, %132 : vector<8x128xf32>
    %c40_40 = arith.constant 40 : index
    %c0_41 = arith.constant 0 : index
    %134 = vector.load %arg7[%c40_40, %c0_41] : memref<64x1024xf32, #tpu.memory_space<vmem>>, vector<8x512xf32>
    %c16_42 = arith.constant 16 : index
    %c512_43 = arith.constant 512 : index
    %135 = vector.load %arg7[%c16_42, %c512_43] : memref<64x1024xf32, #tpu.memory_space<vmem>>, vector<8x512xf32>
    %136 = arith.addf %134, %135 : vector<8x512xf32>
    %cst_44 = arith.constant dense<0.000000e+00> : vector<8x512xf32>
    %137 = tpu.matmul %133, %28, %cst_44 {dimension_numbers = #tpu.dot_dimension_numbers<[1], [0], [0], [1], [0, 0, 1, 1], [], []>} : vector<8x128xf32>, vector<128x512xf32>, vector<8x512xf32> -> vector<8x512xf32>
    %138 = arith.addf %136, %137 : vector<8x512xf32>
    %139 = vector.extract_strided_slice %138 {offsets = [0, 0], sizes = [8, 384], strides = [1, 1]} : vector<8x512xf32> to vector<8x384xf32>
    %140 = arith.negf %139 : vector<8x384xf32>
    %141 = math.exp %140 : vector<8x384xf32>
    %cst_45 = arith.constant 1.000000e+00 : f32
    %142 = vector.broadcast %cst_45 : f32 to vector<8x384xf32>
    %143 = arith.addf %142, %141 : vector<8x384xf32>
    %144 = arith.divf %142, %143 : vector<8x384xf32>
    %145 = vector.extract_strided_slice %144 {offsets = [0, 0], sizes = [8, 128], strides = [1, 1]} : vector<8x384xf32> to vector<8x128xf32>
    %146 = vector.extract_strided_slice %144 {offsets = [0, 128], sizes = [8, 128], strides = [1, 1]} : vector<8x384xf32> to vector<8x128xf32>
    %147 = vector.extract_strided_slice %144 {offsets = [0, 256], sizes = [8, 128], strides = [1, 1]} : vector<8x384xf32> to vector<8x128xf32>
    %148 = vector.extract_strided_slice %138 {offsets = [0, 384], sizes = [8, 128], strides = [1, 1]} : vector<8x512xf32> to vector<8x128xf32>
    %149 = math.tanh %148 : vector<8x128xf32>
    %150 = arith.mulf %146, %131 : vector<8x128xf32>
    %151 = arith.mulf %145, %149 : vector<8x128xf32>
    %152 = arith.addf %150, %151 : vector<8x128xf32>
    %153 = math.tanh %152 : vector<8x128xf32>
    %154 = arith.mulf %147, %153 : vector<8x128xf32>
    %c48_46 = arith.constant 48 : index
    %c0_47 = arith.constant 0 : index
    %155 = vector.load %arg7[%c48_46, %c0_47] : memref<64x1024xf32, #tpu.memory_space<vmem>>, vector<8x512xf32>
    %c8_48 = arith.constant 8 : index
    %c512_49 = arith.constant 512 : index
    %156 = vector.load %arg7[%c8_48, %c512_49] : memref<64x1024xf32, #tpu.memory_space<vmem>>, vector<8x512xf32>
    %157 = arith.addf %155, %156 : vector<8x512xf32>
    %cst_50 = arith.constant dense<0.000000e+00> : vector<8x512xf32>
    %158 = tpu.matmul %154, %28, %cst_50 {dimension_numbers = #tpu.dot_dimension_numbers<[1], [0], [0], [1], [0, 0, 1, 1], [], []>} : vector<8x128xf32>, vector<128x512xf32>, vector<8x512xf32> -> vector<8x512xf32>
    %159 = arith.addf %157, %158 : vector<8x512xf32>
    %160 = vector.extract_strided_slice %159 {offsets = [0, 0], sizes = [8, 384], strides = [1, 1]} : vector<8x512xf32> to vector<8x384xf32>
    %161 = arith.negf %160 : vector<8x384xf32>
    %162 = math.exp %161 : vector<8x384xf32>
    %cst_51 = arith.constant 1.000000e+00 : f32
    %163 = vector.broadcast %cst_51 : f32 to vector<8x384xf32>
    %164 = arith.addf %163, %162 : vector<8x384xf32>
    %165 = arith.divf %163, %164 : vector<8x384xf32>
    %166 = vector.extract_strided_slice %165 {offsets = [0, 0], sizes = [8, 128], strides = [1, 1]} : vector<8x384xf32> to vector<8x128xf32>
    %167 = vector.extract_strided_slice %165 {offsets = [0, 128], sizes = [8, 128], strides = [1, 1]} : vector<8x384xf32> to vector<8x128xf32>
    %168 = vector.extract_strided_slice %165 {offsets = [0, 256], sizes = [8, 128], strides = [1, 1]} : vector<8x384xf32> to vector<8x128xf32>
    %169 = vector.extract_strided_slice %159 {offsets = [0, 384], sizes = [8, 128], strides = [1, 1]} : vector<8x512xf32> to vector<8x128xf32>
    %170 = math.tanh %169 : vector<8x128xf32>
    %171 = arith.mulf %167, %152 : vector<8x128xf32>
    %172 = arith.mulf %166, %170 : vector<8x128xf32>
    %173 = arith.addf %171, %172 : vector<8x128xf32>
    %174 = math.tanh %173 : vector<8x128xf32>
    %175 = arith.mulf %168, %174 : vector<8x128xf32>
    %c56_52 = arith.constant 56 : index
    %c0_53 = arith.constant 0 : index
    %176 = vector.load %arg7[%c56_52, %c0_53] : memref<64x1024xf32, #tpu.memory_space<vmem>>, vector<8x512xf32>
    %c0_54 = arith.constant 0 : index
    %c512_55 = arith.constant 512 : index
    %177 = vector.load %arg7[%c0_54, %c512_55] : memref<64x1024xf32, #tpu.memory_space<vmem>>, vector<8x512xf32>
    %178 = arith.addf %176, %177 : vector<8x512xf32>
    %cst_56 = arith.constant dense<0.000000e+00> : vector<8x512xf32>
    %179 = tpu.matmul %175, %28, %cst_56 {dimension_numbers = #tpu.dot_dimension_numbers<[1], [0], [0], [1], [0, 0, 1, 1], [], []>} : vector<8x128xf32>, vector<128x512xf32>, vector<8x512xf32> -> vector<8x512xf32>
    %180 = arith.addf %178, %179 : vector<8x512xf32>
    %181 = vector.extract_strided_slice %180 {offsets = [0, 0], sizes = [8, 384], strides = [1, 1]} : vector<8x512xf32> to vector<8x384xf32>
    %182 = arith.negf %181 : vector<8x384xf32>
    %183 = math.exp %182 : vector<8x384xf32>
    %cst_57 = arith.constant 1.000000e+00 : f32
    %184 = vector.broadcast %cst_57 : f32 to vector<8x384xf32>
    %185 = arith.addf %184, %183 : vector<8x384xf32>
    %186 = arith.divf %184, %185 : vector<8x384xf32>
    %187 = vector.extract_strided_slice %186 {offsets = [0, 0], sizes = [8, 128], strides = [1, 1]} : vector<8x384xf32> to vector<8x128xf32>
    %188 = vector.extract_strided_slice %186 {offsets = [0, 128], sizes = [8, 128], strides = [1, 1]} : vector<8x384xf32> to vector<8x128xf32>
    %189 = vector.extract_strided_slice %186 {offsets = [0, 256], sizes = [8, 128], strides = [1, 1]} : vector<8x384xf32> to vector<8x128xf32>
    %190 = vector.extract_strided_slice %180 {offsets = [0, 384], sizes = [8, 128], strides = [1, 1]} : vector<8x512xf32> to vector<8x128xf32>
    %191 = math.tanh %190 : vector<8x128xf32>
    %192 = arith.mulf %188, %173 : vector<8x128xf32>
    %193 = arith.mulf %187, %191 : vector<8x128xf32>
    %194 = arith.addf %192, %193 : vector<8x128xf32>
    %195 = math.tanh %194 : vector<8x128xf32>
    %196 = arith.mulf %189, %195 : vector<8x128xf32>
    %c0_58 = arith.constant 0 : index
    %c0_59 = arith.constant 0 : index
    %197 = vector.load %arg5[%c0_58, %c0_59] : memref<136x1xf32, #tpu.memory_space<vmem>>, vector<136x1xf32>
    %198 = vector.extract_strided_slice %197 {offsets = [0, 0], sizes = [128, 1], strides = [1, 1]} : vector<136x1xf32> to vector<128x1xf32>
    %cst_60 = arith.constant dense<0.000000e+00> : vector<8x1xf32>
    %199 = tpu.matmul %196, %198, %cst_60 {dimension_numbers = #tpu.dot_dimension_numbers<[1], [0], [0], [1], [0, 0, 1, 1], [], []>} : vector<8x128xf32>, vector<128x1xf32>, vector<8x1xf32> -> vector<8x1xf32>
    %c0_61 = arith.constant 0 : index
    %c0_62 = arith.constant 0 : index
    %200 = vector.load %arg4[%c0_61, %c0_62] : memref<8x8xf32, #tpu.memory_space<vmem>>, vector<8x8xf32>
    %201 = vector.extract_strided_slice %197 {offsets = [128, 0], sizes = [8, 1], strides = [1, 1]} : vector<136x1xf32> to vector<8x1xf32>
    %cst_63 = arith.constant dense<0.000000e+00> : vector<8x1xf32>
    %202 = tpu.matmul %200, %201, %cst_63 {dimension_numbers = #tpu.dot_dimension_numbers<[1], [0], [0], [1], [0, 0, 1, 1], [], []>} : vector<8x8xf32>, vector<8x1xf32>, vector<8x1xf32> -> vector<8x1xf32>
    %203 = arith.addf %199, %202 : vector<8x1xf32>
    %204 = arith.negf %203 : vector<8x1xf32>
    %205 = math.exp %204 : vector<8x1xf32>
    %cst_64 = arith.constant 1.000000e+00 : f32
    %206 = vector.broadcast %cst_64 : f32 to vector<8x1xf32>
    %207 = arith.addf %206, %205 : vector<8x1xf32>
    %208 = arith.divf %206, %207 : vector<8x1xf32>
    %c0_65 = arith.constant 0 : index
    %c0_66 = arith.constant 0 : index
    %209 = vector.load %arg6[%c0_65, %c0_66] : memref<8x1xf32, #tpu.memory_space<vmem>>, vector<8x1xf32>
    tpu.vector_store %arg6[%c0_65, %c0_66], %208 {strides = array<i32>} : memref<8x1xf32, #tpu.memory_space<vmem>>, vector<8x1xf32>,
    return
  }
}

</mosaic_0001>

<bundles_post_ra>
// kernel: model_forward.1
= control target key start
LH: loop header
LB: loop body
LE: loop exit
PB: predicated region body
PF: predicated region fallthrough
CT: control target
= control target key end

     0   :  { %11 = vsyncpa [#allocation4], 0  ;;  %s3762_s0 = inlined_call_operand.vmem [shape: s32[64,2], index: 0, kind: input, shape index: {}]   ;;  %s3763_s1 = inlined_call_operand.hbm [shape: f32[61,1024], index: 1, kind: input, shape index: {}]   ;;  %s3764_s2 = inlined_call_operand.hbm [shape: f32[128,512], index: 2, kind: input, shape index: {}]   ;;  %s3765_s3 = inlined_call_operand.vmem [shape: f32[2,8,128], index: 3, kind: input, shape index: {}]   ;;  %s3766_s4 = inlined_call_operand.vmem [shape: f32[8,8], index: 4, kind: input, shape index: {}]   ;;  %s3767_s5 = inlined_call_operand.vmem [shape: f32[136,1], index: 5, kind: input, shape index: {}]   ;;  %s3768_s6 = inlined_call_operand.vmem [shape: f32[8,1], index: 6, kind: output, shape index: {}]  }
   0x1   :  { %s19_s23 = sshll.u32 %s3763_s1, 4  ;;  %s20_s23 = int_to_ptr.hbm [resolvable:$true] %s19_s23 }
   0x2   :  { %12 = vsyncpa [#allocation6], 0  ;;  %s2474_s24 = smov [#allocation3]   ;;  %s32_s28 = sshll.u32 %s3764_s2, 4  ;;  %s33_s28 = int_to_ptr.hbm [resolvable:$true] %s32_s28 }
   0x3   :  { %s21_s25 = sshll.u32 %s2474_s24, 4  ;;  %s2475_s29 = smov 1024   ;;  %s22_s25 = int_to_ptr.vmem [resolvable:$true] %s21_s25 }
   0x4   :  { %s2476_s30 = smov 64   ;;  %s2477_s7 = smov [#allocation5]  }
   0x5   :  { %27 = dma.hbm_to_vmem [thread:$0]  %s20_s23, 8192, %s22_s25, [#allocation4], %s2475_s29, %s2475_s29, %s2476_s30  }
   0x6   :  { %s34_s8 = sshll.u32 %s2477_s7, 4  ;;  %s2478_s9 = smov 512   ;;  %s35_s8 = int_to_ptr.vmem [resolvable:$true] %s34_s8 }
   0x7   :  { %s2479_s10 = smov 32  }
   0x8   :  { %40 = dma.hbm_to_vmem [thread:$0]  %s33_s28, 8192, %s35_s8, [#allocation6], %s2478_s9, %s2478_s9, %s2479_s10  }
   0x9   :  { %2470 = dma.done.wait [#allocation4], 8192  }
   0xa   :  { %2471 = vsyncadd [#allocation4], 4294959104 }
   0xb   :  { %2472 = dma.done.wait [#allocation6], 8192  }
   0xc   :  { %2473 = vsyncadd [#allocation6], 4294959104  ;;  %v2480_v0 = vmov 0   ;;  %v62_v1 = vld [vmem:[%s3762_s0 + $0x38] sm:$0xff]  ;;  %v61_v2 = vld [vmem:[%s3762_s0 + $0x30] sm:$0xff]  ;;  %v2481_v4 = vmov 1   ;;  %v63_v24 = vlaneseq }
   0xd   :  { %2215 = vset.pattern.permute.xlu1 %v2480_v0  ;;  %2213 = vset.pattern.permute.xlu0 %v2480_v0  ;;  %v55_v3 = vld [vmem:[%s3762_s0] sm:$0xff]  ;;  %v56_v5 = vld [vmem:[%s3762_s0 + $0x8] sm:$0xff]  ;;  %v57_v6 = vld [vmem:[%s3762_s0 + $0x10] sm:$0xff]  ;;  %vm252_vm0 = vcmask 1044480   ;;  %v2482_v39 = vmov 0.0   ;;  %vm227_vm4 = vcmask 498688  }
   0xe   :  { %2217 = vset.pattern.permute.xlu2 %v2480_v0  ;;  %87 = vperm.xlu1 %2215, %v62_v1   ;;  %v59_v7 = vld [vmem:[%s3762_s0 + $0x20] sm:$0xff]  ;;  %v58_v8 = vld [vmem:[%s3762_s0 + $0x18] sm:$0xff]  ;;  %v60_v9 = vld [vmem:[%s3762_s0 + $0x28] sm:$0xff]  ;;  %v2552_v31 = vand.u32 127, %v63_v24 }
   0xf   :  { %84 = vperm.xlu0 %2213, %v61_v2   ;;  %66 = vperm.xlu2 %2217, %v55_v3   ;;  %v220_v10 = vld [vmem:[#allocation3 + $0x1c8] sm:$0x1f]  ;;  %v219_v11 = vld [vmem:[#allocation3 + $0x1c0] sm:$0x1f]  ;;  %v222_v13 = vld [vmem:[#allocation3 + $0x1d8] sm:$0x1f] }
  0x10   :  { %2196 = vmatpush.msk.msra.mxu2 %vm252_vm0, %v220_v10  ;;  %2106 = vmatpush.msk.msra.mxu1 %vm252_vm0, %v220_v10  ;;  %v212_v12 = vld [vmem:[#allocation3 + $0x188] sm:$0xff]  ;;  %v211_v14 = vld [vmem:[#allocation3 + $0x180] sm:$0xff]  ;;  %v214_v16 = vld [vmem:[#allocation3 + $0x198] sm:$0xff]  ;;  %vm153_vm2 = vcmp.eq.s32.totalorder %v2552_v31, 60 }
  0x11   :  { %2097 = vmatpush.msk.msra.mxu0 %vm252_vm0, %v219_v11  ;;  %v204_v15 = vld [vmem:[#allocation3 + $0x148] sm:$0xff]  ;;  %2124 = vmatpush.msk.msra.mxu3 %vm252_vm0, %v222_v13  ;;  %v203_v17 = vld [vmem:[#allocation3 + $0x140] sm:$0xff]  ;;  %v206_v19 = vld [vmem:[#allocation3 + $0x158] sm:$0xff]  ;;  %v2561_v46 = vsel %vm153_vm2, 1.0, %v2482_v39 }
  0x12   :  { %2197 = vmatpush.msra.mxu2 %v212_v12  ;;  %327 = vmatpush.msra.mxu1 %v212_v12  ;;  %v196_v18 = vld [vmem:[#allocation3 + $0x108] sm:$0xff]  ;;  %v195_v20 = vld [vmem:[#allocation3 + $0x100] sm:$0xff]  ;;  %v198_v22 = vld [vmem:[#allocation3 + $0x118] sm:$0xff] }
  0x13   :  { %286 = vmatpush.msra.mxu0 %v211_v14  ;;  %409 = vmatpush.msra.mxu3 %v214_v16  ;;  %v188_v21 = vld [vmem:[#allocation3 + $0xc8] sm:$0xff]  ;;  %v187_v25 = vld [vmem:[#allocation3 + $0xc0] sm:$0xff]  ;;  %v190_v27 = vld [vmem:[#allocation3 + $0xd8] sm:$0xff] }
  0x14   :  { %2198 = vmatpush.msra.mxu2 %v204_v15  ;;  %328 = vmatpush.msra.mxu1 %v204_v15  ;;  %v180_v26 = vld [vmem:[#allocation3 + $0x88] sm:$0xff]  ;;  %v179_v28 = vld [vmem:[#allocation3 + $0x80] sm:$0xff]  ;;  %v182_v30 = vld [vmem:[#allocation3 + $0x98] sm:$0xff] }
  0x15   :  { %287 = vmatpush.msra.mxu0 %v203_v17  ;;  %410 = vmatpush.msra.mxu3 %v206_v19  ;;  %v172_v29 = vld [vmem:[#allocation3 + $0x48] sm:$0xff]  ;;  %v171_v32 = vld [vmem:[#allocation3 + $0x40] sm:$0xff]  ;;  %v174_v34 = vld [vmem:[#allocation3 + $0x58] sm:$0xff] }
  0x16   :  { %2216 = vset.pattern.permute.xlu1 %v2481_v4  ;;  %2199 = vmatpush.msra.mxu2 %v196_v18  ;;  %v164_v33 = vld [vmem:[#allocation3 + $0x8] sm:$0xff]  ;;  %v221_v35 = vld [vmem:[#allocation3 + $0x1d0] sm:$0x1f]  ;;  %v163_v36 = vld [vmem:[#allocation3] sm:$0xff] }
  0x17   :  { %2214 = vset.pattern.permute.xlu0 %v2481_v4  ;;  %127 = vperm.xlu1 %2216, %v62_v1   ;;  %v166_v37 = vld [vmem:[#allocation3 + $0x18] sm:$0xff]  ;;  %v213_v38 = vld [vmem:[#allocation3 + $0x190] sm:$0xff]  ;;  %v223_v50 = vld [vmem:[#allocation3 + $0x1e0] sm:$0x1f] }
  0x18   :  { %124 = vperm.xlu0 %2214, %v61_v2   ;;  %2218 = vset.pattern.permute.xlu2 %v2481_v4  ;;  %v205_v42 = vld [vmem:[#allocation3 + $0x150] sm:$0xff]  ;;  %v215_v56 = vld [vmem:[#allocation3 + $0x1a0] sm:$0xff]  ;;  %v226_v62 = vld [vmem:[#allocation3 + $0x1f8] sm:$0x1f] }
  0x19   :  { %106 = vperm.xlu2 %2218, %v55_v3   ;;  %329 = vmatpush.msra.mxu1 %v196_v18  ;;  %v197_v45 = vld [vmem:[#allocation3 + $0x110] sm:$0xff]  ;;  %v207_v63 = vld [vmem:[#allocation3 + $0x160] sm:$0xff]  ;;  %v224_v1 = vld [vmem:[#allocation3 + $0x1e8] sm:$0x1f] }
  0x1a   :  { %288 = vmatpush.msra.mxu0 %v195_v20  ;;  %2200 = vmatpush.msra.mxu2 %v188_v21  ;;  %v189_v48 = vld [vmem:[#allocation3 + $0xd0] sm:$0xff]  ;;  %v218_v13 = vld [vmem:[#allocation3 + $0x1b8] sm:$0xff]  ;;  %v199_v14 = vld [vmem:[#allocation3 + $0x120] sm:$0xff] }
  0x1b   :  { %411 = vmatpush.msra.mxu3 %v198_v22  ;;  %330 = vmatpush.msra.mxu1 %v188_v21  ;;  %v181_v49 = vld [vmem:[#allocation3 + $0x90] sm:$0xff]  ;;  %v208_v15 = vld [vmem:[#allocation3 + $0x168] sm:$0xff] }
  0x1c   :  { %289 = vmatpush.msra.mxu0 %v187_v25  ;;  %2201 = vmatpush.msra.mxu2 %v180_v26  ;;  %v173_v51 = vld [vmem:[#allocation3 + $0x50] sm:$0xff]  ;;  %v200_v24 = vld [vmem:[#allocation3 + $0x128] sm:$0xff] }
  0x1d   :  { %412 = vmatpush.msra.mxu3 %v190_v27  ;;  %331 = vmatpush.msra.mxu1 %v180_v26  ;;  %v165_v53 = vld [vmem:[#allocation3 + $0x10] sm:$0xff]  ;;  %v210_v27 = vld [vmem:[#allocation3 + $0x178] sm:$0xff] }
  0x1e   :  { %290 = vmatpush.msra.mxu0 %v179_v28  ;;  %2202 = vmatpush.msra.mxu2 %v172_v29  ;;  %v209_v12 = vld [vmem:[#allocation3 + $0x170] sm:$0xff]  ;;  %v191_v28 = vld [vmem:[#allocation3 + $0xe0] sm:$0xff] }
  0x1f   :  { %2219 = vset.pattern.permute.xlu1 %v2480_v0  ;;  %413 = vmatpush.msra.mxu3 %v182_v30  ;;  %v184_v30 = vld [vmem:[#allocation3 + $0xa8] sm:$0xff] }
  0x20   :  { %2220 = vset.pattern.permute.xlu0 %v2480_v0  ;;  %69 = vperm.xlu1 %2219, %v56_v5  }
  0x21   :  { %72 = vperm.xlu0 %2220, %v57_v6   ;;  %109 = vperm.xlu2 %2218, %v56_v5  }
  0x22   :  { %332 = vmatpush.msra.mxu1 %v172_v29  ;;  %291 = vmatpush.msra.mxu0 %v171_v32  ;;  %v192_v29 = vld [vmem:[#allocation3 + $0xe8] sm:$0xff] }
  0x23   :  { %2203 = vmatpush.msra.mxu2 %v164_v33  ;;  %414 = vmatpush.msra.mxu3 %v174_v34  ;;  %v176_v34 = vld [vmem:[#allocation3 + $0x68] sm:$0xff] }
  0x24   :  { %333 = vmatpush.msra.mxu1 %v164_v33  ;;  %292 = vmatpush.msra.mxu0 %v163_v36  ;;  %v193_v36 = vld [vmem:[#allocation3 + $0xf0] sm:$0xff] }
  0x25   :  { %2115 = vmatpush.msk.msrb.mxu2 %vm252_vm0, %v221_v35  ;;  %415 = vmatpush.msra.mxu3 %v166_v37  ;;  %v168_v37 = vld [vmem:[#allocation3 + $0x28] sm:$0xff] }
  0x26   :  { %2133 = vmatpush.msk.msrb.mxu0 %vm252_vm0, %v223_v50  ;;  %2142 = vmatpush.msk.msrb.mxu1 %vm252_vm0, %v224_v1  ;;  %v2680_v1 = vld [vmem:[#allocation5 + $0x1c0] sm:$0xff] }
  0x27   :  { %368 = vmatpush.msrb.mxu2 %v213_v38  ;;  %2160 = vmatpush.msk.msrb.mxu3 %vm252_vm0, %v226_v62  ;;  %v167_v62 = vld [vmem:[#allocation3 + $0x20] sm:$0xff] }
  0x28   :  { %2221 = vset.pattern.permute.xlu1 %v2481_v4  ;;  %450 = vmatpush.msrb.mxu0 %v215_v56 }
  0x29   :  { %2223 = vset.pattern.permute.xlu0 %v2481_v4  ;;  %112 = vperm.xlu1 %2221, %v57_v6  }
  0x2a   :  { %118 = vperm.xlu0 %2223, %v59_v7   ;;  %2222 = vset.pattern.permute.xlu2 %v2480_v0 }
  0x2b   :  { %75 = vperm.xlu2 %2222, %v58_v8   ;;  %369 = vmatpush.msrb.mxu2 %v205_v42  ;;  %v202_v42 = vld [vmem:[#allocation3 + $0x138] sm:$0xff] }
  0x2c   :  { %451 = vmatpush.msrb.mxu0 %v207_v63  ;;  %573 = vmatpush.msrb.mxu3 %v218_v13  ;;  %v2729_v13 = vld [vmem:[#allocation5 + $0x168] sm:$0xff] }
  0x2d   :  { %370 = vmatpush.msrb.mxu2 %v197_v45  ;;  %3868 = vst [vmem:[#allocation12_spill] sm:$0xff] %v2729_v13 }
  0x2e   :  { %452 = vmatpush.msrb.mxu0 %v199_v14  ;;  %574 = vmatpush.msrb.mxu3 %v210_v27  ;;  %v2733_v14 = vld [vmem:[#allocation5 + $0x190] sm:$0xff]  ;;  %v2773_v27 = vld [vmem:[#allocation5 + $0xc8] sm:$0xff] }
  0x2f   :  { %371 = vmatpush.msrb.mxu2 %v189_v48 }
  0x30   :  { %453 = vmatpush.msrb.mxu0 %v191_v28  ;;  %575 = vmatpush.msrb.mxu3 %v202_v42  ;;  %v2775_v28 = vld [vmem:[#allocation5 + $0x198] sm:$0xff]  ;;  %v2817_v42 = vld [vmem:[#allocation5 + $0xc0] sm:$0xff] }
  0x31   :  { %115 = vperm.xlu1 %2221, %v58_v8   ;;  %372 = vmatpush.msrb.mxu2 %v181_v49  ;;  %v216_v8 = vld [vmem:[#allocation3 + $0x1a8] sm:$0xff] }
  0x32   :  { %491 = vmatpush.msrb.mxu1 %v216_v8  ;;  %v2707_v8 = vld [vmem:[#allocation5 + $0x180] sm:$0xff] }
  0x33   :  { %78 = vperm.xlu2 %2222, %v59_v7   ;;  %373 = vmatpush.msrb.mxu2 %v173_v51  ;;  %v217_v7 = vld [vmem:[#allocation3 + $0x1b0] sm:$0xff]  ;;  %3866 = vst [vmem:[#allocation10_spill] sm:$0xff] %v2707_v8 }
  0x34   :  { %492 = vmatpush.msrb.mxu1 %v208_v15  ;;  %v185_v51 = vld [vmem:[#allocation3 + $0xb0] sm:$0xff]  ;;  %v2735_v15 = vld [vmem:[#allocation5 + $0x148] sm:$0xff] }
  0x35   :  { %374 = vmatpush.msrb.mxu2 %v165_v53  ;;  %v194_v53 = vld [vmem:[#allocation3 + $0xf8] sm:$0xff]  ;;  %3869 = vst [vmem:[#allocation13_spill] sm:$0xff] %v2735_v15 }
  0x36   :  { %493 = vmatpush.msrb.mxu1 %v200_v24  ;;  %576 = vmatpush.msrb.mxu3 %v194_v53  ;;  %v2765_v24 = vld [vmem:[#allocation5 + $0x120] sm:$0xff] }
  0x37   :  { %3872 = vst [vmem:[#allocation16_spill] sm:$0xff] %v2765_v24  ;;  %v2852_v53 = vld [vmem:[#allocation5 + $0x80] sm:$0xff] }
  0x38   :  { %494 = vmatpush.msrb.mxu1 %v192_v29  ;;  %v2779_v29 = vld [vmem:[#allocation5 + $0x100] sm:$0xff]  ;;  %3882 = vst [vmem:[#allocation26_spill] sm:$0xff] %v2852_v53 }
  0x39   :  { %2224 = vset.pattern.permute.xlu1 %v2480_v0  ;;  %3874 = vst [vmem:[#allocation18_spill] sm:$0xff] %v2779_v29 }
  0x3a   :  { %81 = vperm.xlu1 %2224, %v60_v9   ;;  %495 = vmatpush.msrb.mxu1 %v184_v30  ;;  %v2783_v30 = vld [vmem:[#allocation5 + $0xa8] sm:$0xff] }
  0x3b   :  { %2225 = vset.pattern.permute.xlu2 %v2481_v4  ;;  %v225_v4 = vld [vmem:[#allocation3 + $0x1f0] sm:$0x1f]  ;;  %3875 = vst [vmem:[#allocation19_spill] sm:$0xff] %v2783_v30 }
  0x3c   :  { %121 = vperm.xlu2 %2225, %v60_v9   ;;  %496 = vmatpush.msrb.mxu1 %v176_v34  ;;  %v2801_v34 = vld [vmem:[#allocation5 + $0x178] sm:$0xff] }
  0x3e   :  { %497 = vmatpush.msrb.mxu1 %v168_v37  ;;  %v2805_v37 = vld [vmem:[#allocation5 + $0x68] sm:$0xff] }
  0x3f   :  { %3877 = vst [vmem:[#allocation21_spill] sm:$0xff] %v2805_v37 }
  0x69   :  { %v67_v23 = vpop.permute.xlu2 %66 }
  0x6a   :  { %vm89_vm1 = vcmp.eq.s32.totalorder %v67_v23, %v2552_v31  ;;  %v201_v23 = vld [vmem:[#allocation3 + $0x130] sm:$0xff] }
  0x6b   :  { %v97_v40 = vsel %vm89_vm1, 1.0, %v2482_v39 }
  0x73   :  { %v107_v41 = vpop.permute.xlu2 %106 }
  0x74   :  { %vm129_vm3 = vcmp.eq.s32.totalorder %v107_v41, %v2552_v31 }
  0x75   :  { %v137_v43 = vsel %vm129_vm3, 1.0, %v2482_v39 }
  0x76   :  { %v145_v44 = vadd.f32 %v137_v43, %v97_v40  ;;  %v183_v43 = vld [vmem:[#allocation3 + $0xa0] sm:$0xff] }
  0x77   :  { %454 = vmatpush.msrb.mxu0 %v183_v43  ;;  %v2819_v43 = vld [vmem:[#allocation5 + $0x138] sm:$0xff] }
  0x78   :  { %v2564_v47 = vadd.f32 %v2561_v46, %v145_v44 }
  0x7a   :  { %2098 = vmatmul.msk.f32.vlgmr.msra.gmra.mxu0 %vm227_vm4, %v2564_v47  ;;  %2107 = vmatmul.msk.f32.vlgmr.msra.gmra.mxu1 %vm227_vm4, %v2564_v47 }
  0x7b   :  { %2125 = vmatmul.msk.f32.vlgmr.msra.gmra.mxu3 %vm227_vm4, %v2564_v47  ;;  %v110_v52 = vpop.permute.xlu2 %109 }
  0x7c   :  { %vm130_vm9 = vcmp.eq.s32.totalorder %v110_v52, %v2552_v31 }
  0x7d   :  { %v138_v11 = vsel %vm130_vm9, 1.0, %v2482_v39 }
  0x80   :  { %v88_v55 = vpop.permute.xlu1 %87 }
  0x81   :  { %v85_v54 = vpop.permute.xlu0 %84  ;;  %vm96_vm7 = vcmp.eq.s32.totalorder %v88_v55, %v2552_v31  ;;  %v186_v55 = vld [vmem:[#allocation3 + $0xb8] sm:$0xff] }
  0x82   :  { %vm95_vm5 = vcmp.eq.s32.totalorder %v85_v54, %v2552_v31  ;;  %v104_v5 = vsel %vm96_vm7, 1.0, %v2482_v39  ;;  %v175_v54 = vld [vmem:[#allocation3 + $0x60] sm:$0xff]  ;;  %577 = vmatpush.msrb.mxu3 %v186_v55  ;;  %v2864_v55 = vld [vmem:[#allocation5 + $0xb0] sm:$0xff] }
  0x83   :  { %v103_v60 = vsel %vm95_vm5, 1.0, %v2482_v39  ;;  %455 = vmatpush.msrb.mxu0 %v175_v54  ;;  %v2855_v54 = vld [vmem:[#allocation5 + $0xd8] sm:$0xff]  ;;  %3884 = vst [vmem:[#allocation28_spill] sm:$0xff] %v2864_v55 }
  0x84   :  { %3883 = vst [vmem:[#allocation27_spill] sm:$0xff] %v2855_v54 }
  0x85   :  { %v2573_v57 = vpop.permute.xlu2 %75  ;;  %456 = vmatpush.msrb.mxu0 %v167_v62  ;;  %v2893_v62 = vld [vmem:[#allocation5 + $0x20] sm:$0xff] }
  0x86   :  { %vm92_vm14 = vcmp.eq.s32.totalorder %v2573_v57, %v2552_v31  ;;  %v178_v57 = vld [vmem:[#allocation3 + $0x78] sm:$0xff]  ;;  %3891 = vst [vmem:[#allocation35_spill] sm:$0xff] %v2893_v62 }
  0x87   :  { %v100_v41 = vsel %vm92_vm14, 1.0, %v2482_v39  ;;  %578 = vmatpush.msrb.mxu3 %v178_v57  ;;  %v2878_v57 = vld [vmem:[#allocation5 + $0x60] sm:$0xff] }
  0x88   :  { %3887 = vst [vmem:[#allocation31_spill] sm:$0xff] %v2878_v57 }
  0x89   :  { %v128_v58 = vpop.permute.xlu1 %127 }
  0x8a   :  { %v125_v59 = vpop.permute.xlu0 %124  ;;  %vm136_vm8 = vcmp.eq.s32.totalorder %v128_v58, %v2552_v31 }
  0x8b   :  { %vm135_vm6 = vcmp.eq.s32.totalorder %v125_v59, %v2552_v31  ;;  %v144_v6 = vsel %vm136_vm8, 1.0, %v2482_v39 }
  0x8c   :  { %v143_v61 = vsel %vm135_vm6, 1.0, %v2482_v39  ;;  %v152_v9 = vadd.f32 %v144_v6, %v104_v5  ;;  %v2699_v5 = vld [vmem:[#allocation5 + $0x1a0] sm:$0xff]  ;;  %v2701_v6 = vld [vmem:[#allocation5 + $0x1a8] sm:$0xff] }
  0x8d   :  { %v151_v0 = vadd.f32 %v143_v61, %v103_v60  ;;  %v2583_v2 = vpop.permute.xlu2 %78  ;;  %v177_v61 = vld [vmem:[#allocation3 + $0x70] sm:$0xff]  ;;  %3865 = vst [vmem:[#allocation9_spill] sm:$0xff] %v2701_v6 }
  0x8e   :  { %v2598_v19 = vadd.f32 %v2561_v46, %v152_v9  ;;  %vm93_vm1 = vcmp.eq.s32.totalorder %v2583_v2, %v2552_v31  ;;  %v2684_v2 = vld [vmem:[#allocation5 + $0x1c8] sm:$0xff] }
  0x8f   :  { %v2586_v3 = vadd.f32 %v2561_v46, %v151_v0  ;;  %v101_v49 = vsel %vm93_vm1, 1.0, %v2482_v39  ;;  %v2678_v0 = vld [vmem:[#allocation5 + $0x1e8] sm:$0xff] }
  0x90   :  { %768 = vmatpush.msra.mxu1 %v2678_v0  ;;  %v2709_v9 = vld [vmem:[#allocation5 + $0x188] sm:$0xff] }
  0x91   :  { %2113 = vmatmul.msk.f32.vlgmr.msra.gmra.mxu2 %vm227_vm4, %v2586_v3  ;;  %3867 = vst [vmem:[#allocation11_spill] sm:$0xff] %v2709_v9 }
  0x92   :  { %2151 = vmatpush.msk.msra.mxu2 %vm252_vm0, %v225_v4  ;;  %v70_v10 = vpop.permute.xlu1 %69  ;;  %769 = vmatpush.msra.mxu1 %v2684_v2  ;;  %v2690_v4 = vld [vmem:[#allocation5 + $0x1f0] sm:$0xff] }
  0x93   :  { %vm90_vm10 = vcmp.eq.s32.totalorder %v70_v10, %v2552_v31  ;;  %v73_v18 = vpop.permute.xlu0 %72  ;;  %v2716_v10 = vld [vmem:[#allocation5 + $0x1b0] sm:$0xff] }
  0x94   :  { %532 = vmatpush.msra.mxu2 %v217_v7  ;;  %v98_v16 = vsel %vm90_vm10, 1.0, %v2482_v39  ;;  %vm91_vm12 = vcmp.eq.s32.totalorder %v73_v18, %v2552_v31  ;;  %v2703_v7 = vld [vmem:[#allocation5 + $0x1d0] sm:$0xff]  ;;  %770 = vmatpush.msra.mxu1 %v2701_v6  ;;  %v2745_v18 = vld [vmem:[#allocation5 + $0x128] sm:$0xff] }
  0x95   :  { %v146_v17 = vadd.f32 %v138_v11, %v98_v16  ;;  %v99_v25 = vsel %vm91_vm12, 1.0, %v2482_v39  ;;  %v2725_v11 = vld [vmem:[#allocation5 + $0x1f8] sm:$0xff] }
  0x96   :  { %533 = vmatpush.msra.mxu2 %v209_v12  ;;  %v122_v20 = vpop.permute.xlu2 %121  ;;  %771 = vmatpush.msra.mxu1 %v2709_v9  ;;  %v2727_v12 = vld [vmem:[#allocation5 + $0x160] sm:$0xff]  ;;  %v2737_v16 = vld [vmem:[#allocation5 + $0x1d8] sm:$0xff] }
  0x97   :  { %v2601_v21 = vadd.f32 %v2561_v46, %v146_v17  ;;  %vm134_vm11 = vcmp.eq.s32.totalorder %v122_v20, %v2552_v31  ;;  %v2741_v17 = vld [vmem:[#allocation5 + $0x140] sm:$0xff]  ;;  %v2750_v20 = vld [vmem:[#allocation5 + $0x170] sm:$0xff] }
  0x98   :  { %v2608_v22 = vsel %vm134_vm11, 1.0, %v2482_v39  ;;  %534 = vmatpush.msra.mxu2 %v201_v23  ;;  %772 = vmatpush.msra.mxu1 %v2729_v13  ;;  %v2763_v23 = vld [vmem:[#allocation5 + $0x1b8] sm:$0xff] }
  0x99   :  { %2114 = vmatmul.msk.f32.gmra.mxu2 %vm227_vm4, %v2598_v19  ;;  %2099 = vmatmul.msk.f32.gmra.mxu0 %vm227_vm4, %v2601_v21  ;;  %3871 = vst [vmem:[#allocation15_spill] sm:$0xff] %v2763_v23 }
  0x9a   :  { %2108 = vmatmul.msk.f32.gmra.mxu1 %vm227_vm4, %v2601_v21  ;;  %2126 = vmatmul.msk.f32.gmra.mxu3 %vm227_vm4, %v2601_v21 }
  0x9b   :  { %v113_v26 = vpop.permute.xlu1 %112  ;;  %535 = vmatpush.msra.mxu2 %v193_v36  ;;  %773 = vmatpush.msra.mxu1 %v2735_v15  ;;  %v2803_v36 = vld [vmem:[#allocation5 + $0xe0] sm:$0xff] }
  0x9c   :  { %vm131_vm13 = vcmp.eq.s32.totalorder %v113_v26, %v2552_v31  ;;  %v119_v38 = vpop.permute.xlu0 %118  ;;  %v2771_v26 = vld [vmem:[#allocation5 + $0x150] sm:$0xff] }
  0x9d   :  { %v139_v32 = vsel %vm131_vm13, 1.0, %v2482_v39  ;;  %vm133_vm0 = vcmp.eq.s32.totalorder %v119_v38, %v2552_v31  ;;  %536 = vmatpush.msra.mxu2 %v185_v51  ;;  %774 = vmatpush.msra.mxu1 %v2745_v18  ;;  %v2809_v38 = vld [vmem:[#allocation5 + $0x110] sm:$0xff]  ;;  %v2846_v51 = vld [vmem:[#allocation5 + $0xf8] sm:$0xff] }
  0x9e   :  { %v147_v33 = vadd.f32 %v139_v32, %v99_v25  ;;  %v141_v48 = vsel %vm133_vm0, 1.0, %v2482_v39  ;;  %v2767_v25 = vld [vmem:[#allocation5 + $0xe8] sm:$0xff]  ;;  %v2788_v32 = vld [vmem:[#allocation5 + $0x130] sm:$0xff] }
  0x9f   :  { %v149_v52 = vadd.f32 %v141_v48, %v101_v49  ;;  %537 = vmatpush.msra.mxu2 %v177_v61  ;;  %3873 = vst [vmem:[#allocation17_spill] sm:$0xff] %v2767_v25  ;;  %v2831_v48 = vld [vmem:[#allocation5 + $0x8] sm:$0xff]  ;;  %v2835_v49 = vld [vmem:[#allocation5 + $0x118] sm:$0xff] }
  0xa0   :  { %v2620_v35 = vadd.f32 %v2561_v46, %v147_v33  ;;  %v2790_v33 = vld [vmem:[#allocation5 + $0x88] sm:$0xff]  ;;  %3880 = vst [vmem:[#allocation24_spill] sm:$0xff] %v2831_v48  ;;  %v2887_v61 = vld [vmem:[#allocation5 + $0x78] sm:$0xff] }
  0xa1   :  { %2116 = vmatmul.msk.f32.vlgmr.msrb.gmra.mxu2 %vm227_vm4, %v2564_v47  ;;  %v2653_v58 = vadd.f32 %v2561_v46, %v149_v52  ;;  %3876 = vst [vmem:[#allocation20_spill] sm:$0xff] %v2790_v33  ;;  %v2848_v52 = vld [vmem:[#allocation5 + $0xd0] sm:$0xff] }
  0xa2   :  { %2100 = vmatmul.msk.f32.gmra.mxu0 %vm227_vm4, %v2620_v35  ;;  %2109 = vmatmul.msk.f32.gmra.mxu1 %vm227_vm4, %v2620_v35  ;;  %3890 = vst [vmem:[#allocation34_spill] sm:$0xff] %v2887_v61 }
  0xa3   :  { %2127 = vmatmul.msk.f32.gmra.mxu3 %vm227_vm4, %v2620_v35  ;;  %v116_v40 = vpop.permute.xlu1 %115 }
  0xa4   :  { %vm132_vm15 = vcmp.eq.s32.totalorder %v116_v40, %v2552_v31  ;;  %v2811_v40 = vld [vmem:[#allocation5 + $0x48] sm:$0xff] }
  0xa5   :  { %v140_v44 = vsel %vm132_vm15, 1.0, %v2482_v39  ;;  %3878 = vst [vmem:[#allocation22_spill] sm:$0xff] %v2811_v40 }
  0xa6   :  { %v148_v45 = vadd.f32 %v140_v44, %v100_v41  ;;  %v2813_v41 = vld [vmem:[#allocation5 + $0x158] sm:$0xff]  ;;  %v2823_v44 = vld [vmem:[#allocation5 + $0x28] sm:$0xff] }
  0xa7   :  { %3879 = vst [vmem:[#allocation23_spill] sm:$0xff] %v2823_v44 }
  0xa8   :  { %v2641_v50 = vadd.f32 %v2561_v46, %v148_v45  ;;  %v2829_v45 = vld [vmem:[#allocation5 + $0xf0] sm:$0xff] }
  0xa9   :  { %2117 = vmatmul.msk.f32.gmra.mxu2 %vm227_vm4, %v2601_v21 }
  0xaa   :  { %2101 = vmatmul.msk.f32.gmra.mxu0 %vm227_vm4, %v2641_v50  ;;  %2110 = vmatmul.msk.f32.gmra.mxu1 %vm227_vm4, %v2641_v50 }
  0xab   :  { %2128 = vmatmul.msk.f32.gmra.mxu3 %vm227_vm4, %v2641_v50 }
  0xac   :  { %v82_v56 = vpop.permute.xlu1 %81 }
  0xad   :  { %vm94_vm2 = vcmp.eq.s32.totalorder %v82_v56, %v2552_v31  ;;  %v170_v31 = vld [vmem:[#allocation3 + $0x38] sm:$0xff] }
  0xae   :  { %v102_v59 = vsel %vm94_vm2, 1.0, %v2482_v39  ;;  %579 = vmatpush.msrb.mxu3 %v170_v31  ;;  %v169_v39 = vld [vmem:[#allocation3 + $0x30] sm:$0xff]  ;;  %v2866_v56 = vld [vmem:[#allocation5 + $0xb8] sm:$0xff] }
  0xaf   :  { %v150_v60 = vadd.f32 %v2608_v22, %v102_v59  ;;  %538 = vmatpush.msra.mxu2 %v169_v39  ;;  %v2752_v22 = vld [vmem:[#allocation5 + $0x108] sm:$0xff]  ;;  %3885 = vst [vmem:[#allocation29_spill] sm:$0xff] %v2866_v56  ;;  %v2880_v59 = vld [vmem:[#allocation5 + $0x90] sm:$0xff]  ;;  %v2901_v39 = vld [vmem:[#allocation5] sm:$0xff] }
  0xb0   :  { %808 = vmatpush.msra.mxu3 %v2725_v11  ;;  %3870 = vst [vmem:[#allocation14_spill] sm:$0xff] %v2752_v22  ;;  %775 = vmatpush.msra.mxu1 %v2752_v22  ;;  %v2899_v31 = vld [vmem:[#allocation5 + $0x70] sm:$0xff] }
  0xb1   :  { %2118 = vmatmul.msk.f32.gmra.mxu2 %vm227_vm4, %v2620_v35  ;;  %v2660_v63 = vadd.f32 %v2561_v46, %v150_v60  ;;  %v2676_v46 = vld [vmem:[#allocation5 + $0x1e0] sm:$0xff]  ;;  %3888 = vst [vmem:[#allocation32_spill] sm:$0xff] %v2880_v59 }
  0xb2   :  { %2102 = vmatmul.msk.f32.gmra.mxu0 %vm227_vm4, %v2653_v58  ;;  %2111 = vmatmul.msk.f32.gmra.mxu1 %vm227_vm4, %v2653_v58  ;;  %v2885_v60 = vld [vmem:[#allocation5 + $0x40] sm:$0xff]  ;;  %3892 = vst [vmem:[#allocation36_spill] sm:$0xff] %v2899_v31 }
  0xb3   :  { %2129 = vmatmul.msk.f32.gmra.mxu3 %vm227_vm4, %v2653_v58  ;;  %748 = vmatpush.msra.mxu0 %v2676_v46  ;;  %3889 = vst [vmem:[#allocation33_spill] sm:$0xff] %v2885_v60 }
  0xb4   :  { %788 = vmatpush.msrb.mxu2 %v2690_v4  ;;  %809 = vmatpush.msra.mxu3 %v2737_v16  ;;  %3893 = vst [vmem:[#allocation37_spill] sm:$0xff] %v2901_v39 }
  0xb5   :  { %749 = vmatpush.msra.mxu0 %v2680_v1  ;;  %776 = vmatpush.msra.mxu1 %v2767_v25 }
  0xb6   :  { %789 = vmatpush.msrb.mxu2 %v2703_v7  ;;  %810 = vmatpush.msra.mxu3 %v2763_v23 }
  0xb7   :  { %750 = vmatpush.msra.mxu0 %v2699_v5  ;;  %777 = vmatpush.msra.mxu1 %v2773_v27 }
  0xb8   :  { %790 = vmatpush.msrb.mxu2 %v2716_v10  ;;  %811 = vmatpush.msra.mxu3 %v2775_v28 }
  0xb9   :  { %2119 = vmatmul.msk.f32.gmra.mxu2 %vm227_vm4, %v2641_v50  ;;  %751 = vmatpush.msra.mxu0 %v2707_v8 }
  0xba   :  { %2103 = vmatmul.msk.f32.gmra.mxu0 %vm227_vm4, %v2660_v63  ;;  %2112 = vmatmul.msk.f32.gmra.mxu1 %vm227_vm4, %v2660_v63 }
  0xbb   :  { %2130 = vmatmul.msk.f32.gmra.mxu3 %vm227_vm4, %v2660_v63  ;;  %752 = vmatpush.msra.mxu0 %v2727_v12 }
  0xbc   :  { %791 = vmatpush.msrb.mxu2 %v2733_v14  ;;  %778 = vmatpush.msra.mxu1 %v2783_v30 }
  0xbd   :  { %753 = vmatpush.msra.mxu0 %v2741_v17  ;;  %812 = vmatpush.msra.mxu3 %v2801_v34 }
  0xbe   :  { %792 = vmatpush.msrb.mxu2 %v2750_v20  ;;  %779 = vmatpush.msra.mxu1 %v2790_v33 }
  0xbf   :  { %754 = vmatpush.msra.mxu0 %v2765_v24  ;;  %813 = vmatpush.msra.mxu3 %v2813_v41 }
  0xc0   :  { %793 = vmatpush.msrb.mxu2 %v2771_v26  ;;  %780 = vmatpush.msra.mxu1 %v2805_v37 }
  0xc1   :  { %2120 = vmatmul.msk.f32.gmra.mxu2 %vm227_vm4, %v2653_v58  ;;  %755 = vmatpush.msra.mxu0 %v2779_v29 }
  0xc2   :  { %2104 = vmatmul.msk.f32.gmra.mxu0 %vm227_vm4, %v2586_v3  ;;  %2143 = vmatmul.msk.f32.vlgmr.msrb.gmra.mxu1 %vm227_vm4, %v2564_v47 }
  0xc3   :  { %2131 = vmatmul.msk.f32.gmra.mxu3 %vm227_vm4, %v2586_v3  ;;  %794 = vmatpush.msrb.mxu2 %v2788_v32 }
  0xc4   :  { %756 = vmatpush.msra.mxu0 %v2803_v36  ;;  %781 = vmatpush.msra.mxu1 %v2811_v40 }
  0xc5   :  { %795 = vmatpush.msrb.mxu2 %v2809_v38  ;;  %814 = vmatpush.msra.mxu3 %v2819_v43 }
  0xc6   :  { %757 = vmatpush.msra.mxu0 %v2817_v42  ;;  %782 = vmatpush.msra.mxu1 %v2823_v44 }
  0xc7   :  { %796 = vmatpush.msrb.mxu2 %v2829_v45  ;;  %815 = vmatpush.msra.mxu3 %v2835_v49 }
  0xc8   :  { %783 = vmatpush.msra.mxu1 %v2831_v48 }
  0xc9   :  { %2121 = vmatmul.msk.f32.gmra.mxu2 %vm227_vm4, %v2660_v63  ;;  %816 = vmatpush.msra.mxu3 %v2846_v51 }
  0xca   :  { %2105 = vmatmul.msk.f32.gmra.mxu0 %vm227_vm4, %v2598_v19  ;;  %2144 = vmatmul.msk.f32.gmra.mxu1 %vm227_vm4, %v2601_v21 }
  0xcb   :  { %2132 = vmatmul.msk.f32.gmra.mxu3 %vm227_vm4, %v2598_v19  ;;  %797 = vmatpush.msrb.mxu2 %v2848_v52 }
  0xcc   :  { %927 = vmatpush.msrb.mxu1 %v2678_v0  ;;  %817 = vmatpush.msra.mxu3 %v2855_v54 }
  0xcd   :  { %798 = vmatpush.msrb.mxu2 %v2864_v55 }
  0xce   :  { %928 = vmatpush.msrb.mxu1 %v2684_v2  ;;  %818 = vmatpush.msra.mxu3 %v2866_v56 }
  0xcf   :  { %799 = vmatpush.msrb.mxu2 %v2880_v59 }
  0xd0   :  { %929 = vmatpush.msrb.mxu1 %v2701_v6  ;;  %v2930_v6 = vld [vmem:[#allocation5 + $0x30] sm:$0xff] }
  0xd1   :  { %2122 = vmatmul.msk.f32.gmra.mxu2 %vm227_vm4, %v2586_v3  ;;  %3898 = vst [vmem:[#allocation42_spill] sm:$0xff] %v2930_v6 }
  0xd2   :  { %2134 = vmatmul.msk.f32.vlgmr.msrb.gmra.mxu0 %vm227_vm4, %v2564_v47  ;;  %2145 = vmatmul.msk.f32.gmra.mxu1 %vm227_vm4, %v2620_v35 }
  0xd3   :  { %2161 = vmatmul.msk.f32.vlgmr.msrb.gmra.mxu3 %vm227_vm4, %v2564_v47  ;;  %930 = vmatpush.msrb.mxu1 %v2709_v9  ;;  %v2903_v9 = vld [vmem:[#allocation5 + $0x58] sm:$0xff] }
  0xd4   :  { %3894 = vst [vmem:[#allocation38_spill] sm:$0xff] %v2903_v9  ;;  %800 = vmatpush.msrb.mxu2 %v2899_v31 }
  0xd5   :  { %931 = vmatpush.msrb.mxu1 %v2729_v13  ;;  %v2920_v13 = vld [vmem:[#allocation5 + $0x18] sm:$0xff] }
  0xd6   :  { %3897 = vst [vmem:[#allocation41_spill] sm:$0xff] %v2920_v13 }
  0xd7   :  { %932 = vmatpush.msrb.mxu1 %v2735_v15  ;;  %v2916_v15 = vld [vmem:[#allocation5 + $0x50] sm:$0xff] }
  0xd8   :  { %3896 = vst [vmem:[#allocation40_spill] sm:$0xff] %v2916_v15  ;;  %801 = vmatpush.msrb.mxu2 %v2916_v15 }
  0xd9   :  { %2123 = vmatmul.msk.f32.gmra.mxu2 %vm227_vm4, %v2598_v19  ;;  %933 = vmatpush.msrb.mxu1 %v2745_v18 }
  0xda   :  { %2135 = vmatmul.msk.f32.gmra.mxu0 %vm227_vm4, %v2601_v21  ;;  %2146 = vmatmul.msk.f32.gmra.mxu1 %vm227_vm4, %v2641_v50 }
  0xdb   :  { %2162 = vmatmul.msk.f32.gmra.mxu3 %vm227_vm4, %v2601_v21  ;;  %934 = vmatpush.msrb.mxu1 %v2752_v22  ;;  %v2940_v22 = vld [vmem:[#allocation5 + $0x10] sm:$0xff] }
  0xdc   :  { %802 = vmatpush.msrb.mxu2 %v2930_v6  ;;  %3899 = vst [vmem:[#allocation43_spill] sm:$0xff] %v2940_v22 }
  0xdd   :  { %935 = vmatpush.msrb.mxu1 %v2767_v25 }
  0xde   :  { %803 = vmatpush.msrb.mxu2 %v2940_v22 }
  0xdf   :  { %936 = vmatpush.msrb.mxu1 %v2773_v27 }
  0xe1   :  { %2152 = vmatmul.msk.f32.vlgmr.msra.gmra.mxu2 %vm227_vm4, %v2564_v47  ;;  %v2844_v47 = vld [vmem:[#allocation5 + $0xa0] sm:$0xff]  ;;  %937 = vmatpush.msrb.mxu1 %v2783_v30 }
  0xe2   :  { %2136 = vmatmul.msk.f32.gmra.mxu0 %vm227_vm4, %v2620_v35  ;;  %2147 = vmatmul.msk.f32.gmra.mxu1 %vm227_vm4, %v2653_v58  ;;  %3881 = vst [vmem:[#allocation25_spill] sm:$0xff] %v2844_v47 }
  0xe3   :  { %2163 = vmatmul.msk.f32.gmra.mxu3 %vm227_vm4, %v2620_v35  ;;  %758 = vmatpush.msra.mxu0 %v2844_v47 }
  0xe4   :  { %947 = vmatpush.msra.mxu2 %v2690_v4  ;;  %938 = vmatpush.msrb.mxu1 %v2790_v33 }
  0xe5   :  { %759 = vmatpush.msra.mxu0 %v2852_v53 }
  0xe6   :  { %948 = vmatpush.msra.mxu2 %v2703_v7  ;;  %939 = vmatpush.msrb.mxu1 %v2805_v37 }
  0xe7   :  { %760 = vmatpush.msra.mxu0 %v2878_v57 }
  0xe8   :  { %949 = vmatpush.msra.mxu2 %v2716_v10  ;;  %940 = vmatpush.msrb.mxu1 %v2811_v40 }
  0xe9   :  { %2153 = vmatmul.msk.f32.gmra.mxu2 %vm227_vm4, %v2601_v21  ;;  %v2876_v21 = vld [vmem:[#allocation5 + $0x98] sm:$0xff]  ;;  %761 = vmatpush.msra.mxu0 %v2885_v60 }
  0xea   :  { %2137 = vmatmul.msk.f32.gmra.mxu0 %vm227_vm4, %v2641_v50  ;;  %2148 = vmatmul.msk.f32.gmra.mxu1 %vm227_vm4, %v2660_v63  ;;  %3886 = vst [vmem:[#allocation30_spill] sm:$0xff] %v2876_v21 }
  0xeb   :  { %2164 = vmatmul.msk.f32.gmra.mxu3 %vm227_vm4, %v2641_v50  ;;  %762 = vmatpush.msra.mxu0 %v2893_v62 }
  0xec   :  { %819 = vmatpush.msra.mxu3 %v2876_v21  ;;  %950 = vmatpush.msra.mxu2 %v2733_v14 }
  0xed   :  { %763 = vmatpush.msra.mxu0 %v2901_v39  ;;  %941 = vmatpush.msrb.mxu1 %v2823_v44 }
  0xee   :  { %820 = vmatpush.msra.mxu3 %v2887_v61  ;;  %951 = vmatpush.msra.mxu2 %v2750_v20 }
  0xef   :  { %907 = vmatpush.msrb.mxu0 %v2676_v46  ;;  %942 = vmatpush.msrb.mxu1 %v2831_v48 }
  0xf0   :  { %821 = vmatpush.msra.mxu3 %v2903_v9  ;;  %952 = vmatpush.msra.mxu2 %v2771_v26 }
  0xf1   :  { %2154 = vmatmul.msk.f32.gmra.mxu2 %vm227_vm4, %v2620_v35  ;;  %v2913_v35 = vld [vmem:[#allocation5 + $0x38] sm:$0xff]  ;;  %908 = vmatpush.msrb.mxu0 %v2680_v1 }
  0xf2   :  { %2138 = vmatmul.msk.f32.gmra.mxu0 %vm227_vm4, %v2653_v58  ;;  %2149 = vmatmul.msk.f32.gmra.mxu1 %vm227_vm4, %v2586_v3  ;;  %3895 = vst [vmem:[#allocation39_spill] sm:$0xff] %v2913_v35 }
  0xf3   :  { %2165 = vmatmul.msk.f32.gmra.mxu3 %vm227_vm4, %v2653_v58  ;;  %909 = vmatpush.msrb.mxu0 %v2699_v5 }
  0xf4   :  { %822 = vmatpush.msra.mxu3 %v2913_v35  ;;  %953 = vmatpush.msra.mxu2 %v2788_v32 }
  0xf5   :  { %910 = vmatpush.msrb.mxu0 %v2707_v8 }
  0xf6   :  { %823 = vmatpush.msra.mxu3 %v2920_v13  ;;  %954 = vmatpush.msra.mxu2 %v2809_v38 }
  0xf7   :  { %911 = vmatpush.msrb.mxu0 %v2727_v12  ;;  %v2988_v30 = vpop.f32.mrf.mxu1 }
  0xf8   :  { %967 = vmatpush.msrb.mxu3 %v2725_v11  ;;  %3901 = vst [vmem:[#allocation45_spill] sm:$0xff] %v2988_v30  ;;  %955 = vmatpush.msra.mxu2 %v2829_v45 }
  0xf9   :  { %2155 = vmatmul.msk.f32.gmra.mxu2 %vm227_vm4, %v2641_v50  ;;  %v2952_v50 = vld [vmem:[%s3765_s3] sm:$0xff]  ;;  %912 = vmatpush.msrb.mxu0 %v2741_v17 }
  0xfa   :  { %2139 = vmatmul.msk.f32.gmra.mxu0 %vm227_vm4, %v2660_v63  ;;  %2150 = vmatmul.msk.f32.gmra.mxu1 %vm227_vm4, %v2598_v19 }
  0xfb   :  { %2166 = vmatmul.msk.f32.gmra.mxu3 %vm227_vm4, %v2660_v63  ;;  %913 = vmatpush.msrb.mxu0 %v2765_v24 }
  0xfc   :  { %968 = vmatpush.msrb.mxu3 %v2737_v16  ;;  %956 = vmatpush.msra.mxu2 %v2848_v52 }
  0xfd   :  { %914 = vmatpush.msrb.mxu0 %v2779_v29 }
  0xfe   :  { %969 = vmatpush.msrb.mxu3 %v2763_v23  ;;  %957 = vmatpush.msra.mxu2 %v2864_v55 }
  0xff   :  { %915 = vmatpush.msrb.mxu0 %v2803_v36 }
 0x100   :  { %970 = vmatpush.msrb.mxu3 %v2775_v28  ;;  %958 = vmatpush.msra.mxu2 %v2880_v59 }
 0x101   :  { %2156 = vmatmul.msk.f32.gmra.mxu2 %vm227_vm4, %v2653_v58  ;;  %v2986_v58 = vpop.f32.mrf.mxu0  ;;  %916 = vmatpush.msrb.mxu0 %v2817_v42 }
 0x102   :  { %2140 = vmatmul.msk.f32.gmra.mxu0 %vm227_vm4, %v2586_v3  ;;  %784 = vmatmul.f32.vlgmr.msra.gmra.mxu1 %v2952_v50  ;;  %3900 = vst [vmem:[#allocation44_spill] sm:$0xff] %v2986_v58  ;;  %v3008_v58 = vpop.f32.mrf.mxu3 }
 0x103   :  { %2167 = vmatmul.msk.f32.gmra.mxu3 %vm227_vm4, %v2586_v3  ;;  %917 = vmatpush.msrb.mxu0 %v2844_v47 }
 0x104   :  { %971 = vmatpush.msrb.mxu3 %v2801_v34  ;;  %959 = vmatpush.msra.mxu2 %v2899_v31 }
 0x105   :  { %918 = vmatpush.msrb.mxu0 %v2852_v53  ;;  %1086 = vmatpush.msra.mxu1 %v2678_v0 }
 0x106   :  { %972 = vmatpush.msrb.mxu3 %v2813_v41  ;;  %960 = vmatpush.msra.mxu2 %v2916_v15 }
 0x107   :  { %919 = vmatpush.msrb.mxu0 %v2878_v57  ;;  %1087 = vmatpush.msra.mxu1 %v2684_v2 }
 0x108   :  { %973 = vmatpush.msrb.mxu3 %v2819_v43  ;;  %961 = vmatpush.msra.mxu2 %v2930_v6 }
 0x109   :  { %2157 = vmatmul.msk.f32.gmra.mxu2 %vm227_vm4, %v2660_v63  ;;  %920 = vmatpush.msrb.mxu0 %v2885_v60 }
 0x10a   :  { %2141 = vmatmul.msk.f32.gmra.mxu0 %vm227_vm4, %v2598_v19  ;;  %974 = vmatpush.msrb.mxu3 %v2835_v49 }
 0x10b   :  { %2168 = vmatmul.msk.f32.gmra.mxu3 %vm227_vm4, %v2598_v19  ;;  %921 = vmatpush.msrb.mxu0 %v2893_v62 }
 0x10c   :  { %975 = vmatpush.msrb.mxu3 %v2846_v51  ;;  %962 = vmatpush.msra.mxu2 %v2940_v22 }
 0x10d   :  { %922 = vmatpush.msrb.mxu0 %v2901_v39 }
 0x10e   :  { %976 = vmatpush.msrb.mxu3 %v2855_v54 }
 0x110   :  { %977 = vmatpush.msrb.mxu3 %v2866_v56 }
 0x111   :  { %2158 = vmatmul.msk.f32.gmra.mxu2 %vm227_vm4, %v2586_v3 }
 0x112   :  { %764 = vmatmul.f32.vlgmr.msra.gmra.mxu0 %v2952_v50  ;;  %978 = vmatpush.msrb.mxu3 %v2876_v21 }
 0x113   :  { %824 = vmatmul.f32.vlgmr.msra.gmra.mxu3 %v2952_v50  ;;  %1066 = vmatpush.msra.mxu0 %v2676_v46 }
 0x114   :  { %v3006_v63 = vpop.f32.mrf.mxu2  ;;  %979 = vmatpush.msrb.mxu3 %v2887_v61 }
 0x115   :  { %3902 = vst [vmem:[#allocation46_spill] sm:$0xff] %v3006_v63  ;;  %1067 = vmatpush.msra.mxu0 %v2680_v1 }
 0x116   :  { %v3015_v3 = vpop.f32.mrf.mxu0  ;;  %980 = vmatpush.msrb.mxu3 %v2903_v9 }
 0x117   :  { %3903 = vst [vmem:[#allocation47_spill] sm:$0xff] %v3015_v3  ;;  %v3017_v30 = vpop.f32.mrf.mxu1  ;;  %1068 = vmatpush.msra.mxu0 %v2699_v5 }
 0x118   :  { %3904 = vst [vmem:[#allocation48_spill] sm:$0xff] %v3017_v30  ;;  %981 = vmatpush.msrb.mxu3 %v2913_v35 }
 0x119   :  { %2159 = vmatmul.msk.f32.gmra.mxu2 %vm227_vm4, %v2598_v19  ;;  %1069 = vmatpush.msra.mxu0 %v2707_v8 }
 0x11a   :  { %982 = vmatpush.msrb.mxu3 %v2920_v13 }
 0x11b   :  { %1070 = vmatpush.msra.mxu0 %v2727_v12 }
 0x11c   :  { %v3030_v63 = vpop.f32.mrf.mxu2  ;;  %1126 = vmatpush.msra.mxu3 %v2725_v11 }
 0x11d   :  { %3905 = vst [vmem:[#allocation49_spill] sm:$0xff] %v3030_v63  ;;  %v3036_v19 = vpop.f32.mrf.mxu3  ;;  %v3909_v63 = vld [vmem:[#allocation9_spill] sm:$0xff]  ;;  %1071 = vmatpush.msra.mxu0 %v2741_v17 }
 0x11e   :  { %3906 = vst [vmem:[#allocation50_spill] sm:$0xff] %v3036_v19  ;;  %1127 = vmatpush.msra.mxu3 %v2737_v16  ;;  %1088 = vmatpush.msra.mxu1 %v3909_v63 }
 0x11f   :  { %v3041_v3 = vpop.f32.mrf.mxu0  ;;  %v3043_v30 = vpop.f32.mrf.mxu1  ;;  %1072 = vmatpush.msra.mxu0 %v2765_v24 }
 0x120   :  { %3907 = vst [vmem:[#allocation51_spill] sm:$0xff] %v3041_v3  ;;  %1128 = vmatpush.msra.mxu3 %v2763_v23  ;;  %v3910_v3 = vld [vmem:[#allocation11_spill] sm:$0xff] }
 0x121   :  { %3908 = vst [vmem:[#allocation52_spill] sm:$0xff] %v3043_v30  ;;  %804 = vmatmul.f32.vlgmr.msrb.gmra.mxu2 %v2952_v50  ;;  %1089 = vmatpush.msra.mxu1 %v3910_v3  ;;  %v3911_v50 = vld [vmem:[#allocation12_spill] sm:$0xff]  ;;  %v3914_v3 = vld [vmem:[#allocation13_spill] sm:$0xff] }
 0x122   :  { %1106 = vmatpush.msrb.mxu2 %v2690_v4  ;;  %1129 = vmatpush.msra.mxu3 %v2775_v28 }
 0x123   :  { %1090 = vmatpush.msra.mxu1 %v3911_v50  ;;  %1073 = vmatpush.msra.mxu0 %v2779_v29 }
 0x124   :  { %v3052_v19 = vpop.f32.mrf.mxu2  ;;  %1107 = vmatpush.msrb.mxu2 %v2703_v7  ;;  %1130 = vmatpush.msra.mxu3 %v2801_v34 }
 0x125   :  { %1091 = vmatpush.msra.mxu1 %v3914_v3  ;;  %1074 = vmatpush.msra.mxu0 %v2803_v36 }
 0x126   :  { %1108 = vmatpush.msrb.mxu2 %v2716_v10  ;;  %v3060_v30 = vpop.f32.mrf.mxu3  ;;  %1131 = vmatpush.msra.mxu3 %v2813_v41 }
 0x127   :  { %3912 = vst [vmem:[#allocation9_spill] sm:$0xff] %v3060_v30  ;;  %v3064_v8 = vpop.f32.mrf.mxu0  ;;  %v3066_v23 = vpop.f32.mrf.mxu1  ;;  %1092 = vmatpush.msra.mxu1 %v2745_v18  ;;  %1075 = vmatpush.msra.mxu0 %v2817_v42 }
 0x128   :  { %3913 = vst [vmem:[#allocation12_spill] sm:$0xff] %v3064_v8  ;;  %1109 = vmatpush.msrb.mxu2 %v2733_v14  ;;  %1132 = vmatpush.msra.mxu3 %v2819_v43  ;;  %v3916_v8 = vld [vmem:[#allocation14_spill] sm:$0xff] }
 0x129   :  { %1093 = vmatpush.msra.mxu1 %v3916_v8  ;;  %1076 = vmatpush.msra.mxu0 %v2844_v47 }
 0x12a   :  { %1110 = vmatpush.msrb.mxu2 %v2750_v20  ;;  %1133 = vmatpush.msra.mxu3 %v2835_v49 }
 0x12b   :  { %1094 = vmatpush.msra.mxu1 %v2767_v25  ;;  %v3918_v25 = vld [vmem:[#allocation19_spill] sm:$0xff]  ;;  %1077 = vmatpush.msra.mxu0 %v2852_v53 }
 0x12c   :  { %v3076_v30 = vpop.f32.mrf.mxu2  ;;  %1111 = vmatpush.msrb.mxu2 %v2771_v26  ;;  %1134 = vmatpush.msra.mxu3 %v2846_v51 }
 0x12d   :  { %3915 = vst [vmem:[#allocation13_spill] sm:$0xff] %v3076_v30  ;;  %1095 = vmatpush.msra.mxu1 %v2773_v27  ;;  %1078 = vmatpush.msra.mxu0 %v2878_v57 }
 0x12e   :  { %1112 = vmatpush.msrb.mxu2 %v2788_v32  ;;  %v3084_v24 = vpop.f32.mrf.mxu3  ;;  %1135 = vmatpush.msra.mxu3 %v2855_v54 }
 0x12f   :  { %3917 = vst [vmem:[#allocation14_spill] sm:$0xff] %v3084_v24  ;;  %v3088_v29 = vpop.f32.mrf.mxu0  ;;  %v347_v30 = vpop.f32.mrf.mxu1  ;;  %1096 = vmatpush.msra.mxu1 %v3918_v25  ;;  %1079 = vmatpush.msra.mxu0 %v2885_v60 }
 0x130   :  { %1113 = vmatpush.msrb.mxu2 %v2809_v38  ;;  %1136 = vmatpush.msra.mxu3 %v2866_v56 }
 0x131   :  { %1097 = vmatpush.msra.mxu1 %v2790_v33  ;;  %1080 = vmatpush.msra.mxu0 %v2893_v62 }
 0x132   :  { %1114 = vmatpush.msrb.mxu2 %v2829_v45  ;;  %1137 = vmatpush.msra.mxu3 %v2876_v21 }
 0x133   :  { %1098 = vmatpush.msra.mxu1 %v2805_v37  ;;  %1081 = vmatpush.msra.mxu0 %v2901_v39 }
 0x134   :  { %v3098_v24 = vpop.f32.mrf.mxu2  ;;  %1115 = vmatpush.msrb.mxu2 %v2848_v52  ;;  %1138 = vmatpush.msra.mxu3 %v2887_v61 }
 0x135   :  { %3919 = vst [vmem:[#allocation53_spill] sm:$0xff] %v3098_v24  ;;  %1099 = vmatpush.msra.mxu1 %v2811_v40 }
 0x136   :  { %1116 = vmatpush.msrb.mxu2 %v2864_v55  ;;  %v429_v47 = vpop.f32.mrf.mxu3  ;;  %1139 = vmatpush.msra.mxu3 %v2903_v9 }
 0x137   :  { %v309_v53 = vpop.f32.mrf.mxu0  ;;  %v350_v56 = vpop.f32.mrf.mxu1  ;;  %1100 = vmatpush.msra.mxu1 %v2823_v44 }
 0x138   :  { %1117 = vmatpush.msrb.mxu2 %v2880_v59  ;;  %1140 = vmatpush.msra.mxu3 %v2913_v35 }
 0x139   :  { %1101 = vmatpush.msra.mxu1 %v2831_v48 }
 0x13a   :  { %1118 = vmatpush.msrb.mxu2 %v2899_v31  ;;  %1141 = vmatpush.msra.mxu3 %v2920_v13 }
 0x13c   :  { %v3116_v24 = vpop.f32.mrf.mxu2  ;;  %1119 = vmatpush.msrb.mxu2 %v2916_v15 }
 0x13d   :  { %3920 = vst [vmem:[#allocation54_spill] sm:$0xff] %v3116_v24 }
 0x13e   :  { %1120 = vmatpush.msrb.mxu2 %v2930_v6  ;;  %v432_v9 = vpop.f32.mrf.mxu3 }
 0x13f   :  { %v312_v62 = vpop.f32.mrf.mxu0  ;;  %v3122_v40 = vpop.f32.mrf.mxu1 }
 0x140   :  { %3921 = vst [vmem:[#allocation55_spill] sm:$0xff] %v3122_v40  ;;  %1121 = vmatpush.msrb.mxu2 %v2940_v22 }
 0x144   :  { %v388_v44 = vpop.f32.mrf.mxu2 }
 0x146   :  { %v435_v35 = vpop.f32.mrf.mxu3 }
 0x147   :  { %v315_v60 = vpop.f32.mrf.mxu0  ;;  %v3125_v39 = vpop.f32.mrf.mxu1 }
 0x148   :  { %3922 = vst [vmem:[#allocation56_spill] sm:$0xff] %v3125_v39 }
 0x14c   :  { %v391_v24 = vpop.f32.mrf.mxu2 }
 0x14e   :  { %v438_v61 = vpop.f32.mrf.mxu3 }
 0x14f   :  { %v458_v15 = vpop.f32.mrf.mxu0  ;;  %v505_v31 = vpop.f32.mrf.mxu1 }
 0x150   :  { %v3127_v48 = vadd.f32 %v458_v15, %v315_v60  ;;  %v3129_v13 = vadd.f32 %v505_v31, %v350_v56 }
 0x152   :  { %3923 = vst [vmem:[#allocation57_spill] sm:$0xff] %v3127_v48 }
 0x153   :  { %3924 = vst [vmem:[#allocation58_spill] sm:$0xff] %v3129_v13 }
 0x154   :  { %v394_v6 = vpop.f32.mrf.mxu2 }
 0x156   :  { %v581_v37 = vpop.f32.mrf.mxu3 }
 0x157   :  { %v3131_v57 = vadd.f32 %v581_v37, %v438_v61  ;;  %v461_v40 = vpop.f32.mrf.mxu0  ;;  %v508_v21 = vpop.f32.mrf.mxu1 }
 0x158   :  { %v3133_v22 = vadd.f32 %v461_v40, %v312_v62  ;;  %v3135_v59 = vadd.f32 %v508_v21, %v347_v30 }
 0x159   :  { %3925 = vst [vmem:[#allocation59_spill] sm:$0xff] %v3131_v57 }
 0x15a   :  { %3926 = vst [vmem:[#allocation60_spill] sm:$0xff] %v3133_v22 }
 0x15b   :  { %3927 = vst [vmem:[#allocation61_spill] sm:$0xff] %v3135_v59 }
 0x15c   :  { %v397_v33 = vpop.f32.mrf.mxu2 }
 0x15e   :  { %v584_v39 = vpop.f32.mrf.mxu3 }
 0x15f   :  { %v3137_v55 = vadd.f32 %v584_v39, %v435_v35  ;;  %v464_v25 = vpop.f32.mrf.mxu0  ;;  %v511_v54 = vpop.f32.mrf.mxu1 }
 0x160   :  { %v3139_v15 = vadd.f32 %v464_v25, %v309_v53  ;;  %v3142_v56 = vadd.f32 %v511_v54, %v3066_v23 }
 0x161   :  { %3928 = vst [vmem:[#allocation62_spill] sm:$0xff] %v3137_v55 }
 0x162   :  { %3929 = vst [vmem:[#allocation63_spill] sm:$0xff] %v3139_v15 }
 0x163   :  { %3930 = vst [vmem:[#allocation64_spill] sm:$0xff] %v3142_v56 }
 0x164   :  { %v540_v60 = vpop.f32.mrf.mxu2 }
 0x165   :  { %v3144_v37 = vadd.f32 %v540_v60, %v397_v33 }
 0x166   :  { %v587_v61 = vpop.f32.mrf.mxu3 }
 0x167   :  { %3931 = vst [vmem:[#allocation65_spill] sm:$0xff] %v3144_v37  ;;  %v3146_v31 = vadd.f32 %v587_v61, %v432_v9  ;;  %v467_v40 = vpop.f32.mrf.mxu0  ;;  %v3148_v30 = vpop.f32.mrf.mxu1 }
 0x168   :  { %v3151_v21 = vadd.f32 %v467_v40, %v3088_v29 }
 0x169   :  { %3932 = vst [vmem:[#allocation66_spill] sm:$0xff] %v3146_v31 }
 0x16a   :  { %3933 = vst [vmem:[#allocation67_spill] sm:$0xff] %v3151_v21 }
 0x16c   :  { %v543_v62 = vpop.f32.mrf.mxu2 }
 0x16d   :  { %v3153_v39 = vadd.f32 %v543_v62, %v394_v6  ;;  %v3940_v6 = vld [vmem:[#allocation45_spill] sm:$0xff] }
 0x16e   :  { %v590_v25 = vpop.f32.mrf.mxu3 }
 0x16f   :  { %3934 = vst [vmem:[#allocation68_spill] sm:$0xff] %v3153_v39  ;;  %v3155_v53 = vadd.f32 %v590_v25, %v429_v47  ;;  %v3157_v23 = vpop.f32.mrf.mxu0  ;;  %v3159_v54 = vpop.f32.mrf.mxu1  ;;  %v3942_v39 = vld [vmem:[#allocation44_spill] sm:$0xff] }
 0x170   :  { %3936 = vst [vmem:[#allocation70_spill] sm:$0xff] %v3157_v23 }
 0x171   :  { %3935 = vst [vmem:[#allocation69_spill] sm:$0xff] %v3155_v53 }
 0x174   :  { %v546_v33 = vpop.f32.mrf.mxu2 }
 0x175   :  { %v3161_v35 = vadd.f32 %v546_v33, %v391_v24 }
 0x176   :  { %v3167_v29 = vpop.f32.mrf.mxu3 }
 0x177   :  { %3937 = vst [vmem:[#allocation71_spill] sm:$0xff] %v3161_v35  ;;  %v3163_v9 = vpop.f32.mrf.mxu0  ;;  %v520_v60 = vpop.f32.mrf.mxu1 }
 0x178   :  { %3939 = vst [vmem:[#allocation73_spill] sm:$0xff] %v3167_v29  ;;  %v745_v40 = vadd.f32 %v520_v60, %v3940_v6 }
 0x17c   :  { %v549_v61 = vpop.f32.mrf.mxu2 }
 0x17d   :  { %v3165_v57 = vadd.f32 %v549_v61, %v388_v44 }
 0x17e   :  { %v3174_v55 = vpop.f32.mrf.mxu3 }
 0x17f   :  { %3938 = vst [vmem:[#allocation72_spill] sm:$0xff] %v3165_v57  ;;  %v3170_v62 = vpop.f32.mrf.mxu0  ;;  %v785_v47 = vpop.f32.mrf.mxu1 }
 0x180   :  { %v829_v25 = vadd.f32 %v785_v47, %v745_v40 }
 0x182   :  { %v2171_v48 = vmul.f32 -1.442695, %v829_v25 }
 0x184   :  { %v3172_v37 = vpop.f32.mrf.mxu2  ;;  %2226 = vpow2.f32 %v2171_v48 }
 0x185   :  { %3941 = vst [vmem:[#allocation45_spill] sm:$0xff] %v3172_v37 }
 0x186   :  { %v3179_v35 = vpop.f32.mrf.mxu3 }
 0x187   :  { %v479_v24 = vpop.f32.mrf.mxu0 }
 0x188   :  { %v744_v44 = vadd.f32 %v479_v24, %v3942_v39 }
 0x18a   :  { %v2227_v61 = vpop.eup %2226 }
 0x18b   :  { %v842_v60 = vadd.f32 1.0, %v2227_v61 }
 0x18c   :  { %v3176_v33 = vpop.f32.mrf.mxu2 }
 0x18d   :  { %vm864_vm7 = vweird.f32 %v842_v60 }
 0x18e   :  { %v602_v47 = vpop.f32.mrf.mxu3 }
 0x18f   :  { %v765_v22 = vpop.f32.mrf.mxu0 }
 0x190   :  { %v828_v31 = vadd.f32 %v765_v22, %v744_v44 }
 0x192   :  { %v2170_v6 = vmul.f32 -1.442695, %v828_v31  ;;  %v747_v31 = vadd.f32 %v602_v47, %v3008_v58 }
 0x194   :  { %v3181_v13 = vpop.f32.mrf.mxu2  ;;  %2228 = vpow2.f32 %v2170_v6 }
 0x195   :  { %2230 = vrcp.f32 %v842_v60 }
 0x196   :  { %v825_v61 = vpop.f32.mrf.mxu3 }
 0x197   :  { %v831_v37 = vadd.f32 %v825_v61, %v747_v31 }
 0x19a   :  { %v2229_v40 = vpop.eup %2228 }
 0x19b   :  { %v841_v25 = vadd.f32 1.0, %v2229_v40  ;;  %v2231_v48 = vpop.eup %2230 }
 0x19c   :  { %v561_v15 = vpop.f32.mrf.mxu2  ;;  %v860_v53 = vmul.f32 %v2231_v48, %v842_v60  ;;  %vm865_vm4 = vweird.f32 %v2231_v48 }
 0x19d   :  { %2232 = vrcp.f32 %v841_v25  ;;  %v746_v39 = vadd.f32 %v561_v15, %v3052_v19  ;;  %v855_v23 = vand.u32 2147483648, %v841_v25  ;;  %vm849_vm5 = vweird.f32 %v841_v25  ;;  %vm866_vm8 = vmor %vm864_vm7, %vm865_vm4 }
 0x19e   :  { %v861_v57 = vsub.f32 1.0, %v860_v53  ;;  %v853_v19 = vand.u32 2147483647, %v841_v25  ;;  %v870_v53 = vand.u32 2147483648, %v842_v60 }
 0x1a0   :  { %v862_v29 = vmul.f32 %v2231_v48, %v861_v57  ;;  %vm854_vm9 = vcmp.eq.f32.partialorder %v853_v19, 8.507059e+37  ;;  %v871_v47 = vor.u32 1.1754944e-38, %v870_v53 }
 0x1a2   :  { %v863_v15 = vadd.f32 %v2231_v48, %v862_v29  ;;  %v2169_v29 = vld [vmem:[%s3765_s3 + $0x8] sm:$0xff] }
 0x1a3   :  { %v2233_v24 = vpop.eup %2232 }
 0x1a4   :  { %v805_v22 = vpop.f32.mrf.mxu2  ;;  %v845_v44 = vmul.f32 %v2233_v24, %v841_v25  ;;  %vm850_vm3 = vweird.f32 %v2233_v24  ;;  %v867_v57 = vsel %vm866_vm8, %v2231_v48, %v863_v15 }
 0x1a5   :  { %v830_v59 = vadd.f32 %v805_v22, %v746_v39  ;;  %vm851_vm6 = vmor %vm849_vm5, %vm850_vm3  ;;  %v868_v22 = vand.u32 2147483647, %v842_v60 }
 0x1a6   :  { %v846_v21 = vsub.f32 1.0, %v845_v44 }
 0x1a7   :  { %v2172_v6 = vmul.f32 -1.442695, %v830_v59  ;;  %v856_v59 = vor.u32 1.1754944e-38, %v855_v23  ;;  %vm869_vm10 = vcmp.eq.f32.partialorder %v868_v22, 8.507059e+37 }
 0x1a8   :  { %v847_v56 = vmul.f32 %v2233_v24, %v846_v21  ;;  %v872_v25 = vsel %vm869_vm10, %v871_v47, %v867_v57 }
 0x1a9   :  { %2234 = vpow2.f32 %v2172_v6  ;;  %v890_v61 = vmul.f32 %v2169_v29, %v872_v25 }
 0x1aa   :  { %v848_v40 = vadd.f32 %v2233_v24, %v847_v56  ;;  %2236 = vtanh.f32 %v831_v37 }
 0x1ac   :  { %v852_v39 = vsel %vm851_vm6, %v2233_v24, %v848_v40 }
 0x1ad   :  { %v857_v44 = vsel %vm854_vm9, %v856_v59, %v852_v39  ;;  %v3975_v59 = vld [vmem:[#allocation47_spill] sm:$0xff] }
 0x1ae   :  { %v903_v57 = vadd.f32 %v3170_v62, %v3975_v59 }
 0x1af   :  { %v2235_v58 = vpop.eup %2234 }
 0x1b0   :  { %v843_v21 = vadd.f32 1.0, %v2235_v58  ;;  %v2237_v56 = vpop.eup %2236 }
 0x1b1   :  { %v891_v37 = vmul.f32 %v2237_v56, %v857_v44 }
 0x1b2   :  { %2238 = vrcp.f32 %v843_v21  ;;  %v885_v48 = vand.u32 2147483648, %v843_v21  ;;  %v883_v40 = vand.u32 2147483647, %v843_v21  ;;  %vm879_vm12 = vweird.f32 %v843_v21 }
 0x1b3   :  { %v3188_v60 = vadd.f32 %v891_v37, %v890_v61  ;;  %v3976_v37 = vld [vmem:[#allocation13_spill] sm:$0xff] }
 0x1b4   :  { %v886_v15 = vor.u32 1.1754944e-38, %v885_v48  ;;  %vm884_vm14 = vcmp.eq.f32.partialorder %v883_v40, 8.507059e+37  ;;  %v905_v61 = vadd.f32 %v3181_v13, %v3976_v37  ;;  %v3285_v37 = vld [vmem:[#allocation5 + $0x1d0] sm:$0xff] }
 0x1b5   :  { %2240 = vtanh.f32 %v3188_v60 }
 0x1b8   :  { %v2239_v24 = vpop.eup %2238 }
 0x1b9   :  { %v875_v31 = vmul.f32 %v2239_v24, %v843_v21  ;;  %vm880_vm11 = vweird.f32 %v2239_v24 }
 0x1ba   :  { %vm881_vm13 = vmor %vm879_vm12, %vm880_vm11 }
 0x1bb   :  { %v876_v23 = vsub.f32 1.0, %v875_v31  ;;  %v2241_v39 = vpop.eup %2240 }
 0x1bd   :  { %v877_v6 = vmul.f32 %v2239_v24, %v876_v23 }
 0x1bf   :  { %v878_v19 = vadd.f32 %v2239_v24, %v877_v6 }
 0x1c1   :  { %v882_v53 = vsel %vm881_vm13, %v2239_v24, %v878_v19 }
 0x1c2   :  { %v887_v22 = vsel %vm884_vm14, %v886_v15, %v882_v53  ;;  %v3977_v15 = vld [vmem:[#allocation50_spill] sm:$0xff] }
 0x1c3   :  { %v894_v58 = vmul.f32 %v2241_v39, %v887_v22  ;;  %v906_v53 = vadd.f32 %v3179_v35, %v3977_v15  ;;  %v3318_v15 = vld [vmem:[#allocation5 + $0x168] sm:$0xff] }
 0x1c5   :  { %923 = vmatmul.f32.vlgmr.msrb.gmra.mxu0 %v894_v58  ;;  %943 = vmatmul.f32.vlgmr.msrb.gmra.mxu1 %v894_v58 }
 0x1c6   :  { %963 = vmatmul.f32.vlgmr.msra.gmra.mxu2 %v894_v58  ;;  %983 = vmatmul.f32.vlgmr.msrb.gmra.mxu3 %v894_v58 }
 0x1c7   :  { %1225 = vmatpush.msrb.mxu0 %v2676_v46  ;;  %1245 = vmatpush.msrb.mxu1 %v2678_v0  ;;  %v3943_v46 = vld [vmem:[#allocation15_spill] sm:$0xff]  ;;  %v3944_v0 = vld [vmem:[#allocation10_spill] sm:$0xff] }
 0x1c8   :  { %1265 = vmatpush.msra.mxu2 %v2690_v4  ;;  %1285 = vmatpush.msrb.mxu3 %v2725_v11  ;;  %v3945_v4 = vld [vmem:[#allocation11_spill] sm:$0xff]  ;;  %v3952_v11 = vld [vmem:[#allocation28_spill] sm:$0xff] }
 0x1c9   :  { %1226 = vmatpush.msrb.mxu0 %v2680_v1  ;;  %1246 = vmatpush.msrb.mxu1 %v2684_v2  ;;  %v3946_v1 = vld [vmem:[#allocation16_spill] sm:$0xff]  ;;  %v3947_v2 = vld [vmem:[#allocation18_spill] sm:$0xff] }
 0x1ca   :  { %1266 = vmatpush.msra.mxu2 %v2703_v7  ;;  %1286 = vmatpush.msrb.mxu3 %v2737_v16  ;;  %v3949_v7 = vld [vmem:[#allocation27_spill] sm:$0xff]  ;;  %v3955_v16 = vld [vmem:[#allocation20_spill] sm:$0xff] }
 0x1cb   :  { %1227 = vmatpush.msrb.mxu0 %v2699_v5  ;;  %1247 = vmatpush.msrb.mxu1 %v3909_v63  ;;  %v3948_v5 = vld [vmem:[#allocation17_spill] sm:$0xff] }
 0x1cc   :  { %1267 = vmatpush.msra.mxu2 %v2716_v10  ;;  %1287 = vmatpush.msrb.mxu3 %v3943_v46  ;;  %v3951_v10 = vld [vmem:[#allocation19_spill] sm:$0xff]  ;;  %v3973_v63 = vld [vmem:[#allocation41_spill] sm:$0xff] }
 0x1cd   :  { %1228 = vmatpush.msrb.mxu0 %v3944_v0  ;;  %1248 = vmatpush.msrb.mxu1 %v3945_v4 }
 0x1ce   :  { %1268 = vmatpush.msra.mxu2 %v2733_v14  ;;  %1288 = vmatpush.msrb.mxu3 %v2775_v28  ;;  %v3954_v14 = vld [vmem:[#allocation26_spill] sm:$0xff] }
 0x1cf   :  { %1229 = vmatpush.msrb.mxu0 %v2727_v12  ;;  %1249 = vmatpush.msrb.mxu1 %v3911_v50  ;;  %v3953_v12 = vld [vmem:[#allocation29_spill] sm:$0xff]  ;;  %v3961_v28 = vld [vmem:[#allocation34_spill] sm:$0xff] }
 0x1d0   :  { %1269 = vmatpush.msra.mxu2 %v2750_v20  ;;  %1289 = vmatpush.msrb.mxu3 %v2801_v34  ;;  %v3958_v20 = vld [vmem:[#allocation31_spill] sm:$0xff]  ;;  %v3963_v34 = vld [vmem:[#allocation22_spill] sm:$0xff] }
 0x1d1   :  { %1230 = vmatpush.msrb.mxu0 %v2741_v17  ;;  %1250 = vmatpush.msrb.mxu1 %v3914_v3  ;;  %v3956_v17 = vld [vmem:[#allocation32_spill] sm:$0xff] }
 0x1d2   :  { %1270 = vmatpush.msra.mxu2 %v2771_v26  ;;  %1290 = vmatpush.msrb.mxu3 %v2813_v41  ;;  %v3959_v26 = vld [vmem:[#allocation21_spill] sm:$0xff]  ;;  %v3966_v41 = vld [vmem:[#allocation35_spill] sm:$0xff]  ;;  %v3974_v3 = vld [vmem:[#allocation48_spill] sm:$0xff] }
 0x1d3   :  { %1231 = vmatpush.msrb.mxu0 %v3946_v1  ;;  %1251 = vmatpush.msrb.mxu1 %v2745_v18  ;;  %v3957_v18 = vld [vmem:[#allocation30_spill] sm:$0xff]  ;;  %v904_v50 = vadd.f32 %v3159_v54, %v3974_v3 }
 0x1d4   :  { %1271 = vmatpush.msra.mxu2 %v2788_v32  ;;  %1291 = vmatpush.msrb.mxu3 %v2819_v43  ;;  %v3962_v32 = vld [vmem:[#allocation33_spill] sm:$0xff]  ;;  %v3968_v43 = vld [vmem:[#allocation42_spill] sm:$0xff] }
 0x1d5   :  { %1232 = vmatpush.msrb.mxu0 %v3947_v2  ;;  %1252 = vmatpush.msrb.mxu1 %v3916_v8  ;;  %v3950_v8 = vld [vmem:[#allocation25_spill] sm:$0xff] }
 0x1d6   :  { %1272 = vmatpush.msra.mxu2 %v2809_v38  ;;  %1292 = vmatpush.msrb.mxu3 %v2835_v49  ;;  %v3965_v38 = vld [vmem:[#allocation38_spill] sm:$0xff]  ;;  %v3970_v49 = vld [vmem:[#allocation37_spill] sm:$0xff] }
 0x1d7   :  { %1233 = vmatpush.msrb.mxu0 %v2803_v36  ;;  %1253 = vmatpush.msrb.mxu1 %v3948_v5  ;;  %v3964_v36 = vld [vmem:[#allocation40_spill] sm:$0xff] }
 0x1d8   :  { %1273 = vmatpush.msra.mxu2 %v2829_v45  ;;  %1293 = vmatpush.msrb.mxu3 %v2846_v51  ;;  %v3969_v45 = vld [vmem:[#allocation39_spill] sm:$0xff]  ;;  %v3971_v51 = vld [vmem:[#allocation24_spill] sm:$0xff] }
 0x1d9   :  { %1234 = vmatpush.msrb.mxu0 %v2817_v42  ;;  %1254 = vmatpush.msrb.mxu1 %v2773_v27  ;;  %v3960_v27 = vld [vmem:[#allocation36_spill] sm:$0xff]  ;;  %v3967_v42 = vld [vmem:[#allocation23_spill] sm:$0xff] }
 0x1da   :  { %1274 = vmatpush.msra.mxu2 %v2848_v52  ;;  %1294 = vmatpush.msrb.mxu3 %v3949_v7  ;;  %v3972_v52 = vld [vmem:[#allocation43_spill] sm:$0xff] }
 0x1db   :  { %1235 = vmatpush.msrb.mxu0 %v3950_v8  ;;  %1255 = vmatpush.msrb.mxu1 %v3951_v10 }
 0x1dc   :  { %1275 = vmatpush.msra.mxu2 %v3952_v11  ;;  %1295 = vmatpush.msrb.mxu3 %v3953_v12 }
 0x1dd   :  { %1236 = vmatpush.msrb.mxu0 %v3954_v14  ;;  %1256 = vmatpush.msrb.mxu1 %v3955_v16 }
 0x1de   :  { %1276 = vmatpush.msra.mxu2 %v3956_v17  ;;  %1296 = vmatpush.msrb.mxu3 %v3957_v18 }
 0x1df   :  { %1237 = vmatpush.msrb.mxu0 %v3958_v20  ;;  %1257 = vmatpush.msrb.mxu1 %v3959_v26 }
 0x1e0   :  { %1277 = vmatpush.msra.mxu2 %v3960_v27  ;;  %1297 = vmatpush.msrb.mxu3 %v3961_v28 }
 0x1e1   :  { %1238 = vmatpush.msrb.mxu0 %v3962_v32  ;;  %1258 = vmatpush.msrb.mxu1 %v3963_v34 }
 0x1e2   :  { %1278 = vmatpush.msra.mxu2 %v3964_v36  ;;  %1298 = vmatpush.msrb.mxu3 %v3965_v38 }
 0x1e3   :  { %1239 = vmatpush.msrb.mxu0 %v3966_v41  ;;  %1259 = vmatpush.msrb.mxu1 %v3967_v42 }
 0x1e4   :  { %1279 = vmatpush.msra.mxu2 %v3968_v43  ;;  %1299 = vmatpush.msrb.mxu3 %v3969_v45 }
 0x1e5   :  { %1240 = vmatpush.msrb.mxu0 %v3970_v49  ;;  %1260 = vmatpush.msrb.mxu1 %v3971_v51 }
 0x1e6   :  { %1280 = vmatpush.msra.mxu2 %v3972_v52  ;;  %1300 = vmatpush.msrb.mxu3 %v3973_v63 }
 0x242   :  { %v924_v21 = vpop.f32.mrf.mxu0  ;;  %v944_v47 = vpop.f32.mrf.mxu1 }
 0x243   :  { %v987_v44 = vadd.f32 %v924_v21, %v903_v57  ;;  %v988_v56 = vadd.f32 %v944_v47, %v904_v50  ;;  %v3270_v47 = vld [vmem:[#allocation5 + $0x1e8] sm:$0xff] }
 0x245   :  { %v2173_v29 = vmul.f32 -1.442695, %v987_v44  ;;  %v2174_v25 = vmul.f32 -1.442695, %v988_v56  ;;  %v3273_v44 = vld [vmem:[#allocation5 + $0x1f0] sm:$0xff]  ;;  %v3276_v56 = vld [vmem:[#allocation5 + $0x1f8] sm:$0xff] }
 0x247   :  { %2242 = vpow2.f32 %v2173_v29  ;;  %v3279_v29 = vld [vmem:[#allocation5 + $0x1c0] sm:$0xff] }
 0x248   :  { %2244 = vpow2.f32 %v2174_v25  ;;  %v3282_v25 = vld [vmem:[#allocation5 + $0x1c8] sm:$0xff] }
 0x249   :  { %v964_v24 = vpop.f32.mrf.mxu2  ;;  %v984_v62 = vpop.f32.mrf.mxu3 }
 0x24a   :  { %v989_v31 = vadd.f32 %v964_v24, %v905_v61  ;;  %v990_v58 = vadd.f32 %v984_v62, %v906_v53  ;;  %v3288_v61 = vld [vmem:[#allocation5 + $0x1d8] sm:$0xff]  ;;  %v3291_v24 = vld [vmem:[#allocation5 + $0x1a0] sm:$0xff]  ;;  %v3321_v53 = vld [vmem:[#allocation5 + $0x170] sm:$0xff] }
 0x24b   :  { %v3312_v62 = vld [vmem:[#allocation5 + $0x198] sm:$0xff] }
 0x24c   :  { %v2175_v23 = vmul.f32 -1.442695, %v989_v31  ;;  %v3294_v31 = vld [vmem:[#allocation5 + $0x1a8] sm:$0xff] }
 0x24d   :  { %v2243_v48 = vpop.eup %2242 }
 0x24e   :  { %v2245_v6 = vpop.eup %2244  ;;  %v1000_v54 = vadd.f32 1.0, %v2243_v48  ;;  %2246 = vpow2.f32 %v2175_v23  ;;  %v3297_v23 = vld [vmem:[#allocation5 + $0x1b0] sm:$0xff]  ;;  %v3300_v48 = vld [vmem:[#allocation5 + $0x1b8] sm:$0xff] }
 0x24f   :  { %v1001_v40 = vadd.f32 1.0, %v2245_v6  ;;  %v3303_v6 = vld [vmem:[#allocation5 + $0x180] sm:$0xff] }
 0x250   :  { %2248 = vrcp.f32 %v1000_v54  ;;  %v1014_v2 = vand.u32 2147483648, %v1000_v54  ;;  %v1012_v8 = vand.u32 2147483647, %v1000_v54  ;;  %vm1008_vm1 = vweird.f32 %v1000_v54 }
 0x251   :  { %2250 = vrcp.f32 %v1001_v40  ;;  %v1029_v5 = vand.u32 2147483648, %v1001_v40  ;;  %v1027_v11 = vand.u32 2147483647, %v1001_v40  ;;  %vm1023_vm2 = vweird.f32 %v1001_v40 }
 0x252   :  { %v1015_v16 = vor.u32 1.1754944e-38, %v1014_v2  ;;  %vm1013_vm5 = vcmp.eq.f32.partialorder %v1012_v8, 8.507059e+37  ;;  %v3348_v2 = vld [vmem:[#allocation5 + $0x138] sm:$0xff]  ;;  %v3357_v8 = vld [vmem:[#allocation5 + $0x110] sm:$0xff] }
 0x253   :  { %v1030_v18 = vor.u32 1.1754944e-38, %v1029_v5  ;;  %vm1028_vm6 = vcmp.eq.f32.partialorder %v1027_v11, 8.507059e+37  ;;  %v3351_v5 = vld [vmem:[#allocation5 + $0x100] sm:$0xff] }
 0x254   :  { %v2247_v19 = vpop.eup %2246  ;;  %v3363_v11 = vld [vmem:[#allocation5 + $0xe0] sm:$0xff] }
 0x255   :  { %v1002_v39 = vadd.f32 1.0, %v2247_v19  ;;  %v3315_v19 = vld [vmem:[#allocation5 + $0x160] sm:$0xff] }
 0x256   :  { %v2249_v22 = vpop.eup %2248 }
 0x257   :  { %v2251_v13 = vpop.eup %2250  ;;  %v1004_v46 = vmul.f32 %v2249_v22, %v1000_v54  ;;  %2252 = vrcp.f32 %v1002_v39  ;;  %vm1009_vm15 = vweird.f32 %v2249_v22  ;;  %v1044_v51 = vand.u32 2147483648, %v1002_v39  ;;  %v3306_v54 = vld [vmem:[#allocation5 + $0x188] sm:$0xff] }
 0x258   :  { %v1019_v0 = vmul.f32 %v2251_v13, %v1001_v40  ;;  %2254 = vtanh.f32 %v990_v58  ;;  %vm1024_vm0 = vweird.f32 %v2251_v13  ;;  %vm1010_vm3 = vmor %vm1008_vm1, %vm1009_vm15  ;;  %vm1038_vm8 = vweird.f32 %v1002_v39  ;;  %v3309_v40 = vld [vmem:[#allocation5 + $0x190] sm:$0xff]  ;;  %v3330_v58 = vld [vmem:[#allocation5 + $0x148] sm:$0xff] }
 0x259   :  { %v1005_v4 = vsub.f32 1.0, %v1004_v46  ;;  %vm1025_vm4 = vmor %vm1023_vm2, %vm1024_vm0  ;;  %v1042_v63 = vand.u32 2147483647, %v1002_v39  ;;  %v1045_v50 = vor.u32 1.1754944e-38, %v1044_v51  ;;  %v3336_v46 = vld [vmem:[#allocation5 + $0x158] sm:$0xff]  ;;  %v3414_v51 = vld [vmem:[#allocation5 + $0x68] sm:$0xff] }
 0x25a   :  { %v1020_v1 = vsub.f32 1.0, %v1019_v0  ;;  %v3339_v0 = vld [vmem:[#allocation5 + $0x120] sm:$0xff]  ;;  %3989 = vst [vmem:[#allocation29_spill] sm:$0xff] %v3414_v51 }
 0x25b   :  { %v1006_v7 = vmul.f32 %v2249_v22, %v1005_v4  ;;  %vm1043_vm10 = vcmp.eq.f32.partialorder %v1042_v63, 8.507059e+37  ;;  %v3342_v4 = vld [vmem:[#allocation5 + $0x128] sm:$0xff]  ;;  %v3417_v63 = vld [vmem:[#allocation5 + $0x70] sm:$0xff] }
 0x25c   :  { %v1021_v10 = vmul.f32 %v2251_v13, %v1020_v1  ;;  %v3345_v1 = vld [vmem:[#allocation5 + $0x130] sm:$0xff]  ;;  %3990 = vst [vmem:[#allocation26_spill] sm:$0xff] %v3417_v63 }
 0x25d   :  { %v2253_v12 = vpop.eup %2252  ;;  %v1007_v35 = vadd.f32 %v2249_v22, %v1006_v7  ;;  %v3354_v7 = vld [vmem:[#allocation5 + $0x108] sm:$0xff] }
 0x25e   :  { %v1034_v14 = vmul.f32 %v2253_v12, %v1002_v39  ;;  %v1022_v17 = vadd.f32 %v2251_v13, %v1021_v10  ;;  %v2255_v26 = vpop.eup %2254  ;;  %vm1039_vm7 = vweird.f32 %v2253_v12  ;;  %v3324_v39 = vld [vmem:[#allocation5 + $0x178] sm:$0xff] }
 0x25f   :  { %v1011_v20 = vsel %vm1010_vm3, %v2249_v22, %v1007_v35  ;;  %vm1040_vm9 = vmor %vm1038_vm8, %vm1039_vm7  ;;  %v3327_v22 = vld [vmem:[#allocation5 + $0x140] sm:$0xff]  ;;  %v3360_v10 = vld [vmem:[#allocation5 + $0x118] sm:$0xff] }
 0x260   :  { %v1035_v27 = vsub.f32 1.0, %v1034_v14  ;;  %v1016_v28 = vsel %vm1013_vm5, %v1015_v16, %v1011_v20  ;;  %v1026_v32 = vsel %vm1025_vm4, %v2251_v13, %v1022_v17  ;;  %v3333_v13 = vld [vmem:[#allocation5 + $0x150] sm:$0xff]  ;;  %v3372_v14 = vld [vmem:[#allocation5 + $0xf8] sm:$0xff]  ;;  %v3375_v16 = vld [vmem:[#allocation5 + $0xc0] sm:$0xff] }
 0x261   :  { %v1031_v34 = vsel %vm1028_vm6, %v1030_v18, %v1026_v32  ;;  %v1050_v38 = vmul.f32 %v2255_v26, %v1016_v28  ;;  %v3369_v35 = vld [vmem:[#allocation5 + $0xf0] sm:$0xff]  ;;  %v3378_v17 = vld [vmem:[#allocation5 + $0xc8] sm:$0xff]  ;;  %v3384_v20 = vld [vmem:[#allocation5 + $0xd8] sm:$0xff] }
 0x262   :  { %v1049_v41 = vmul.f32 %v1031_v34, %v3188_v60  ;;  %v1036_v42 = vmul.f32 %v2253_v12, %v1035_v27  ;;  %v3267_v60 = vld [vmem:[#allocation5 + $0x1e0] sm:$0xff]  ;;  %v3381_v18 = vld [vmem:[#allocation5 + $0xd0] sm:$0xff]  ;;  %3979 = vst [vmem:[#allocation15_spill] sm:$0xff] %v3384_v20  ;;  %v3390_v27 = vld [vmem:[#allocation5 + $0xa8] sm:$0xff] }
 0x263   :  { %3978 = vst [vmem:[#allocation44_spill] sm:$0xff] %v3381_v18  ;;  %v3387_v26 = vld [vmem:[#allocation5 + $0xa0] sm:$0xff]  ;;  %v3393_v28 = vld [vmem:[#allocation5 + $0xb0] sm:$0xff]  ;;  %v3396_v32 = vld [vmem:[#allocation5 + $0xb8] sm:$0xff] }
 0x264   :  { %v3264_v45 = vadd.f32 %v1050_v38, %v1049_v41  ;;  %v1037_v49 = vadd.f32 %v2253_v12, %v1036_v42  ;;  %3980 = vst [vmem:[#allocation10_spill] sm:$0xff] %v3387_v26  ;;  %v3399_v34 = vld [vmem:[#allocation5 + $0x80] sm:$0xff]  ;;  %v3402_v38 = vld [vmem:[#allocation5 + $0x88] sm:$0xff]  ;;  %v3405_v41 = vld [vmem:[#allocation5 + $0x90] sm:$0xff] }
 0x265   :  { %3981 = vst [vmem:[#allocation11_spill] sm:$0xff] %v3390_v27  ;;  %v3408_v42 = vld [vmem:[#allocation5 + $0x98] sm:$0xff] }
 0x266   :  { %2256 = vtanh.f32 %v3264_v45  ;;  %v1041_v3 = vsel %vm1040_vm9, %v2253_v12, %v1037_v49  ;;  %v3366_v12 = vld [vmem:[#allocation5 + $0xe8] sm:$0xff]  ;;  %3982 = vst [vmem:[#allocation16_spill] sm:$0xff] %v3393_v28  ;;  %v3411_v49 = vld [vmem:[#allocation5 + $0x60] sm:$0xff] }
 0x267   :  { %v1046_v57 = vsel %vm1043_vm10, %v1045_v50, %v1041_v3  ;;  %3983 = vst [vmem:[#allocation18_spill] sm:$0xff] %v3396_v32  ;;  %v3420_v3 = vld [vmem:[#allocation5 + $0x78] sm:$0xff]  ;;  %v3423_v50 = vld [vmem:[#allocation5 + $0x40] sm:$0xff] }
 0x268   :  { %3984 = vst [vmem:[#allocation17_spill] sm:$0xff] %v3399_v34 }
 0x269   :  { %3985 = vst [vmem:[#allocation27_spill] sm:$0xff] %v3402_v38 }
 0x26a   :  { %3986 = vst [vmem:[#allocation25_spill] sm:$0xff] %v3405_v41 }
 0x26b   :  { %3987 = vst [vmem:[#allocation19_spill] sm:$0xff] %v3408_v42 }
 0x26c   :  { %v2257_v59 = vpop.eup %2256  ;;  %3988 = vst [vmem:[#allocation28_spill] sm:$0xff] %v3411_v49 }
 0x26d   :  { %v1053_v21 = vmul.f32 %v2257_v59, %v1046_v57  ;;  %3991 = vst [vmem:[#allocation20_spill] sm:$0xff] %v3420_v3  ;;  %v3426_v59 = vld [vmem:[#allocation5 + $0x48] sm:$0xff]  ;;  %v3430_v57 = vld [vmem:[#allocation5 + $0x58] sm:$0xff] }
 0x26e   :  { %3992 = vst [vmem:[#allocation32_spill] sm:$0xff] %v3423_v50 }
 0x26f   :  { %1082 = vmatmul.f32.vlgmr.msra.gmra.mxu0 %v1053_v21  ;;  %1102 = vmatmul.f32.vlgmr.msra.gmra.mxu1 %v1053_v21  ;;  %3993 = vst [vmem:[#allocation30_spill] sm:$0xff] %v3426_v59 }
 0x270   :  { %1122 = vmatmul.f32.vlgmr.msrb.gmra.mxu2 %v1053_v21  ;;  %1142 = vmatmul.f32.vlgmr.msra.gmra.mxu3 %v1053_v21  ;;  %3994 = vst [vmem:[#allocation31_spill] sm:$0xff] %v3430_v57  ;;  %v3433_v21 = vld [vmem:[#allocation5 + $0x20] sm:$0xff] }
 0x271   :  { %1384 = vmatpush.msra.mxu0 %v3267_v60  ;;  %1404 = vmatpush.msra.mxu1 %v3270_v47  ;;  %3995 = vst [vmem:[#allocation21_spill] sm:$0xff] %v3433_v21 }
 0x272   :  { %1424 = vmatpush.msrb.mxu2 %v3273_v44  ;;  %1444 = vmatpush.msra.mxu3 %v3276_v56 }
 0x273   :  { %1385 = vmatpush.msra.mxu0 %v3279_v29  ;;  %1405 = vmatpush.msra.mxu1 %v3282_v25 }
 0x274   :  { %1425 = vmatpush.msrb.mxu2 %v3285_v37  ;;  %1445 = vmatpush.msra.mxu3 %v3288_v61 }
 0x275   :  { %1386 = vmatpush.msra.mxu0 %v3291_v24  ;;  %1406 = vmatpush.msra.mxu1 %v3294_v31 }
 0x276   :  { %1426 = vmatpush.msrb.mxu2 %v3297_v23  ;;  %1446 = vmatpush.msra.mxu3 %v3300_v48 }
 0x277   :  { %1387 = vmatpush.msra.mxu0 %v3303_v6  ;;  %1407 = vmatpush.msra.mxu1 %v3306_v54 }
 0x278   :  { %1427 = vmatpush.msrb.mxu2 %v3309_v40  ;;  %1447 = vmatpush.msra.mxu3 %v3312_v62 }
 0x279   :  { %1388 = vmatpush.msra.mxu0 %v3315_v19  ;;  %1408 = vmatpush.msra.mxu1 %v3318_v15 }
 0x27a   :  { %1428 = vmatpush.msrb.mxu2 %v3321_v53  ;;  %1448 = vmatpush.msra.mxu3 %v3324_v39 }
 0x27b   :  { %1389 = vmatpush.msra.mxu0 %v3327_v22  ;;  %1409 = vmatpush.msra.mxu1 %v3330_v58 }
 0x27c   :  { %1429 = vmatpush.msrb.mxu2 %v3333_v13  ;;  %1449 = vmatpush.msra.mxu3 %v3336_v46 }
 0x27d   :  { %1390 = vmatpush.msra.mxu0 %v3339_v0  ;;  %1410 = vmatpush.msra.mxu1 %v3342_v4 }
 0x27e   :  { %1430 = vmatpush.msrb.mxu2 %v3345_v1  ;;  %1450 = vmatpush.msra.mxu3 %v3348_v2 }
 0x27f   :  { %1391 = vmatpush.msra.mxu0 %v3351_v5  ;;  %1411 = vmatpush.msra.mxu1 %v3354_v7 }
 0x280   :  { %1431 = vmatpush.msrb.mxu2 %v3357_v8  ;;  %1451 = vmatpush.msra.mxu3 %v3360_v10 }
 0x281   :  { %1392 = vmatpush.msra.mxu0 %v3363_v11  ;;  %1412 = vmatpush.msra.mxu1 %v3366_v12 }
 0x282   :  { %1432 = vmatpush.msrb.mxu2 %v3369_v35  ;;  %1452 = vmatpush.msra.mxu3 %v3372_v14 }
 0x283   :  { %1393 = vmatpush.msra.mxu0 %v3375_v16  ;;  %1413 = vmatpush.msra.mxu1 %v3378_v17 }
 0x284   :  { %1433 = vmatpush.msrb.mxu2 %v3381_v18  ;;  %1453 = vmatpush.msra.mxu3 %v3384_v20 }
 0x285   :  { %1394 = vmatpush.msra.mxu0 %v3387_v26  ;;  %1414 = vmatpush.msra.mxu1 %v3390_v27 }
 0x286   :  { %1434 = vmatpush.msrb.mxu2 %v3393_v28  ;;  %1454 = vmatpush.msra.mxu3 %v3396_v32 }
 0x287   :  { %1395 = vmatpush.msra.mxu0 %v3399_v34  ;;  %1415 = vmatpush.msra.mxu1 %v3402_v38 }
 0x288   :  { %1435 = vmatpush.msrb.mxu2 %v3405_v41  ;;  %1455 = vmatpush.msra.mxu3 %v3408_v42 }
 0x289   :  { %1396 = vmatpush.msra.mxu0 %v3411_v49  ;;  %1416 = vmatpush.msra.mxu1 %v3414_v51 }
 0x28a   :  { %1436 = vmatpush.msrb.mxu2 %v3417_v63  ;;  %1456 = vmatpush.msra.mxu3 %v3420_v3  ;;  %v3436_v63 = vld [vmem:[#allocation5 + $0x28] sm:$0xff] }
 0x28b   :  { %1397 = vmatpush.msra.mxu0 %v3423_v50  ;;  %1417 = vmatpush.msra.mxu1 %v3426_v59  ;;  %3996 = vst [vmem:[#allocation36_spill] sm:$0xff] %v3436_v63  ;;  %v3440_v50 = vld [vmem:[#allocation5 + $0x38] sm:$0xff]  ;;  %v3443_v59 = vld [vmem:[#allocation5] sm:$0xff] }
 0x28c   :  { %1437 = vmatpush.msrb.mxu2 %v3964_v36  ;;  %1457 = vmatpush.msra.mxu3 %v3430_v57  ;;  %3997 = vst [vmem:[#allocation34_spill] sm:$0xff] %v3440_v50  ;;  %v3446_v36 = vld [vmem:[#allocation5 + $0x8] sm:$0xff]  ;;  %v4002_v57 = vld [vmem:[#allocation51_spill] sm:$0xff] }
 0x28d   :  { %1398 = vmatpush.msra.mxu0 %v3433_v21  ;;  %1418 = vmatpush.msra.mxu1 %v3436_v63  ;;  %3998 = vst [vmem:[#allocation33_spill] sm:$0xff] %v3443_v59  ;;  %v3450_v21 = vld [vmem:[#allocation5 + $0x18] sm:$0xff] }
 0x28e   :  { %1438 = vmatpush.msrb.mxu2 %v3968_v43  ;;  %1458 = vmatpush.msra.mxu3 %v3440_v50  ;;  %3999 = vst [vmem:[#allocation22_spill] sm:$0xff] %v3446_v36  ;;  %v4001_v63 = vld [vmem:[#allocation52_spill] sm:$0xff]  ;;  %v1062_v50 = vadd.f32 %v3163_v9, %v4002_v57 }
 0x28f   :  { %1399 = vmatpush.msra.mxu0 %v3443_v59  ;;  %1419 = vmatpush.msra.mxu1 %v3446_v36  ;;  %4000 = vst [vmem:[#allocation40_spill] sm:$0xff] %v3450_v21  ;;  %v1063_v43 = vadd.f32 %v3148_v30, %v4001_v63  ;;  %v4003_v36 = vld [vmem:[#allocation53_spill] sm:$0xff] }
 0x290   :  { %1439 = vmatpush.msrb.mxu2 %v3972_v52  ;;  %1459 = vmatpush.msra.mxu3 %v3450_v21  ;;  %v1064_v52 = vadd.f32 %v3176_v33, %v4003_v36 }
 0x2ec   :  { %v1083_v3 = vpop.f32.mrf.mxu0  ;;  %v1103_v51 = vpop.f32.mrf.mxu1 }
 0x2ed   :  { %v1146_v49 = vadd.f32 %v1083_v3, %v1062_v50  ;;  %v1147_v59 = vadd.f32 %v1103_v51, %v1063_v43  ;;  %v4004_v51 = vld [vmem:[#allocation9_spill] sm:$0xff] }
 0x2ef   :  { %v2176_v42 = vmul.f32 -1.442695, %v1146_v49  ;;  %v2177_v41 = vmul.f32 -1.442695, %v1147_v59  ;;  %v1065_v49 = vadd.f32 %v3174_v55, %v4004_v51 }
 0x2f1   :  { %2258 = vpow2.f32 %v2176_v42 }
 0x2f2   :  { %2260 = vpow2.f32 %v2177_v41 }
 0x2f3   :  { %v1123_v38 = vpop.f32.mrf.mxu2  ;;  %v1143_v9 = vpop.f32.mrf.mxu3 }
 0x2f4   :  { %v1148_v34 = vadd.f32 %v1123_v38, %v1064_v52  ;;  %v1149_v59 = vadd.f32 %v1143_v9, %v1065_v49 }
 0x2f6   :  { %v2178_v21 = vmul.f32 -1.442695, %v1148_v34 }
 0x2f7   :  { %v2259_v32 = vpop.eup %2258 }
 0x2f8   :  { %v2261_v28 = vpop.eup %2260  ;;  %v1159_v30 = vadd.f32 1.0, %v2259_v32  ;;  %2262 = vpow2.f32 %v2178_v21 }
 0x2f9   :  { %v1160_v63 = vadd.f32 1.0, %v2261_v28 }
 0x2fa   :  { %2264 = vrcp.f32 %v1159_v30  ;;  %v1173_v36 = vand.u32 2147483648, %v1159_v30  ;;  %v1171_v21 = vand.u32 2147483647, %v1159_v30  ;;  %vm1167_vm13 = vweird.f32 %v1159_v30 }
 0x2fb   :  { %2266 = vrcp.f32 %v1160_v63  ;;  %v1188_v32 = vand.u32 2147483648, %v1160_v63  ;;  %v1186_v52 = vand.u32 2147483647, %v1160_v63  ;;  %vm1182_vm14 = vweird.f32 %v1160_v63 }
 0x2fc   :  { %vm1172_vm1 = vcmp.eq.f32.partialorder %v1171_v21, 8.507059e+37 }
 0x2fd   :  { %v1189_v49 = vor.u32 1.1754944e-38, %v1188_v32  ;;  %vm1187_vm2 = vcmp.eq.f32.partialorder %v1186_v52, 8.507059e+37  ;;  %v4010_v52 = vld [vmem:[#allocation18_spill] sm:$0xff] }
 0x2fe   :  { %v2263_v3 = vpop.eup %2262 }
 0x2ff   :  { %v1161_v42 = vadd.f32 1.0, %v2263_v3  ;;  %v1174_v3 = vor.u32 1.1754944e-38, %v1173_v36 }
 0x300   :  { %v2265_v50 = vpop.eup %2264 }
 0x301   :  { %v2267_v33 = vpop.eup %2266  ;;  %v1163_v41 = vmul.f32 %v2265_v50, %v1159_v30  ;;  %2268 = vrcp.f32 %v1161_v42  ;;  %vm1168_vm11 = vweird.f32 %v2265_v50  ;;  %v1203_v36 = vand.u32 2147483648, %v1161_v42 }
 0x302   :  { %v1178_v38 = vmul.f32 %v2267_v33, %v1160_v63  ;;  %2270 = vtanh.f32 %v1149_v59  ;;  %vm1183_vm12 = vweird.f32 %v2267_v33  ;;  %vm1169_vm15 = vmor %vm1167_vm13, %vm1168_vm11  ;;  %vm1197_vm4 = vweird.f32 %v1161_v42 }
 0x303   :  { %v1164_v34 = vsub.f32 1.0, %v1163_v41  ;;  %vm1184_vm0 = vmor %vm1182_vm14, %vm1183_vm12  ;;  %v1204_v21 = vor.u32 1.1754944e-38, %v1203_v36  ;;  %v4023_v36 = vld [vmem:[#allocation21_spill] sm:$0xff] }
 0x304   :  { %v1179_v57 = vsub.f32 1.0, %v1178_v38 }
 0x305   :  { %v1165_v28 = vmul.f32 %v2265_v50, %v1164_v34 }
 0x306   :  { %v1180_v43 = vmul.f32 %v2267_v33, %v1179_v57 }
 0x307   :  { %v2269_v27 = vpop.eup %2268  ;;  %v1166_v55 = vadd.f32 %v2265_v50, %v1165_v28 }
 0x308   :  { %v1193_v9 = vmul.f32 %v2269_v27, %v1161_v42  ;;  %v1181_v51 = vadd.f32 %v2267_v33, %v1180_v43  ;;  %v2271_v59 = vpop.eup %2270  ;;  %vm1198_vm3 = vweird.f32 %v2269_v27 }
 0x309   :  { %v1170_v41 = vsel %vm1169_vm15, %v2265_v50, %v1166_v55  ;;  %v1201_v50 = vand.u32 2147483647, %v1161_v42  ;;  %vm1199_vm5 = vmor %vm1197_vm4, %vm1198_vm3  ;;  %v4009_v42 = vld [vmem:[#allocation16_spill] sm:$0xff]  ;;  %v4011_v55 = vld [vmem:[#allocation17_spill] sm:$0xff] }
 0x30a   :  { %v1194_v38 = vsub.f32 1.0, %v1193_v9  ;;  %v1175_v34 = vsel %vm1172_vm1, %v1174_v3, %v1170_v41  ;;  %v1185_v26 = vsel %vm1184_vm0, %v2267_v33, %v1181_v51  ;;  %v4012_v9 = vld [vmem:[#allocation27_spill] sm:$0xff]  ;;  %v4013_v3 = vld [vmem:[#allocation25_spill] sm:$0xff] }
 0x30b   :  { %v1190_v57 = vsel %vm1187_vm2, %v1189_v49, %v1185_v26  ;;  %v1209_v20 = vmul.f32 %v2271_v59, %v1175_v34  ;;  %vm1202_vm6 = vcmp.eq.f32.partialorder %v1201_v50, 8.507059e+37  ;;  %v4014_v51 = vld [vmem:[#allocation19_spill] sm:$0xff]  ;;  %v4015_v49 = vld [vmem:[#allocation28_spill] sm:$0xff]  ;;  %v4016_v41 = vld [vmem:[#allocation29_spill] sm:$0xff] }
 0x30c   :  { %v1208_v18 = vmul.f32 %v1190_v57, %v3264_v45  ;;  %v1195_v28 = vmul.f32 %v2269_v27, %v1194_v38  ;;  %v4005_v45 = vld [vmem:[#allocation44_spill] sm:$0xff]  ;;  %v4017_v59 = vld [vmem:[#allocation26_spill] sm:$0xff] }
 0x30d   :  { %v4018_v38 = vld [vmem:[#allocation20_spill] sm:$0xff]  ;;  %v4020_v57 = vld [vmem:[#allocation30_spill] sm:$0xff] }
 0x30e   :  { %v3462_v30 = vadd.f32 %v1209_v20, %v1208_v18  ;;  %v1196_v63 = vadd.f32 %v2269_v27, %v1195_v28  ;;  %v4006_v18 = vld [vmem:[#allocation15_spill] sm:$0xff]  ;;  %v4007_v20 = vld [vmem:[#allocation10_spill] sm:$0xff]  ;;  %v4019_v34 = vld [vmem:[#allocation32_spill] sm:$0xff] }
 0x30f   :  { %v3519_v28 = vld [vmem:[#allocation5 + $0x50] sm:$0xff]  ;;  %v4024_v50 = vld [vmem:[#allocation36_spill] sm:$0xff] }
 0x310   :  { %2272 = vtanh.f32 %v3462_v30  ;;  %v1200_v32 = vsel %vm1199_vm5, %v2269_v27, %v1196_v63  ;;  %v4008_v27 = vld [vmem:[#allocation11_spill] sm:$0xff]  ;;  %4021 = vst [vmem:[#allocation38_spill] sm:$0xff] %v3519_v28 }
 0x311   :  { %v1205_v43 = vsel %vm1202_vm6, %v1204_v21, %v1200_v32  ;;  %v4022_v63 = vld [vmem:[#allocation31_spill] sm:$0xff]  ;;  %v4026_v21 = vld [vmem:[#allocation34_spill] sm:$0xff] }
 0x312   :  { %v3525_v32 = vld [vmem:[#allocation5 + $0x30] sm:$0xff] }
 0x313   :  { %4025 = vst [vmem:[#allocation35_spill] sm:$0xff] %v3525_v32 }
 0x316   :  { %v2273_v33 = vpop.eup %2272 }
 0x317   :  { %v1212_v26 = vmul.f32 %v2273_v33, %v1205_v43  ;;  %v4027_v33 = vld [vmem:[#allocation33_spill] sm:$0xff]  ;;  %v4028_v43 = vld [vmem:[#allocation22_spill] sm:$0xff] }
 0x319   :  { %1241 = vmatmul.f32.vlgmr.msrb.gmra.mxu0 %v1212_v26  ;;  %1261 = vmatmul.f32.vlgmr.msrb.gmra.mxu1 %v1212_v26 }
 0x31a   :  { %1281 = vmatmul.f32.vlgmr.msra.gmra.mxu2 %v1212_v26  ;;  %1301 = vmatmul.f32.vlgmr.msrb.gmra.mxu3 %v1212_v26  ;;  %v3531_v26 = vld [vmem:[#allocation5 + $0x10] sm:$0xff] }
 0x31b   :  { %1543 = vmatpush.msrb.mxu0 %v3267_v60  ;;  %1563 = vmatpush.msrb.mxu1 %v3270_v47  ;;  %4029 = vst [vmem:[#allocation23_spill] sm:$0xff] %v3531_v26 }
 0x31c   :  { %1583 = vmatpush.msra.mxu2 %v3273_v44  ;;  %1603 = vmatpush.msrb.mxu3 %v3276_v56 }
 0x31d   :  { %1544 = vmatpush.msrb.mxu0 %v3279_v29  ;;  %1564 = vmatpush.msrb.mxu1 %v3282_v25 }
 0x31e   :  { %1584 = vmatpush.msra.mxu2 %v3285_v37  ;;  %1604 = vmatpush.msrb.mxu3 %v3288_v61 }
 0x31f   :  { %1545 = vmatpush.msrb.mxu0 %v3291_v24  ;;  %1565 = vmatpush.msrb.mxu1 %v3294_v31 }
 0x320   :  { %1585 = vmatpush.msra.mxu2 %v3297_v23  ;;  %1605 = vmatpush.msrb.mxu3 %v3300_v48 }
 0x321   :  { %1546 = vmatpush.msrb.mxu0 %v3303_v6  ;;  %1566 = vmatpush.msrb.mxu1 %v3306_v54 }
 0x322   :  { %1586 = vmatpush.msra.mxu2 %v3309_v40  ;;  %1606 = vmatpush.msrb.mxu3 %v3312_v62 }
 0x323   :  { %1547 = vmatpush.msrb.mxu0 %v3315_v19  ;;  %1567 = vmatpush.msrb.mxu1 %v3318_v15 }
 0x324   :  { %1587 = vmatpush.msra.mxu2 %v3321_v53  ;;  %1607 = vmatpush.msrb.mxu3 %v3324_v39 }
 0x325   :  { %1548 = vmatpush.msrb.mxu0 %v3327_v22  ;;  %1568 = vmatpush.msrb.mxu1 %v3330_v58 }
 0x326   :  { %1588 = vmatpush.msra.mxu2 %v3333_v13  ;;  %1608 = vmatpush.msrb.mxu3 %v3336_v46 }
 0x327   :  { %1549 = vmatpush.msrb.mxu0 %v3339_v0  ;;  %1569 = vmatpush.msrb.mxu1 %v3342_v4 }
 0x328   :  { %1589 = vmatpush.msra.mxu2 %v3345_v1  ;;  %1609 = vmatpush.msrb.mxu3 %v3348_v2 }
 0x329   :  { %1550 = vmatpush.msrb.mxu0 %v3351_v5  ;;  %1570 = vmatpush.msrb.mxu1 %v3354_v7 }
 0x32a   :  { %1590 = vmatpush.msra.mxu2 %v3357_v8  ;;  %1610 = vmatpush.msrb.mxu3 %v3360_v10 }
 0x32b   :  { %1551 = vmatpush.msrb.mxu0 %v3363_v11  ;;  %1571 = vmatpush.msrb.mxu1 %v3366_v12 }
 0x32c   :  { %1591 = vmatpush.msra.mxu2 %v3369_v35  ;;  %1611 = vmatpush.msrb.mxu3 %v3372_v14 }
 0x32d   :  { %1552 = vmatpush.msrb.mxu0 %v3375_v16  ;;  %1572 = vmatpush.msrb.mxu1 %v3378_v17 }
 0x32e   :  { %1592 = vmatpush.msra.mxu2 %v4005_v45  ;;  %1612 = vmatpush.msrb.mxu3 %v4006_v18 }
 0x32f   :  { %1553 = vmatpush.msrb.mxu0 %v4007_v20  ;;  %1573 = vmatpush.msrb.mxu1 %v4008_v27 }
 0x330   :  { %1593 = vmatpush.msra.mxu2 %v4009_v42  ;;  %1613 = vmatpush.msrb.mxu3 %v4010_v52 }
 0x331   :  { %1554 = vmatpush.msrb.mxu0 %v4011_v55  ;;  %1574 = vmatpush.msrb.mxu1 %v4012_v9 }
 0x332   :  { %1594 = vmatpush.msra.mxu2 %v4013_v3  ;;  %1614 = vmatpush.msrb.mxu3 %v4014_v51 }
 0x333   :  { %1555 = vmatpush.msrb.mxu0 %v4015_v49  ;;  %1575 = vmatpush.msrb.mxu1 %v4016_v41  ;;  %v4035_v49 = vld [vmem:[#allocation45_spill] sm:$0xff] }
 0x334   :  { %1595 = vmatpush.msra.mxu2 %v4017_v59  ;;  %1615 = vmatpush.msrb.mxu3 %v4018_v38  ;;  %v4033_v59 = vld [vmem:[#allocation64_spill] sm:$0xff] }
 0x335   :  { %1556 = vmatpush.msrb.mxu0 %v4019_v34  ;;  %1576 = vmatpush.msrb.mxu1 %v4020_v57 }
 0x336   :  { %1596 = vmatpush.msra.mxu2 %v3519_v28  ;;  %1616 = vmatpush.msrb.mxu3 %v4022_v63  ;;  %v4030_v28 = vld [vmem:[#allocation40_spill] sm:$0xff] }
 0x337   :  { %1557 = vmatpush.msrb.mxu0 %v4023_v36  ;;  %1577 = vmatpush.msrb.mxu1 %v4024_v50  ;;  %v4031_v63 = vld [vmem:[#allocation12_spill] sm:$0xff]  ;;  %v4032_v36 = vld [vmem:[#allocation70_spill] sm:$0xff] }
 0x338   :  { %1597 = vmatpush.msra.mxu2 %v3525_v32  ;;  %1617 = vmatpush.msrb.mxu3 %v4026_v21  ;;  %v1221_v57 = vadd.f32 %v4032_v36, %v4031_v63 }
 0x339   :  { %1558 = vmatpush.msrb.mxu0 %v4027_v33  ;;  %1578 = vmatpush.msrb.mxu1 %v4028_v43  ;;  %v4034_v33 = vld [vmem:[#allocation54_spill] sm:$0xff] }
 0x33a   :  { %1598 = vmatpush.msra.mxu2 %v3531_v26  ;;  %1618 = vmatpush.msrb.mxu3 %v4030_v28  ;;  %v1223_v43 = vadd.f32 %v4035_v49, %v4034_v33 }
 0x396   :  { %v1242_v50 = vpop.f32.mrf.mxu0  ;;  %v1262_v34 = vpop.f32.mrf.mxu1 }
 0x397   :  { %v1305_v38 = vadd.f32 %v1242_v50, %v1221_v57  ;;  %v1306_v32 = vadd.f32 %v1262_v34, %v4033_v59  ;;  %v4036_v59 = vld [vmem:[#allocation14_spill] sm:$0xff] }
 0x399   :  { %v2179_v41 = vmul.f32 -1.442695, %v1305_v38  ;;  %v2180_v21 = vmul.f32 -1.442695, %v1306_v32  ;;  %v4037_v38 = vld [vmem:[#allocation73_spill] sm:$0xff] }
 0x39a   :  { %v1224_v34 = vadd.f32 %v4037_v38, %v4036_v59 }
 0x39b   :  { %2274 = vpow2.f32 %v2179_v41 }
 0x39c   :  { %2276 = vpow2.f32 %v2180_v21 }
 0x39d   :  { %v1282_v51 = vpop.f32.mrf.mxu2  ;;  %v1302_v57 = vpop.f32.mrf.mxu3 }
 0x39e   :  { %v1307_v3 = vadd.f32 %v1282_v51, %v1223_v43  ;;  %v1308_v32 = vadd.f32 %v1302_v57, %v1224_v34 }
 0x3a0   :  { %v2181_v26 = vmul.f32 -1.442695, %v1307_v3 }
 0x3a1   :  { %v2275_v9 = vpop.eup %2274 }
 0x3a2   :  { %v2277_v28 = vpop.eup %2276  ;;  %v1318_v55 = vadd.f32 1.0, %v2275_v9  ;;  %2278 = vpow2.f32 %v2181_v26 }
 0x3a3   :  { %v1319_v63 = vadd.f32 1.0, %v2277_v28 }
 0x3a4   :  { %2280 = vrcp.f32 %v1318_v55  ;;  %v1332_v43 = vand.u32 2147483648, %v1318_v55  ;;  %v1330_v26 = vand.u32 2147483647, %v1318_v55  ;;  %vm1326_vm9 = vweird.f32 %v1318_v55 }
 0x3a5   :  { %2282 = vrcp.f32 %v1319_v63  ;;  %v1347_v9 = vand.u32 2147483648, %v1319_v63  ;;  %v1345_v42 = vand.u32 2147483647, %v1319_v63  ;;  %vm1341_vm10 = vweird.f32 %v1319_v63 }
 0x3a6   :  { %vm1331_vm13 = vcmp.eq.f32.partialorder %v1330_v26, 8.507059e+37  ;;  %v4043_v26 = vld [vmem:[#allocation18_spill] sm:$0xff] }
 0x3a7   :  { %v1348_v34 = vor.u32 1.1754944e-38, %v1347_v9  ;;  %vm1346_vm14 = vcmp.eq.f32.partialorder %v1345_v42, 8.507059e+37 }
 0x3a8   :  { %v2279_v36 = vpop.eup %2278 }
 0x3a9   :  { %v1320_v41 = vadd.f32 1.0, %v2279_v36  ;;  %v1333_v36 = vor.u32 1.1754944e-38, %v1332_v43 }
 0x3aa   :  { %v2281_v50 = vpop.eup %2280 }
 0x3ab   :  { %v2283_v49 = vpop.eup %2282  ;;  %v1322_v21 = vmul.f32 %v2281_v50, %v1318_v55  ;;  %2284 = vrcp.f32 %v1320_v41  ;;  %vm1327_vm7 = vweird.f32 %v2281_v50  ;;  %vm1356_vm0 = vweird.f32 %v1320_v41 }
 0x3ac   :  { %v1337_v51 = vmul.f32 %v2283_v49, %v1319_v63  ;;  %2286 = vtanh.f32 %v1308_v32  ;;  %vm1342_vm8 = vweird.f32 %v2283_v49  ;;  %vm1328_vm11 = vmor %vm1326_vm9, %vm1327_vm7 }
 0x3ad   :  { %v1323_v3 = vsub.f32 1.0, %v1322_v21  ;;  %vm1343_vm12 = vmor %vm1341_vm10, %vm1342_vm8 }
 0x3ae   :  { %v1338_v33 = vsub.f32 1.0, %v1337_v51 }
 0x3af   :  { %v1324_v28 = vmul.f32 %v2281_v50, %v1323_v3 }
 0x3b0   :  { %v1339_v52 = vmul.f32 %v2283_v49, %v1338_v33 }
 0x3b1   :  { %v2285_v27 = vpop.eup %2284  ;;  %v1325_v59 = vadd.f32 %v2281_v50, %v1324_v28 }
 0x3b2   :  { %v1352_v57 = vmul.f32 %v2285_v27, %v1320_v41  ;;  %v1340_v38 = vadd.f32 %v2283_v49, %v1339_v52  ;;  %v2287_v32 = vpop.eup %2286  ;;  %vm1357_vm15 = vweird.f32 %v2285_v27  ;;  %v1362_v52 = vand.u32 2147483648, %v1320_v41 }
 0x3b3   :  { %v1329_v21 = vsel %vm1328_vm11, %v2281_v50, %v1325_v59  ;;  %v1360_v50 = vand.u32 2147483647, %v1320_v41  ;;  %vm1358_vm1 = vmor %vm1356_vm0, %vm1357_vm15  ;;  %v4042_v41 = vld [vmem:[#allocation16_spill] sm:$0xff]  ;;  %v4044_v59 = vld [vmem:[#allocation17_spill] sm:$0xff] }
 0x3b4   :  { %v1353_v51 = vsub.f32 1.0, %v1352_v57  ;;  %v1334_v3 = vsel %vm1331_vm13, %v1333_v36, %v1329_v21  ;;  %v1344_v20 = vsel %vm1343_vm12, %v2283_v49, %v1340_v38  ;;  %v1363_v9 = vor.u32 1.1754944e-38, %v1362_v52  ;;  %v4045_v57 = vld [vmem:[#allocation27_spill] sm:$0xff]  ;;  %v4046_v36 = vld [vmem:[#allocation25_spill] sm:$0xff] }
 0x3b5   :  { %v1349_v33 = vsel %vm1346_vm14, %v1348_v34, %v1344_v20  ;;  %v1368_v18 = vmul.f32 %v2287_v32, %v1334_v3  ;;  %vm1361_vm2 = vcmp.eq.f32.partialorder %v1360_v50, 8.507059e+37  ;;  %v4047_v38 = vld [vmem:[#allocation19_spill] sm:$0xff]  ;;  %v4048_v34 = vld [vmem:[#allocation28_spill] sm:$0xff]  ;;  %v4049_v21 = vld [vmem:[#allocation29_spill] sm:$0xff] }
 0x3b6   :  { %v1367_v45 = vmul.f32 %v1349_v33, %v3462_v30  ;;  %v1354_v28 = vmul.f32 %v2285_v27, %v1353_v51  ;;  %v4038_v30 = vld [vmem:[#allocation44_spill] sm:$0xff]  ;;  %v4050_v32 = vld [vmem:[#allocation26_spill] sm:$0xff]  ;;  %v4056_v52 = vld [vmem:[#allocation21_spill] sm:$0xff] }
 0x3b7   :  { %v4051_v51 = vld [vmem:[#allocation20_spill] sm:$0xff]  ;;  %v4053_v33 = vld [vmem:[#allocation30_spill] sm:$0xff] }
 0x3b8   :  { %v3543_v55 = vadd.f32 %v1368_v18, %v1367_v45  ;;  %v1355_v63 = vadd.f32 %v2285_v27, %v1354_v28  ;;  %v4039_v45 = vld [vmem:[#allocation15_spill] sm:$0xff]  ;;  %v4040_v18 = vld [vmem:[#allocation10_spill] sm:$0xff]  ;;  %v4052_v3 = vld [vmem:[#allocation32_spill] sm:$0xff] }
 0x3b9   :  { %v4054_v28 = vld [vmem:[#allocation38_spill] sm:$0xff]  ;;  %v4057_v50 = vld [vmem:[#allocation36_spill] sm:$0xff] }
 0x3ba   :  { %2288 = vtanh.f32 %v3543_v55  ;;  %v1359_v43 = vsel %vm1358_vm1, %v2285_v27, %v1355_v63  ;;  %v4041_v27 = vld [vmem:[#allocation11_spill] sm:$0xff] }
 0x3bb   :  { %v1364_v42 = vsel %vm1361_vm2, %v1363_v9, %v1359_v43  ;;  %v4055_v63 = vld [vmem:[#allocation31_spill] sm:$0xff]  ;;  %v4059_v9 = vld [vmem:[#allocation34_spill] sm:$0xff] }
 0x3bc   :  { %v4058_v43 = vld [vmem:[#allocation35_spill] sm:$0xff] }
 0x3c0   :  { %v2289_v49 = vpop.eup %2288 }
 0x3c1   :  { %v1371_v20 = vmul.f32 %v2289_v49, %v1364_v42  ;;  %v4060_v49 = vld [vmem:[#allocation33_spill] sm:$0xff]  ;;  %v4061_v42 = vld [vmem:[#allocation22_spill] sm:$0xff] }
 0x3c3   :  { %1400 = vmatmul.f32.vlgmr.msra.gmra.mxu0 %v1371_v20  ;;  %1420 = vmatmul.f32.vlgmr.msra.gmra.mxu1 %v1371_v20 }
 0x3c4   :  { %1440 = vmatmul.f32.vlgmr.msrb.gmra.mxu2 %v1371_v20  ;;  %1460 = vmatmul.f32.vlgmr.msra.gmra.mxu3 %v1371_v20  ;;  %v4062_v20 = vld [vmem:[#allocation23_spill] sm:$0xff] }
 0x3c5   :  { %1702 = vmatpush.msra.mxu0 %v3267_v60  ;;  %1722 = vmatpush.msra.mxu1 %v3270_v47 }
 0x3c6   :  { %1742 = vmatpush.msrb.mxu2 %v3273_v44  ;;  %1762 = vmatpush.msra.mxu3 %v3276_v56 }
 0x3c7   :  { %1703 = vmatpush.msra.mxu0 %v3279_v29  ;;  %1723 = vmatpush.msra.mxu1 %v3282_v25 }
 0x3c8   :  { %1743 = vmatpush.msrb.mxu2 %v3285_v37  ;;  %1763 = vmatpush.msra.mxu3 %v3288_v61 }
 0x3c9   :  { %1704 = vmatpush.msra.mxu0 %v3291_v24  ;;  %1724 = vmatpush.msra.mxu1 %v3294_v31 }
 0x3ca   :  { %1744 = vmatpush.msrb.mxu2 %v3297_v23  ;;  %1764 = vmatpush.msra.mxu3 %v3300_v48 }
 0x3cb   :  { %1705 = vmatpush.msra.mxu0 %v3303_v6  ;;  %1725 = vmatpush.msra.mxu1 %v3306_v54 }
 0x3cc   :  { %1745 = vmatpush.msrb.mxu2 %v3309_v40  ;;  %1765 = vmatpush.msra.mxu3 %v3312_v62 }
 0x3cd   :  { %1706 = vmatpush.msra.mxu0 %v3315_v19  ;;  %1726 = vmatpush.msra.mxu1 %v3318_v15 }
 0x3ce   :  { %1746 = vmatpush.msrb.mxu2 %v3321_v53  ;;  %1766 = vmatpush.msra.mxu3 %v3324_v39 }
 0x3cf   :  { %1707 = vmatpush.msra.mxu0 %v3327_v22  ;;  %1727 = vmatpush.msra.mxu1 %v3330_v58 }
 0x3d0   :  { %1747 = vmatpush.msrb.mxu2 %v3333_v13  ;;  %1767 = vmatpush.msra.mxu3 %v3336_v46 }
 0x3d1   :  { %1708 = vmatpush.msra.mxu0 %v3339_v0  ;;  %1728 = vmatpush.msra.mxu1 %v3342_v4 }
 0x3d2   :  { %1748 = vmatpush.msrb.mxu2 %v3345_v1  ;;  %1768 = vmatpush.msra.mxu3 %v3348_v2 }
 0x3d3   :  { %1709 = vmatpush.msra.mxu0 %v3351_v5  ;;  %1729 = vmatpush.msra.mxu1 %v3354_v7 }
 0x3d4   :  { %1749 = vmatpush.msrb.mxu2 %v3357_v8  ;;  %1769 = vmatpush.msra.mxu3 %v3360_v10 }
 0x3d5   :  { %1710 = vmatpush.msra.mxu0 %v3363_v11  ;;  %1730 = vmatpush.msra.mxu1 %v3366_v12 }
 0x3d6   :  { %1750 = vmatpush.msrb.mxu2 %v3369_v35  ;;  %1770 = vmatpush.msra.mxu3 %v3372_v14 }
 0x3d7   :  { %1711 = vmatpush.msra.mxu0 %v3375_v16  ;;  %1731 = vmatpush.msra.mxu1 %v3378_v17 }
 0x3d8   :  { %1751 = vmatpush.msrb.mxu2 %v4038_v30  ;;  %1771 = vmatpush.msra.mxu3 %v4039_v45 }
 0x3d9   :  { %1712 = vmatpush.msra.mxu0 %v4040_v18  ;;  %1732 = vmatpush.msra.mxu1 %v4041_v27 }
 0x3da   :  { %1752 = vmatpush.msrb.mxu2 %v4042_v41  ;;  %1772 = vmatpush.msra.mxu3 %v4043_v26 }
 0x3db   :  { %1713 = vmatpush.msra.mxu0 %v4044_v59  ;;  %1733 = vmatpush.msra.mxu1 %v4045_v57 }
 0x3dc   :  { %1753 = vmatpush.msrb.mxu2 %v4046_v36  ;;  %1773 = vmatpush.msra.mxu3 %v4047_v38 }
 0x3dd   :  { %1714 = vmatpush.msra.mxu0 %v4048_v34  ;;  %1734 = vmatpush.msra.mxu1 %v4049_v21 }
 0x3de   :  { %1754 = vmatpush.msrb.mxu2 %v4050_v32  ;;  %1774 = vmatpush.msra.mxu3 %v4051_v51  ;;  %v4064_v51 = vld [vmem:[#allocation67_spill] sm:$0xff]  ;;  %v4065_v32 = vld [vmem:[#allocation61_spill] sm:$0xff] }
 0x3df   :  { %1715 = vmatpush.msra.mxu0 %v4052_v3  ;;  %1735 = vmatpush.msra.mxu1 %v4053_v33  ;;  %v4063_v3 = vld [vmem:[#allocation40_spill] sm:$0xff] }
 0x3e0   :  { %1755 = vmatpush.msrb.mxu2 %v4054_v28  ;;  %1775 = vmatpush.msra.mxu3 %v4055_v63 }
 0x3e1   :  { %1716 = vmatpush.msra.mxu0 %v4056_v52  ;;  %1736 = vmatpush.msra.mxu1 %v4057_v50 }
 0x3e2   :  { %1756 = vmatpush.msrb.mxu2 %v4058_v43  ;;  %1776 = vmatpush.msra.mxu3 %v4059_v9  ;;  %v4066_v9 = vld [vmem:[#allocation72_spill] sm:$0xff] }
 0x3e3   :  { %1717 = vmatpush.msra.mxu0 %v4060_v49  ;;  %1737 = vmatpush.msra.mxu1 %v4061_v42 }
 0x3e4   :  { %1757 = vmatpush.msrb.mxu2 %v4062_v20  ;;  %1777 = vmatpush.msra.mxu3 %v4063_v3 }
 0x440   :  { %v1401_v33 = vpop.f32.mrf.mxu0  ;;  %v1421_v28 = vpop.f32.mrf.mxu1 }
 0x441   :  { %v1464_v63 = vadd.f32 %v1401_v33, %v4064_v51  ;;  %v1465_v52 = vadd.f32 %v1421_v28, %v4065_v32  ;;  %v4067_v32 = vld [vmem:[#allocation69_spill] sm:$0xff] }
 0x443   :  { %v2182_v21 = vmul.f32 -1.442695, %v1464_v63  ;;  %v2183_v50 = vmul.f32 -1.442695, %v1465_v52 }
 0x445   :  { %2290 = vpow2.f32 %v2182_v21 }
 0x446   :  { %2292 = vpow2.f32 %v2183_v50 }
 0x447   :  { %v1441_v43 = vpop.f32.mrf.mxu2  ;;  %v1461_v3 = vpop.f32.mrf.mxu3 }
 0x448   :  { %v1466_v34 = vadd.f32 %v1441_v43, %v4066_v9  ;;  %v1467_v28 = vadd.f32 %v1461_v3, %v4067_v32 }
 0x44a   :  { %v2184_v49 = vmul.f32 -1.442695, %v1466_v34 }
 0x44b   :  { %v2291_v38 = vpop.eup %2290 }
 0x44c   :  { %v2293_v42 = vpop.eup %2292  ;;  %v1477_v36 = vadd.f32 1.0, %v2291_v38  ;;  %2294 = vpow2.f32 %v2184_v49 }
 0x44d   :  { %v1478_v20 = vadd.f32 1.0, %v2293_v42 }
 0x44e   :  { %2296 = vrcp.f32 %v1477_v36  ;;  %v1491_v34 = vand.u32 2147483648, %v1477_v36  ;;  %v1489_v49 = vand.u32 2147483647, %v1477_v36  ;;  %vm1485_vm5 = vweird.f32 %v1477_v36 }
 0x44f   :  { %2298 = vrcp.f32 %v1478_v20  ;;  %v1506_v9 = vand.u32 2147483648, %v1478_v20  ;;  %v1504_v59 = vand.u32 2147483647, %v1478_v20  ;;  %vm1500_vm6 = vweird.f32 %v1478_v20 }
 0x450   :  { %v1492_v32 = vor.u32 1.1754944e-38, %v1491_v34  ;;  %vm1490_vm9 = vcmp.eq.f32.partialorder %v1489_v49, 8.507059e+37 }
 0x451   :  { %vm1505_vm10 = vcmp.eq.f32.partialorder %v1504_v59, 8.507059e+37 }
 0x452   :  { %v2295_v57 = vpop.eup %2294 }
 0x453   :  { %v1479_v51 = vadd.f32 1.0, %v2295_v57 }
 0x454   :  { %v2297_v33 = vpop.eup %2296 }
 0x455   :  { %v2299_v63 = vpop.eup %2298  ;;  %v1481_v21 = vmul.f32 %v2297_v33, %v1477_v36  ;;  %2300 = vrcp.f32 %v1479_v51  ;;  %vm1486_vm3 = vweird.f32 %v2297_v33  ;;  %v1521_v34 = vand.u32 2147483648, %v1479_v51 }
 0x456   :  { %v1496_v52 = vmul.f32 %v2299_v63, %v1478_v20  ;;  %2302 = vtanh.f32 %v1467_v28  ;;  %vm1501_vm4 = vweird.f32 %v2299_v63  ;;  %vm1487_vm7 = vmor %vm1485_vm5, %vm1486_vm3  ;;  %vm1515_vm12 = vweird.f32 %v1479_v51 }
 0x457   :  { %v1482_v50 = vsub.f32 1.0, %v1481_v21  ;;  %vm1502_vm8 = vmor %vm1500_vm6, %vm1501_vm4  ;;  %v1507_v21 = vor.u32 1.1754944e-38, %v1506_v9  ;;  %v1522_v49 = vor.u32 1.1754944e-38, %v1521_v34 }
 0x458   :  { %v1497_v43 = vsub.f32 1.0, %v1496_v52 }
 0x459   :  { %v1483_v38 = vmul.f32 %v2297_v33, %v1482_v50 }
 0x45a   :  { %v1498_v42 = vmul.f32 %v2299_v63, %v1497_v43 }
 0x45b   :  { %v2301_v26 = vpop.eup %2300  ;;  %v1484_v57 = vadd.f32 %v2297_v33, %v1483_v38 }
 0x45c   :  { %v1511_v3 = vmul.f32 %v2301_v26, %v1479_v51  ;;  %v1499_v41 = vadd.f32 %v2299_v63, %v1498_v42  ;;  %v2303_v28 = vpop.eup %2302  ;;  %vm1516_vm11 = vweird.f32 %v2301_v26 }
 0x45d   :  { %v1488_v52 = vsel %vm1487_vm7, %v2297_v33, %v1484_v57  ;;  %v1519_v33 = vand.u32 2147483647, %v1479_v51  ;;  %vm1517_vm13 = vmor %vm1515_vm12, %vm1516_vm11  ;;  %v4097_v57 = vld [vmem:[#allocation66_spill] sm:$0xff] }
 0x45e   :  { %v1512_v27 = vsub.f32 1.0, %v1511_v3  ;;  %v1493_v50 = vsel %vm1490_vm9, %v1492_v32, %v1488_v52  ;;  %v1503_v18 = vsel %vm1502_vm8, %v2299_v63, %v1499_v41 }
 0x45f   :  { %v1508_v43 = vsel %vm1505_vm10, %v1507_v21, %v1503_v18  ;;  %v1527_v45 = vmul.f32 %v2303_v28, %v1493_v50  ;;  %vm1520_vm14 = vcmp.eq.f32.partialorder %v1519_v33, 8.507059e+37 }
 0x460   :  { %v1526_v30 = vmul.f32 %v1508_v43, %v3543_v55  ;;  %v1513_v38 = vmul.f32 %v2301_v26, %v1512_v27 }
 0x462   :  { %v3615_v36 = vadd.f32 %v1527_v45, %v1526_v30  ;;  %v1514_v20 = vadd.f32 %v2301_v26, %v1513_v38 }
 0x464   :  { %2304 = vtanh.f32 %v3615_v36  ;;  %v1518_v9 = vsel %vm1517_vm13, %v2301_v26, %v1514_v20 }
 0x465   :  { %v1523_v59 = vsel %vm1520_vm14, %v1522_v49, %v1518_v9 }
 0x46a   :  { %v2305_v41 = vpop.eup %2304 }
 0x46b   :  { %v1530_v18 = vmul.f32 %v2305_v41, %v1523_v59 }
 0x46d   :  { %1559 = vmatmul.f32.vlgmr.msrb.gmra.mxu0 %v1530_v18  ;;  %1579 = vmatmul.f32.vlgmr.msrb.gmra.mxu1 %v1530_v18 }
 0x46e   :  { %1599 = vmatmul.f32.vlgmr.msra.gmra.mxu2 %v1530_v18  ;;  %1619 = vmatmul.f32.vlgmr.msrb.gmra.mxu3 %v1530_v18 }
 0x46f   :  { %1861 = vmatpush.msrb.mxu0 %v3267_v60  ;;  %1881 = vmatpush.msrb.mxu1 %v3270_v47  ;;  %v4068_v60 = vld [vmem:[#allocation44_spill] sm:$0xff]  ;;  %v4069_v47 = vld [vmem:[#allocation15_spill] sm:$0xff] }
 0x470   :  { %1901 = vmatpush.msra.mxu2 %v3273_v44  ;;  %1921 = vmatpush.msrb.mxu3 %v3276_v56  ;;  %v4070_v44 = vld [vmem:[#allocation10_spill] sm:$0xff]  ;;  %v4071_v56 = vld [vmem:[#allocation11_spill] sm:$0xff] }
 0x471   :  { %1862 = vmatpush.msrb.mxu0 %v3279_v29  ;;  %1882 = vmatpush.msrb.mxu1 %v3282_v25  ;;  %v4072_v29 = vld [vmem:[#allocation16_spill] sm:$0xff]  ;;  %v4073_v25 = vld [vmem:[#allocation18_spill] sm:$0xff] }
 0x472   :  { %1902 = vmatpush.msra.mxu2 %v3285_v37  ;;  %1922 = vmatpush.msrb.mxu3 %v3288_v61  ;;  %v4074_v37 = vld [vmem:[#allocation17_spill] sm:$0xff]  ;;  %v4075_v61 = vld [vmem:[#allocation27_spill] sm:$0xff] }
 0x473   :  { %1863 = vmatpush.msrb.mxu0 %v3291_v24  ;;  %1883 = vmatpush.msrb.mxu1 %v3294_v31  ;;  %v4076_v24 = vld [vmem:[#allocation25_spill] sm:$0xff]  ;;  %v4077_v31 = vld [vmem:[#allocation19_spill] sm:$0xff] }
 0x474   :  { %1903 = vmatpush.msra.mxu2 %v3297_v23  ;;  %1923 = vmatpush.msrb.mxu3 %v3300_v48  ;;  %v4078_v23 = vld [vmem:[#allocation28_spill] sm:$0xff]  ;;  %v4079_v48 = vld [vmem:[#allocation29_spill] sm:$0xff] }
 0x475   :  { %1864 = vmatpush.msrb.mxu0 %v3303_v6  ;;  %1884 = vmatpush.msrb.mxu1 %v3306_v54  ;;  %v4080_v6 = vld [vmem:[#allocation26_spill] sm:$0xff]  ;;  %v4081_v54 = vld [vmem:[#allocation20_spill] sm:$0xff] }
 0x476   :  { %1904 = vmatpush.msra.mxu2 %v3309_v40  ;;  %1924 = vmatpush.msrb.mxu3 %v3312_v62  ;;  %v4082_v40 = vld [vmem:[#allocation32_spill] sm:$0xff]  ;;  %v4083_v62 = vld [vmem:[#allocation30_spill] sm:$0xff] }
 0x477   :  { %1865 = vmatpush.msrb.mxu0 %v3315_v19  ;;  %1885 = vmatpush.msrb.mxu1 %v3318_v15  ;;  %v4084_v19 = vld [vmem:[#allocation38_spill] sm:$0xff]  ;;  %v4085_v15 = vld [vmem:[#allocation31_spill] sm:$0xff] }
 0x478   :  { %1905 = vmatpush.msra.mxu2 %v3321_v53  ;;  %1925 = vmatpush.msrb.mxu3 %v3324_v39  ;;  %v4086_v53 = vld [vmem:[#allocation21_spill] sm:$0xff]  ;;  %v4087_v39 = vld [vmem:[#allocation36_spill] sm:$0xff] }
 0x479   :  { %1866 = vmatpush.msrb.mxu0 %v3327_v22  ;;  %1886 = vmatpush.msrb.mxu1 %v3330_v58  ;;  %v4088_v22 = vld [vmem:[#allocation35_spill] sm:$0xff]  ;;  %v4089_v58 = vld [vmem:[#allocation34_spill] sm:$0xff] }
 0x47a   :  { %1906 = vmatpush.msra.mxu2 %v3333_v13  ;;  %1926 = vmatpush.msrb.mxu3 %v3336_v46  ;;  %v4090_v13 = vld [vmem:[#allocation33_spill] sm:$0xff]  ;;  %v4091_v46 = vld [vmem:[#allocation22_spill] sm:$0xff] }
 0x47b   :  { %1867 = vmatpush.msrb.mxu0 %v3339_v0  ;;  %1887 = vmatpush.msrb.mxu1 %v3342_v4  ;;  %v4092_v0 = vld [vmem:[#allocation23_spill] sm:$0xff]  ;;  %v4093_v4 = vld [vmem:[#allocation40_spill] sm:$0xff] }
 0x47c   :  { %1907 = vmatpush.msra.mxu2 %v3345_v1  ;;  %1927 = vmatpush.msrb.mxu3 %v3348_v2 }
 0x47d   :  { %1868 = vmatpush.msrb.mxu0 %v3351_v5  ;;  %1888 = vmatpush.msrb.mxu1 %v3354_v7  ;;  %v4094_v5 = vld [vmem:[#allocation63_spill] sm:$0xff] }
 0x47e   :  { %1908 = vmatpush.msra.mxu2 %v3357_v8  ;;  %1928 = vmatpush.msrb.mxu3 %v3360_v10  ;;  %v4095_v8 = vld [vmem:[#allocation58_spill] sm:$0xff] }
 0x47f   :  { %1869 = vmatpush.msrb.mxu0 %v3363_v11  ;;  %1889 = vmatpush.msrb.mxu1 %v3366_v12 }
 0x480   :  { %1909 = vmatpush.msra.mxu2 %v3369_v35  ;;  %1929 = vmatpush.msrb.mxu3 %v3372_v14  ;;  %v4096_v14 = vld [vmem:[#allocation71_spill] sm:$0xff] }
 0x481   :  { %1870 = vmatpush.msrb.mxu0 %v3375_v16  ;;  %1890 = vmatpush.msrb.mxu1 %v3378_v17 }
 0x482   :  { %1910 = vmatpush.msra.mxu2 %v4068_v60  ;;  %1930 = vmatpush.msrb.mxu3 %v4069_v47 }
 0x483   :  { %1871 = vmatpush.msrb.mxu0 %v4070_v44  ;;  %1891 = vmatpush.msrb.mxu1 %v4071_v56 }
 0x484   :  { %1911 = vmatpush.msra.mxu2 %v4072_v29  ;;  %1931 = vmatpush.msrb.mxu3 %v4073_v25 }
 0x485   :  { %1872 = vmatpush.msrb.mxu0 %v4074_v37  ;;  %1892 = vmatpush.msrb.mxu1 %v4075_v61 }
 0x486   :  { %1912 = vmatpush.msra.mxu2 %v4076_v24  ;;  %1932 = vmatpush.msrb.mxu3 %v4077_v31 }
 0x487   :  { %1873 = vmatpush.msrb.mxu0 %v4078_v23  ;;  %1893 = vmatpush.msrb.mxu1 %v4079_v48 }
 0x488   :  { %1913 = vmatpush.msra.mxu2 %v4080_v6  ;;  %1933 = vmatpush.msrb.mxu3 %v4081_v54 }
 0x489   :  { %1874 = vmatpush.msrb.mxu0 %v4082_v40  ;;  %1894 = vmatpush.msrb.mxu1 %v4083_v62 }
 0x48a   :  { %1914 = vmatpush.msra.mxu2 %v4084_v19  ;;  %1934 = vmatpush.msrb.mxu3 %v4085_v15 }
 0x48b   :  { %1875 = vmatpush.msrb.mxu0 %v4086_v53  ;;  %1895 = vmatpush.msrb.mxu1 %v4087_v39 }
 0x48c   :  { %1915 = vmatpush.msra.mxu2 %v4088_v22  ;;  %1935 = vmatpush.msrb.mxu3 %v4089_v58  ;;  %v4099_v22 = vld [vmem:[#allocation56_spill] sm:$0xff] }
 0x48d   :  { %1876 = vmatpush.msrb.mxu0 %v4090_v13  ;;  %1896 = vmatpush.msrb.mxu1 %v4091_v46 }
 0x48e   :  { %1916 = vmatpush.msra.mxu2 %v4092_v0  ;;  %1936 = vmatpush.msrb.mxu3 %v4093_v4  ;;  %v4100_v0 = vld [vmem:[#allocation60_spill] sm:$0xff] }
 0x4ea   :  { %v1560_v1 = vpop.f32.mrf.mxu0  ;;  %v1580_v2 = vpop.f32.mrf.mxu1 }
 0x4eb   :  { %v1623_v7 = vadd.f32 %v1560_v1, %v4094_v5  ;;  %v1624_v10 = vadd.f32 %v1580_v2, %v4095_v8  ;;  %v4101_v8 = vld [vmem:[#allocation68_spill] sm:$0xff] }
 0x4ed   :  { %v2185_v11 = vmul.f32 -1.442695, %v1623_v7  ;;  %v2186_v12 = vmul.f32 -1.442695, %v1624_v10 }
 0x4ef   :  { %2306 = vpow2.f32 %v2185_v11 }
 0x4f0   :  { %2308 = vpow2.f32 %v2186_v12 }
 0x4f1   :  { %v1600_v35 = vpop.f32.mrf.mxu2  ;;  %v1620_v26 = vpop.f32.mrf.mxu3 }
 0x4f2   :  { %v1625_v16 = vadd.f32 %v1600_v35, %v4096_v14  ;;  %v1626_v3 = vadd.f32 %v1620_v26, %v4097_v57 }
 0x4f4   :  { %v2187_v17 = vmul.f32 -1.442695, %v1625_v16 }
 0x4f5   :  { %v2307_v55 = vpop.eup %2306 }
 0x4f6   :  { %v2309_v30 = vpop.eup %2308  ;;  %v1636_v45 = vadd.f32 1.0, %v2307_v55  ;;  %2310 = vpow2.f32 %v2187_v17 }
 0x4f7   :  { %v1637_v27 = vadd.f32 1.0, %v2309_v30 }
 0x4f8   :  { %2312 = vrcp.f32 %v1636_v45  ;;  %v1650_v43 = vand.u32 2147483648, %v1636_v45  ;;  %v1648_v34 = vand.u32 2147483647, %v1636_v45  ;;  %vm1644_vm1 = vweird.f32 %v1636_v45 }
 0x4f9   :  { %2314 = vrcp.f32 %v1637_v27  ;;  %v1665_v38 = vand.u32 2147483648, %v1637_v27  ;;  %v1663_v9 = vand.u32 2147483647, %v1637_v27  ;;  %vm1659_vm2 = vweird.f32 %v1637_v27 }
 0x4fa   :  { %v1651_v18 = vor.u32 1.1754944e-38, %v1650_v43  ;;  %vm1649_vm5 = vcmp.eq.f32.partialorder %v1648_v34, 8.507059e+37 }
 0x4fb   :  { %v1666_v47 = vor.u32 1.1754944e-38, %v1665_v38  ;;  %vm1664_vm6 = vcmp.eq.f32.partialorder %v1663_v9, 8.507059e+37 }
 0x4fc   :  { %v2311_v51 = vpop.eup %2310 }
 0x4fd   :  { %v1638_v63 = vadd.f32 1.0, %v2311_v51 }
 0x4fe   :  { %v2313_v42 = vpop.eup %2312 }
 0x4ff   :  { %v2315_v32 = vpop.eup %2314  ;;  %v1640_v21 = vmul.f32 %v2313_v42, %v1636_v45  ;;  %2316 = vrcp.f32 %v1638_v63  ;;  %vm1645_vm15 = vweird.f32 %v2313_v42  ;;  %v1680_v54 = vand.u32 2147483648, %v1638_v63 }
 0x500   :  { %v1655_v52 = vmul.f32 %v2315_v32, %v1637_v27  ;;  %2318 = vtanh.f32 %v1626_v3  ;;  %vm1660_vm0 = vweird.f32 %v2315_v32  ;;  %vm1646_vm3 = vmor %vm1644_vm1, %vm1645_vm15  ;;  %vm1674_vm8 = vweird.f32 %v1638_v63  ;;  %v4102_v27 = vld [vmem:[#allocation62_spill] sm:$0xff] }
 0x501   :  { %v1641_v28 = vsub.f32 1.0, %v1640_v21  ;;  %vm1661_vm4 = vmor %vm1659_vm2, %vm1660_vm0  ;;  %v1678_v40 = vand.u32 2147483647, %v1638_v63  ;;  %v1681_v19 = vor.u32 1.1754944e-38, %v1680_v54 }
 0x502   :  { %v1656_v50 = vsub.f32 1.0, %v1655_v52 }
 0x503   :  { %v1642_v20 = vmul.f32 %v2313_v42, %v1641_v28  ;;  %vm1679_vm10 = vcmp.eq.f32.partialorder %v1678_v40, 8.507059e+37 }
 0x504   :  { %v1657_v33 = vmul.f32 %v2315_v32, %v1656_v50 }
 0x505   :  { %v2317_v49 = vpop.eup %2316  ;;  %v1643_v41 = vadd.f32 %v2313_v42, %v1642_v20 }
 0x506   :  { %v1670_v59 = vmul.f32 %v2317_v49, %v1638_v63  ;;  %v1658_v60 = vadd.f32 %v2315_v32, %v1657_v33  ;;  %v2319_v56 = vpop.eup %2318  ;;  %vm1675_vm7 = vweird.f32 %v2317_v49 }
 0x507   :  { %v1647_v44 = vsel %vm1646_vm3, %v2313_v42, %v1643_v41  ;;  %vm1676_vm9 = vmor %vm1674_vm8, %vm1675_vm7  ;;  %vm2026_vm7 = vcmask 64512  }
 0x508   :  { %v1671_v29 = vsub.f32 1.0, %v1670_v59  ;;  %v1652_v25 = vsel %vm1649_vm5, %v1651_v18, %v1647_v44  ;;  %v1662_v37 = vsel %vm1661_vm4, %v2315_v32, %v1658_v60 }
 0x509   :  { %v1667_v61 = vsel %vm1664_vm6, %v1666_v47, %v1662_v37  ;;  %v1686_v24 = vmul.f32 %v2319_v56, %v1652_v25 }
 0x50a   :  { %v1685_v31 = vmul.f32 %v1667_v61, %v3615_v36  ;;  %v1672_v23 = vmul.f32 %v2317_v49, %v1671_v29  ;;  %v4098_v36 = vld [vmem:[#allocation46_spill] sm:$0xff] }
 0x50b   :  { %v1699_v58 = vadd.f32 %v4099_v22, %v4098_v36  ;;  %v2018_v36 = vld [vmem:[%s3767_s5 + $0x50] sm:$0xff]  ;;  %v2017_v22 = vld [vmem:[%s3767_s5 + $0x48] sm:$0xff] }
 0x50c   :  { %v3687_v48 = vadd.f32 %v1686_v24, %v1685_v31  ;;  %v1673_v6 = vadd.f32 %v2317_v49, %v1672_v23 }
 0x50e   :  { %2320 = vtanh.f32 %v3687_v48  ;;  %v1677_v62 = vsel %vm1676_vm9, %v2317_v49, %v1673_v6 }
 0x50f   :  { %v1682_v53 = vsel %vm1679_vm10, %v1681_v19, %v1677_v62  ;;  %v2022_v19 = vld [vmem:[%s3767_s5 + $0x70] sm:$0xff] }
 0x514   :  { %v2321_v15 = vpop.eup %2320 }
 0x515   :  { %v1689_v39 = vmul.f32 %v2321_v15, %v1682_v53  ;;  %v2021_v15 = vld [vmem:[%s3767_s5 + $0x68] sm:$0xff]  ;;  %v2020_v53 = vld [vmem:[%s3767_s5 + $0x60] sm:$0xff] }
 0x517   :  { %1718 = vmatmul.f32.vlgmr.msra.gmra.mxu0 %v1689_v39  ;;  %1738 = vmatmul.f32.vlgmr.msra.gmra.mxu1 %v1689_v39 }
 0x518   :  { %1758 = vmatmul.f32.vlgmr.msrb.gmra.mxu2 %v1689_v39  ;;  %1778 = vmatmul.f32.vlgmr.msra.gmra.mxu3 %v1689_v39  ;;  %v2019_v39 = vld [vmem:[%s3767_s5 + $0x58] sm:$0xff] }
 0x594   :  { %v1719_v13 = vpop.f32.mrf.mxu0  ;;  %v1739_v46 = vpop.f32.mrf.mxu1 }
 0x595   :  { %v1782_v4 = vadd.f32 %v1719_v13, %v4100_v0  ;;  %v1783_v1 = vadd.f32 %v1739_v46, %v1699_v58  ;;  %v2016_v58 = vld [vmem:[%s3767_s5 + $0x40] sm:$0xff]  ;;  %v2015_v13 = vld [vmem:[%s3767_s5 + $0x38] sm:$0xff]  ;;  %v4104_v0 = vld [vmem:[#allocation55_spill] sm:$0xff] }
 0x596   :  { %v4103_v46 = vld [vmem:[#allocation49_spill] sm:$0xff] }
 0x597   :  { %v2188_v2 = vmul.f32 -1.442695, %v1782_v4  ;;  %v2189_v5 = vmul.f32 -1.442695, %v1783_v1  ;;  %v1858_v4 = vadd.f32 %v4104_v0, %v4103_v46  ;;  %v2014_v1 = vld [vmem:[%s3767_s5 + $0x30] sm:$0xff] }
 0x599   :  { %2322 = vpow2.f32 %v2188_v2 }
 0x59a   :  { %2324 = vpow2.f32 %v2189_v5 }
 0x59b   :  { %v1759_v7 = vpop.f32.mrf.mxu2  ;;  %v1779_v17 = vpop.f32.mrf.mxu3 }
 0x59c   :  { %v1784_v10 = vadd.f32 %v1759_v7, %v4101_v8  ;;  %v1785_v26 = vadd.f32 %v1779_v17, %v4102_v27  ;;  %v4105_v7 = vld [vmem:[#allocation57_spill] sm:$0xff]  ;;  %v2011_v17 = vld [vmem:[%s3767_s5 + $0x18] sm:$0xff]  ;;  %v2009_v27 = vld [vmem:[%s3767_s5 + $0x8] sm:$0xff] }
 0x59e   :  { %v2190_v11 = vmul.f32 -1.442695, %v1784_v10 }
 0x59f   :  { %v2323_v12 = vpop.eup %2322 }
 0x5a0   :  { %v2325_v35 = vpop.eup %2324  ;;  %v1795_v14 = vadd.f32 1.0, %v2323_v12  ;;  %2326 = vpow2.f32 %v2190_v11  ;;  %v2013_v11 = vld [vmem:[%s3767_s5 + $0x28] sm:$0xff] }
 0x5a1   :  { %v1796_v16 = vadd.f32 1.0, %v2325_v35 }
 0x5a2   :  { %2328 = vrcp.f32 %v1795_v14  ;;  %v1809_v32 = vand.u32 2147483648, %v1795_v14  ;;  %v1807_v28 = vand.u32 2147483647, %v1795_v14  ;;  %vm1803_vm13 = vweird.f32 %v1795_v14 }
 0x5a3   :  { %2330 = vrcp.f32 %v1796_v16  ;;  %v1824_v21 = vand.u32 2147483648, %v1796_v16  ;;  %v1822_v43 = vand.u32 2147483647, %v1796_v16  ;;  %vm1818_vm14 = vweird.f32 %v1796_v16 }
 0x5a4   :  { %v1810_v33 = vor.u32 1.1754944e-38, %v1809_v32  ;;  %vm1808_vm1 = vcmp.eq.f32.partialorder %v1807_v28, 8.507059e+37 }
 0x5a5   :  { %v1825_v49 = vor.u32 1.1754944e-38, %v1824_v21  ;;  %vm1823_vm2 = vcmp.eq.f32.partialorder %v1822_v43, 8.507059e+37 }
 0x5a6   :  { %v2327_v55 = vpop.eup %2326 }
 0x5a7   :  { %v1797_v30 = vadd.f32 1.0, %v2327_v55  ;;  %v2010_v55 = vld [vmem:[%s3767_s5 + $0x10] sm:$0xff] }
 0x5a8   :  { %v2329_v45 = vpop.eup %2328 }
 0x5a9   :  { %v2331_v51 = vpop.eup %2330  ;;  %v1799_v63 = vmul.f32 %v2329_v45, %v1795_v14  ;;  %2332 = vrcp.f32 %v1797_v30  ;;  %vm1804_vm11 = vweird.f32 %v2329_v45  ;;  %v1839_v24 = vand.u32 2147483648, %v1797_v30  ;;  %v2012_v14 = vld [vmem:[%s3767_s5 + $0x20] sm:$0xff] }
 0x5aa   :  { %v1814_v42 = vmul.f32 %v2331_v51, %v1796_v16  ;;  %2334 = vtanh.f32 %v1785_v26  ;;  %vm1819_vm12 = vweird.f32 %v2331_v51  ;;  %vm1805_vm15 = vmor %vm1803_vm13, %vm1804_vm11  ;;  %vm1833_vm4 = vweird.f32 %v1797_v30  ;;  %v2024_v16 = vld [vmem:[%s3767_s5 + $0x80] sm:$0xff] }
 0x5ab   :  { %v1800_v57 = vsub.f32 1.0, %v1799_v63  ;;  %vm1820_vm0 = vmor %vm1818_vm14, %vm1819_vm12  ;;  %v1837_v31 = vand.u32 2147483647, %v1797_v30  ;;  %v1840_v6 = vor.u32 1.1754944e-38, %v1839_v24  ;;  %2045 = vmatpush.msra.mxu0 %v2024_v16  ;;  %v4106_v26 = vld [vmem:[#allocation65_spill] sm:$0xff] }
 0x5ac   :  { %v1815_v3 = vsub.f32 1.0, %v1814_v42  ;;  %v2008_v63 = vld [vmem:[%s3767_s5] sm:$0xff] }
 0x5ad   :  { %v1801_v52 = vmul.f32 %v2329_v45, %v1800_v57  ;;  %vm1838_vm6 = vcmp.eq.f32.partialorder %v1837_v31, 8.507059e+37 }
 0x5ae   :  { %v1816_v50 = vmul.f32 %v2331_v51, %v1815_v3 }
 0x5af   :  { %v2333_v38 = vpop.eup %2332  ;;  %v1802_v20 = vadd.f32 %v2329_v45, %v1801_v52 }
 0x5b0   :  { %v1829_v34 = vmul.f32 %v2333_v38, %v1797_v30  ;;  %v1817_v9 = vadd.f32 %v2331_v51, %v1816_v50  ;;  %v2335_v59 = vpop.eup %2334  ;;  %vm1834_vm3 = vweird.f32 %v2333_v38  ;;  %v2025_v30 = vld [vmem:[%s3766_s4] sm:$0xff] }
 0x5b1   :  { %v1806_v41 = vsel %vm1805_vm15, %v2329_v45, %v1802_v20  ;;  %vm1835_vm5 = vmor %vm1833_vm4, %vm1834_vm3 }
 0x5b2   :  { %v1830_v18 = vsub.f32 1.0, %v1829_v34  ;;  %v1811_v60 = vsel %vm1808_vm1, %v1810_v33, %v1806_v41  ;;  %v1821_v47 = vsel %vm1820_vm0, %v2331_v51, %v1817_v9 }
 0x5b3   :  { %v1826_v44 = vsel %vm1823_vm2, %v1825_v49, %v1821_v47  ;;  %v1845_v56 = vmul.f32 %v2335_v59, %v1811_v60 }
 0x5b4   :  { %v1844_v29 = vmul.f32 %v1826_v44, %v3687_v48  ;;  %v1831_v25 = vmul.f32 %v2333_v38, %v1830_v18  ;;  %v2023_v48 = vld [vmem:[%s3767_s5 + $0x78] sm:$0xff] }
 0x5b5   :  { %2050 = vmatpush.msra.mxu1 %v2023_v48 }
 0x5b6   :  { %v3696_v37 = vadd.f32 %v1845_v56, %v1844_v29  ;;  %v1832_v61 = vadd.f32 %v2333_v38, %v1831_v25 }
 0x5b7   :  { %2051 = vmatpush.msra.mxu1 %v2022_v19 }
 0x5b8   :  { %2336 = vtanh.f32 %v3696_v37  ;;  %v1836_v23 = vsel %vm1835_vm5, %v2333_v38, %v1832_v61  ;;  %v4107_v38 = vld [vmem:[#allocation59_spill] sm:$0xff] }
 0x5b9   :  { %v1841_v40 = vsel %vm1838_vm6, %v1840_v6, %v1836_v23  ;;  %2052 = vmatpush.msra.mxu1 %v2021_v15 }
 0x5bb   :  { %2053 = vmatpush.msra.mxu1 %v2020_v53 }
 0x5bd   :  { %2054 = vmatpush.msra.mxu1 %v2019_v39 }
 0x5be   :  { %v2337_v54 = vpop.eup %2336 }
 0x5bf   :  { %v1848_v62 = vmul.f32 %v2337_v54, %v1841_v40  ;;  %2055 = vmatpush.msra.mxu1 %v2018_v36 }
 0x5c1   :  { %1877 = vmatmul.f32.vlgmr.msrb.gmra.mxu0 %v1848_v62  ;;  %1897 = vmatmul.f32.vlgmr.msrb.gmra.mxu1 %v1848_v62 }
 0x5c2   :  { %1917 = vmatmul.f32.vlgmr.msra.gmra.mxu2 %v1848_v62  ;;  %1937 = vmatmul.f32.vlgmr.msrb.gmra.mxu3 %v1848_v62 }
 0x5c3   :  { %2056 = vmatpush.msra.mxu1 %v2017_v22 }
 0x5c5   :  { %2057 = vmatpush.msra.mxu1 %v2016_v58 }
 0x5c7   :  { %2058 = vmatpush.msra.mxu1 %v2015_v13 }
 0x5c9   :  { %2059 = vmatpush.msra.mxu1 %v2014_v1  ;;  %2194 = vmatmul.msk.f32.vlgmr.msra.gmra.mxu0 %vm2026_vm7, %v2025_v30  ;;  %vm2089_vm7 = vcmask 7168  }
 0x5cb   :  { %2060 = vmatpush.msra.mxu1 %v2013_v11 }
 0x5cd   :  { %2061 = vmatpush.msra.mxu1 %v2012_v14 }
 0x5cf   :  { %2062 = vmatpush.msra.mxu1 %v2011_v17 }
 0x5d1   :  { %2063 = vmatpush.msra.mxu1 %v2010_v55 }
 0x5d3   :  { %2064 = vmatpush.msra.mxu1 %v2009_v27 }
 0x5d5   :  { %2065 = vmatpush.msra.mxu1 %v2008_v63 }
 0x63e   :  { %v1878_v2 = vpop.f32.mrf.mxu0  ;;  %v1898_v5 = vpop.f32.mrf.mxu1 }
 0x63f   :  { %v1941_v8 = vadd.f32 %v1878_v2, %v4105_v7  ;;  %v1942_v10 = vadd.f32 %v1898_v5, %v1858_v4 }
 0x641   :  { %v2191_v12 = vmul.f32 -1.442695, %v1941_v8  ;;  %v2192_v35 = vmul.f32 -1.442695, %v1942_v10 }
 0x643   :  { %2338 = vpow2.f32 %v2191_v12 }
 0x644   :  { %2340 = vpow2.f32 %v2192_v35 }
 0x645   :  { %v1918_v45 = vpop.f32.mrf.mxu2  ;;  %v1938_v52 = vpop.f32.mrf.mxu3 }
 0x646   :  { %v1943_v51 = vadd.f32 %v1918_v45, %v4106_v26  ;;  %v1944_v20 = vadd.f32 %v1938_v52, %v4107_v38  ;;  %v2047_v5 = vpop.f32.mrf.mxu0 }
 0x648   :  { %v2193_v42 = vmul.f32 -1.442695, %v1943_v51 }
 0x649   :  { %v2339_v57 = vpop.eup %2338 }
 0x64a   :  { %v2341_v3 = vpop.eup %2340  ;;  %v1954_v32 = vadd.f32 1.0, %v2339_v57  ;;  %2342 = vpow2.f32 %v2193_v42 }
 0x64b   :  { %v1955_v21 = vadd.f32 1.0, %v2341_v3 }
 0x64c   :  { %2344 = vrcp.f32 %v1954_v32  ;;  %v1968_v59 = vand.u32 2147483648, %v1954_v32  ;;  %v1966_v47 = vand.u32 2147483647, %v1954_v32  ;;  %vm1962_vm10 = vweird.f32 %v1954_v32 }
 0x64d   :  { %2346 = vrcp.f32 %v1955_v21  ;;  %v1983_v18 = vand.u32 2147483648, %v1955_v21  ;;  %v1981_v56 = vand.u32 2147483647, %v1955_v21  ;;  %vm1977_vm11 = vweird.f32 %v1955_v21 }
 0x64e   :  { %v1969_v24 = vor.u32 1.1754944e-38, %v1968_v59  ;;  %vm1967_vm14 = vcmp.eq.f32.partialorder %v1966_v47, 8.507059e+37 }
 0x64f   :  { %v1984_v23 = vor.u32 1.1754944e-38, %v1983_v18  ;;  %vm1982_vm15 = vcmp.eq.f32.partialorder %v1981_v56, 8.507059e+37 }
 0x650   :  { %v2343_v28 = vpop.eup %2342 }
 0x651   :  { %v1956_v50 = vadd.f32 1.0, %v2343_v28 }
 0x652   :  { %v2345_v43 = vpop.eup %2344 }
 0x653   :  { %v2347_v34 = vpop.eup %2346  ;;  %v1958_v33 = vmul.f32 %v2345_v43, %v1954_v32  ;;  %2348 = vrcp.f32 %v1956_v50  ;;  %vm1963_vm8 = vweird.f32 %v2345_v43  ;;  %v1998_v58 = vand.u32 2147483648, %v1956_v50 }
 0x654   :  { %v1973_v9 = vmul.f32 %v2347_v34, %v1955_v21  ;;  %2350 = vtanh.f32 %v1944_v20  ;;  %vm1978_vm9 = vweird.f32 %v2347_v34  ;;  %vm1964_vm12 = vmor %vm1962_vm10, %vm1963_vm8  ;;  %vm1992_vm1 = vweird.f32 %v1956_v50 }
 0x655   :  { %v1959_v49 = vsub.f32 1.0, %v1958_v33  ;;  %vm1979_vm13 = vmor %vm1977_vm11, %vm1978_vm9  ;;  %v1996_v13 = vand.u32 2147483647, %v1956_v50  ;;  %v1999_v0 = vor.u32 1.1754944e-38, %v1998_v58 }
 0x656   :  { %v1974_v41 = vsub.f32 1.0, %v1973_v9 }
 0x657   :  { %v1960_v60 = vmul.f32 %v2345_v43, %v1959_v49  ;;  %vm1997_vm3 = vcmp.eq.f32.partialorder %v1996_v13, 8.507059e+37 }
 0x658   :  { %v1975_v44 = vmul.f32 %v2347_v34, %v1974_v41 }
 0x659   :  { %v2349_v29 = vpop.eup %2348  ;;  %v1961_v25 = vadd.f32 %v2345_v43, %v1960_v60 }
 0x65a   :  { %v1988_v61 = vmul.f32 %v2349_v29, %v1956_v50  ;;  %v1976_v31 = vadd.f32 %v2347_v34, %v1975_v44  ;;  %v2351_v54 = vpop.eup %2350  ;;  %vm1993_vm0 = vweird.f32 %v2349_v29 }
 0x65b   :  { %v1965_v6 = vsel %vm1964_vm12, %v2345_v43, %v1961_v25  ;;  %vm1994_vm2 = vmor %vm1992_vm1, %vm1993_vm0 }
 0x65c   :  { %v1989_v40 = vsub.f32 1.0, %v1988_v61  ;;  %v1970_v62 = vsel %vm1967_vm14, %v1969_v24, %v1965_v6  ;;  %v1980_v48 = vsel %vm1979_vm13, %v2347_v34, %v1976_v31 }
 0x65d   :  { %v1985_v19 = vsel %vm1982_vm15, %v1984_v23, %v1980_v48  ;;  %v2004_v15 = vmul.f32 %v2351_v54, %v1970_v62 }
 0x65e   :  { %v2003_v53 = vmul.f32 %v1985_v19, %v3696_v37  ;;  %v1990_v39 = vmul.f32 %v2349_v29, %v1989_v40 }
 0x660   :  { %v2005_v36 = vadd.f32 %v2004_v15, %v2003_v53  ;;  %v1991_v22 = vadd.f32 %v2349_v29, %v1990_v39 }
 0x662   :  { %2352 = vtanh.f32 %v2005_v36  ;;  %v1995_v46 = vsel %vm1994_vm2, %v2349_v29, %v1991_v22 }
 0x663   :  { %v2000_v1 = vsel %vm1997_vm3, %v1999_v0, %v1995_v46 }
 0x668   :  { %v2353_v4 = vpop.eup %2352 }
 0x669   :  { %v2007_v2 = vmul.f32 %v2353_v4, %v2000_v1 }
 0x66b   :  { %2066 = vmatmul.f32.vlgmr.msra.gmra.mxu1 %v2007_v2 }
 0x6e8   :  { %v2067_v7 = vpop.f32.mrf.mxu1 }
 0x6e9   :  { %v2068_v8 = vadd.f32 %v2067_v7, %v2047_v5 }
 0x6eb   :  { %v2195_v37 = vmul.f32 -1.442695, %v2068_v8 }
 0x6ed   :  { %2354 = vpow2.f32 %v2195_v37 }
 0x6f3   :  { %v2355_v10 = vpop.eup %2354 }
 0x6f4   :  { %v2073_v11 = vadd.f32 1.0, %v2355_v10 }
 0x6f6   :  { %2356 = vrcp.f32 %v2073_v11  ;;  %v2085_v16 = vand.u32 2147483648, %v2073_v11  ;;  %v2083_v55 = vand.u32 2147483647, %v2073_v11  ;;  %vm2079_vm5 = vweird.f32 %v2073_v11 }
 0x6f8   :  { %v2086_v45 = vor.u32 1.1754944e-38, %v2085_v16  ;;  %vm2084_vm8 = vcmp.eq.f32.partialorder %v2083_v55, 8.507059e+37 }
 0x6fc   :  { %v2357_v12 = vpop.eup %2356 }
 0x6fd   :  { %v2075_v35 = vmul.f32 %v2357_v12, %v2073_v11  ;;  %vm2080_vm4 = vweird.f32 %v2357_v12 }
 0x6fe   :  { %vm2081_vm6 = vmor %vm2079_vm5, %vm2080_vm4 }
 0x6ff   :  { %v2076_v14 = vsub.f32 1.0, %v2075_v35 }
 0x701   :  { %v2077_v17 = vmul.f32 %v2357_v12, %v2076_v14 }
 0x703   :  { %v2078_v30 = vadd.f32 %v2357_v12, %v2077_v17 }
 0x705   :  { %v2082_v27 = vsel %vm2081_vm6, %v2357_v12, %v2078_v30 }
 0x706   :  { %v2087_v26 = vsel %vm2084_vm8, %v2086_v45, %v2082_v27 }
 0x707   :  { %2090 = vst.msk [vmem:[%s3768_s6] sm:$0xff] %vm2089_vm7, %v2087_v26 }
 0x708   :  { %2095 = vsyncpa [#allocation4], 1 }
 0x709   :  { %2096 = vsyncpa [#allocation6], 1 }

</bundles_post_ra>
